<compile_context>
chip_gen: v5e
topology: v5e:2x2
jax: 0.10.0
libtpu: 0.0.40
codegen_flags: <defaults>
</compile_context>

<pallas_src>
import math
import jax
import jax.numpy as jnp
from jax.experimental import pallas as pl
from jax.experimental.pallas import tpu as pltpu

B = 2
C_IN = 3
H = W = 14
HW = H * W                      # 196
IMG_CH = 64
FLAT = IMG_CH * HW              # 12544
K_RAW = C_IN * HW               # 588
K_PAD = 640                     # 5 * 128, zero-padded contraction dim
HID = 256
TIME_EMB = 32
NUM_ACTIONS = 6
MAX_EP_LEN = 30
VOCAB = 20
SEQ = 8
WORD_EMB = 32


# ---------------------------------------------------------------------------
# Single fused Pallas kernel (gridless: everything fits VMEM at once)
# ---------------------------------------------------------------------------

def _fused_kernel(img3_ref, imgk_ref, convw_ref, convb_ref,
                  weff_ref, beff_ref, h0_ref, c0_ref,
                  wih_ref, whh_ref, blstm_ref,
                  temb_ref, traw_ref,
                  wmh_ref, wmt_ref, wmr_ref, bmix_ref,
                  whead_ref, bhead_ref,
                  conv_ref, logp_ref, xmix_ref, hx_ref, cx_ref, crit_ref):
    # --- image_module stand-in: 1x1 conv C_IN->64 ---------------------------
    # Only needed for the image_emb_seq return value; the main path uses the
    # conv-folded linear weight below.  B=2 -> static unroll, 2 tiny MXU pushes.
    w_conv = convw_ref[...]
    b_conv = convb_ref[...]
    for b in range(B):
        conv_ref[b] = (jnp.dot(w_conv, img3_ref[b],
                               preferred_element_type=jnp.float32) + b_conv)

    # --- x = relu(self.linear(flatten(conv(img)))) ---------------------------
    # 1x1 conv folded into the linear: raw image (B, 640 zero-padded) against
    # the pre-folded (640, 256) bf16 weight, f32 accumulation.
    x = (jnp.dot(imgk_ref[...].astype(jnp.bfloat16), weff_ref[...],
                 preferred_element_type=jnp.float32) + beff_ref[...])
    x = jnp.maximum(x, 0.0)

    # --- image_recurrence_module stand-in: LSTMCell(256, 256) ---------------
    # Gate order (i, f, g, o); two partial dots instead of a concatenate.
    gates = (jnp.dot(x.astype(jnp.bfloat16), wih_ref[...],
                     preferred_element_type=jnp.float32)
             + jnp.dot(h0_ref[...].astype(jnp.bfloat16), whh_ref[...],
                       preferred_element_type=jnp.float32)
             + blstm_ref[...])
    i = jax.nn.sigmoid(gates[:, 0 * HID:1 * HID])
    f = jax.nn.sigmoid(gates[:, 1 * HID:2 * HID])
    g = jnp.tanh(gates[:, 2 * HID:3 * HID])
    o = jax.nn.sigmoid(gates[:, 3 * HID:4 * HID])
    c_new = f * c0_ref[...] + i * g
    h_new = o * jnp.tanh(c_new)
    cx_ref[...] = c_new
    hx_ref[...] = h_new

    # --- x = leaky_relu(self.linear_mix(cat(hx, time_emb, text_raw))) -------
    # Three partial matmuls -> no concatenate, no padded K=544 contraction.
    xm = (jnp.dot(h_new.astype(jnp.bfloat16), wmh_ref[...],
                  preferred_element_type=jnp.float32)
          + jnp.dot(temb_ref[...].astype(jnp.bfloat16), wmt_ref[...],
                    preferred_element_type=jnp.float32)
          + jnp.dot(traw_ref[...].astype(jnp.bfloat16), wmr_ref[...],
                    preferred_element_type=jnp.float32)
          + bmix_ref[...])
    xm = jnp.where(xm > 0, xm, 0.01 * xm)          # F.leaky_relu default slope
    xmix_ref[...] = xm

    # --- fused actor+critic head (one (256,7) MXU push), log_softmax(dim=1) --
    head = (jnp.dot(xm.astype(jnp.bfloat16), whead_ref[...],
                    preferred_element_type=jnp.float32) + bhead_ref[...])
    act = head[:, :NUM_ACTIONS]
    m = jnp.max(act, axis=-1, keepdims=True)
    lse = m + jnp.log(jnp.sum(jnp.exp(act - m), axis=-1, keepdims=True))
    logp_ref[...] = act - lse
    # critic (computed, unused in ACT mode - faithful to the reference)
    crit_ref[...] = head[:, NUM_ACTIONS:NUM_ACTIONS + 1]


def fused_forward(img3, img_flat_pad, p, h0, c0, time_emb, text_raw):
    out_shapes = (
        jax.ShapeDtypeStruct((B, IMG_CH, HW), jnp.float32),    # conv out (image_emb)
        jax.ShapeDtypeStruct((B, NUM_ACTIONS), jnp.float32),   # log_softmax(actor)
        jax.ShapeDtypeStruct((B, HID), jnp.float32),           # x (post linear_mix)
        jax.ShapeDtypeStruct((B, HID), jnp.float32),           # hx
        jax.ShapeDtypeStruct((B, HID), jnp.float32),           # cx
        jax.ShapeDtypeStruct((B, 1), jnp.float32),             # critic
    )
    # Gridless single invocation: default BlockSpecs place every (small) array
    # fully in VMEM; total footprint is ~2.5 MB, well under any generation's
    # scoped-VMEM default.
    return pl.pallas_call(
        _fused_kernel,
        out_shape=out_shapes,
    )(img3, img_flat_pad, p["conv_w"], p["conv_b"],
      p["w_eff"], p["b_eff"], h0, c0,
      p["w_ih"], p["w_hh"], p["b_lstm"],
      time_emb, text_raw,
      p["w_mix_h"], p["w_mix_t"], p["w_mix_r"], p["b_mix"],
      p["w_head"], p["b_head"])


# ---------------------------------------------------------------------------
# Parameter construction (deterministic, mirrors weights_init bounds)
# ---------------------------------------------------------------------------

def _lin_init(key, fan_in, fan_out):
    kw, key = jax.random.split(key)
    bound = math.sqrt(6.0 / (fan_in + fan_out))
    w = jax.random.uniform(kw, (fan_in, fan_out), jnp.float32, -bound, bound)
    b = jnp.zeros((fan_out,), jnp.float32)
    return w, b, key


def init_params(key):
    p = {}
    # image_module stand-in: 1x1 conv (weights stored as (out, in))
    w, b, key = _lin_init(key, C_IN, IMG_CH)
    conv_w = w.T                                    # (64, C_IN)
    p["conv_w"] = conv_w
    p["conv_b"] = b.reshape(IMG_CH, 1)              # (64, 1)
    # text_module stand-in
    kk, key = jax.random.split(key)
    p["word_emb"] = jax.random.normal(kk, (VOCAB, WORD_EMB), jnp.float32) * 0.1
    p["w_tg"], p["b_tg"], key = _lin_init(key, WORD_EMB, IMG_CH)
    p["w_tr"], p["b_tr"], key = _lin_init(key, WORD_EMB, HID)
    # self.linear : 12544 -> 256, folded with the linear 1x1 conv into a
    # (588, 256) weight on the raw image, zero-padded to K=640, stored bf16.
    w1, b1, key = _lin_init(key, FLAT, HID)
    w1_3 = w1.reshape(IMG_CH, HW, HID)
    w_eff = jnp.einsum("ci,cpo->ipo", conv_w, w1_3).reshape(K_RAW, HID)
    b_eff = b1 + jnp.einsum("c,cpo->o", p["conv_b"][:, 0], w1_3)
    w_eff = jnp.pad(w_eff, ((0, K_PAD - K_RAW), (0, 0)))
    p["w_eff"] = w_eff.astype(jnp.bfloat16)         # (640, 256) bf16
    p["b_eff"] = b_eff.reshape(1, HID)
    # image_recurrence_module stand-in: LSTMCell(256, 256), separate w_ih/w_hh
    w_ih, _, key = _lin_init(key, HID, 4 * HID)
    w_hh, _, key = _lin_init(key, HID, 4 * HID)
    p["w_ih"] = w_ih.astype(jnp.bfloat16)
    p["w_hh"] = w_hh.astype(jnp.bfloat16)
    p["b_lstm"] = jnp.zeros((1, 4 * HID), jnp.float32)
    # time embedding
    kk, key = jax.random.split(key)
    p["time_emb"] = jax.random.normal(kk, (MAX_EP_LEN + 1, TIME_EMB),
                                      jnp.float32) * 0.1
    # linear_mix : 544 -> 256, sliced host-side into [hx | time | text_raw]
    wm, bm, key = _lin_init(key, 2 * HID + TIME_EMB, HID)
    p["w_mix_h"] = wm[:HID].astype(jnp.bfloat16)            # (256, 256)
    p["w_mix_t"] = wm[HID:HID + TIME_EMB].astype(jnp.bfloat16)   # (32, 256)
    p["w_mix_r"] = wm[HID + TIME_EMB:].astype(jnp.bfloat16)      # (256, 256)
    p["b_mix"] = bm.reshape(1, HID)
    # actor + critic fused into one head: (256, 7) weight, (1, 7) bias
    wa, ba, key = _lin_init(key, HID, NUM_ACTIONS)
    wc, bc, key = _lin_init(key, HID, 1)
    p["w_head"] = jnp.concatenate([wa, wc], axis=1).astype(jnp.bfloat16)
    p["b_head"] = jnp.concatenate([ba, bc]).reshape(1, NUM_ACTIONS + 1)
    # dense_read head (unused in ACT mode)
    p["w_read"], p["b_read"], key = _lin_init(key, 512, 2)
    return p, key


# ---------------------------------------------------------------------------
# Forward pass (ACT mode path)
# ---------------------------------------------------------------------------

def forward(params, image, instructions, tx, mode=None, model_state=None):
    img3 = image.reshape(B, C_IN, HW)                       # for the conv
    img_flat = image.reshape(B, K_RAW)                      # for the folded linear
    img_flat_pad = jnp.pad(img_flat, ((0, 0), (0, K_PAD - K_RAW)))

    if model_state is None:
        # --- text_module (synthetic stand-in, plain-JAX glue) ---
        word = params["word_emb"][instructions]             # (B, SEQ, 32)
        feat = word.mean(axis=1)                            # (B, 32)
        gate = jax.nn.sigmoid(feat @ params["w_tg"] + params["b_tg"])  # (B, 64)
        text_emb = jnp.broadcast_to(gate[:, :, None, None], (B, IMG_CH, H, W))
        text_emb_raw = feat @ params["w_tr"] + params["b_tr"]          # (B, 256)
        image_hidden_states = None
    else:
        text_emb, text_emb_raw, image_hidden_states = model_state

    if image_hidden_states is None:
        hx0 = jnp.zeros((B, HID), jnp.float32)
        cx0 = jnp.zeros((B, HID), jnp.float32)
    else:
        hx0, cx0 = image_hidden_states

    time_emb = params["time_emb"][tx].reshape(B, TIME_EMB)  # (B, 32)

    # One fused pallas_call: conv (for image_emb_seq), folded linear+relu,
    # LSTM cell, linear_mix+leaky_relu, actor log_softmax / critic.
    conv_out, logp, x_mix, hx, cx, _critic = fused_forward(
        img3, img_flat_pad, params, hx0, cx0, time_emb,
        text_emb_raw.reshape(B, HID))

    image_emb_seq = conv_out.reshape(B, 1, IMG_CH, H, W)
    image_emb = image_emb_seq[:, 0]                         # (B, 64, 14, 14)
    assert image_emb.shape == text_emb.shape
    # `x = image_emb * text_emb` in the reference is immediately overwritten
    # (dead code); XLA would DCE it, so it is omitted here.

    new_image_hidden_states = (hx, cx)
    new_model_state = (text_emb, text_emb_raw, new_image_hidden_states)
    if mode is None:
        # ACT mode: (log_softmax(actor), state, image_emb_seq, x)
        return logp, new_model_state, image_emb_seq, x_mix
    else:
        # TODO(synk): READ_MODE branch (dense_read head) omitted;
        # ReadPointerAgent mode constants are not provided in the reference.
        raise ValueError("invalid mode for model: %r" % mode)


# ---------------------------------------------------------------------------

if __name__ == "__main__":
    key = jax.random.PRNGKey(0)
    params, key = init_params(key)
    k1, k2, k3 = jax.random.split(key, 3)
    image = jax.random.normal(k1, (B, C_IN, H, W), jnp.float32)
    instructions = jax.random.randint(k2, (B, SEQ), 0, VOCAB)
    tx = jax.random.randint(k3, (B,), 0, MAX_EP_LEN + 1)

    fwd = jax.jit(lambda p, im, ins, t: forward(p, im, ins, t,
                                                mode=None, model_state=None))
    logp, new_state, image_emb_seq, x_mix = fwd(params, image, instructions, tx)
    jax.block_until_ready((logp, new_state, image_emb_seq, x_mix))

    assert logp.shape == (B, NUM_ACTIONS)
    assert x_mix.shape == (B, HID)
    assert image_emb_seq.shape == (B, 1, IMG_CH, H, W)
    assert new_state[2][0].shape == (B, HID) and new_state[2][1].shape == (B, HID)
    # log_softmax rows must exp-sum to 1
    assert bool(jnp.allclose(jnp.sum(jnp.exp(logp), axis=-1), 1.0, atol=1e-3))
    print("KERNEL_OK")
</pallas_src>

<mosaic_0001>
module attributes {stable_mosaic.version = 11 : i64} {
  func.func @_fused_kernel(%arg0: memref<2x3x196xf32, #tpu.memory_space<vmem>>, %arg1: memref<2x640xf32, #tpu.memory_space<vmem>>, %arg2: memref<64x3xf32, #tpu.memory_space<vmem>>, %arg3: memref<64x1xf32, #tpu.memory_space<vmem>>, %arg4: memref<640x256xbf16, #tpu.memory_space<vmem>>, %arg5: memref<1x256xf32, #tpu.memory_space<vmem>>, %arg6: memref<2x256xf32, #tpu.memory_space<vmem>>, %arg7: memref<2x256xf32, #tpu.memory_space<vmem>>, %arg8: memref<256x1024xbf16, #tpu.memory_space<vmem>>, %arg9: memref<256x1024xbf16, #tpu.memory_space<vmem>>, %arg10: memref<1x1024xf32, #tpu.memory_space<vmem>>, %arg11: memref<2x32xf32, #tpu.memory_space<vmem>>, %arg12: memref<2x256xf32, #tpu.memory_space<vmem>>, %arg13: memref<256x256xbf16, #tpu.memory_space<vmem>>, %arg14: memref<32x256xbf16, #tpu.memory_space<vmem>>, %arg15: memref<256x256xbf16, #tpu.memory_space<vmem>>, %arg16: memref<1x256xf32, #tpu.memory_space<vmem>>, %arg17: memref<256x7xbf16, #tpu.memory_space<vmem>>, %arg18: memref<1x7xf32, #tpu.memory_space<vmem>>, %arg19: memref<2x64x196xf32, #tpu.memory_space<vmem>>, %arg20: memref<2x6xf32, #tpu.memory_space<vmem>>, %arg21: memref<2x256xf32, #tpu.memory_space<vmem>>, %arg22: memref<2x256xf32, #tpu.memory_space<vmem>>, %arg23: memref<2x256xf32, #tpu.memory_space<vmem>>, %arg24: memref<2x1xf32, #tpu.memory_space<vmem>>) attributes {dimension_semantics = [], scalar_prefetch = 0 : i64, scratch_operands = 0 : i64, tpu.core_type = #tpu.core_type<tc>} {
    %c0 = arith.constant 0 : index
    %c0_0 = arith.constant 0 : index
    %0 = vector.load %arg2[%c0, %c0_0] : memref<64x3xf32, #tpu.memory_space<vmem>>, vector<64x3xf32>
    %c0_1 = arith.constant 0 : index
    %c0_2 = arith.constant 0 : index
    %1 = vector.load %arg3[%c0_1, %c0_2] : memref<64x1xf32, #tpu.memory_space<vmem>>, vector<64x1xf32>
    %c0_3 = arith.constant 0 : index
    %c0_4 = arith.constant 0 : index
    %c0_5 = arith.constant 0 : index
    %2 = vector.load %arg0[%c0_3, %c0_4, %c0_5] : memref<2x3x196xf32, #tpu.memory_space<vmem>>, vector<1x3x196xf32>
    %3 = vector.shape_cast %2 : vector<1x3x196xf32> to vector<3x196xf32>
    %cst = arith.constant dense<0.000000e+00> : vector<64x196xf32>
    %4 = tpu.matmul %0, %3, %cst {dimension_numbers = #tpu.dot_dimension_numbers<[1], [0], [0], [1], [0, 0, 1, 1], [], []>} : vector<64x3xf32>, vector<3x196xf32>, vector<64x196xf32> -> vector<64x196xf32>
    %5 = vector.broadcast %1 : vector<64x1xf32> to vector<64x196xf32>
    %6 = arith.addf %4, %5 : vector<64x196xf32>
    %c0_6 = arith.constant 0 : index
    %c0_7 = arith.constant 0 : index
    %c0_8 = arith.constant 0 : index
    %7 = vector.load %arg19[%c0_6, %c0_7, %c0_8] : memref<2x64x196xf32, #tpu.memory_space<vmem>>, vector<1x64x196xf32>
    %8 = vector.shape_cast %7 : vector<1x64x196xf32> to vector<64x196xf32>
    %9 = vector.shape_cast %6 : vector<64x196xf32> to vector<1x64x196xf32>
    tpu.vector_store %arg19[%c0_6, %c0_7, %c0_8], %9 {strides = array<i32>} : memref<2x64x196xf32, #tpu.memory_space<vmem>>, vector<1x64x196xf32>,
    %c1 = arith.constant 1 : index
    %c0_9 = arith.constant 0 : index
    %c0_10 = arith.constant 0 : index
    %10 = vector.load %arg0[%c1, %c0_9, %c0_10] : memref<2x3x196xf32, #tpu.memory_space<vmem>>, vector<1x3x196xf32>
    %11 = vector.shape_cast %10 : vector<1x3x196xf32> to vector<3x196xf32>
    %cst_11 = arith.constant dense<0.000000e+00> : vector<64x196xf32>
    %12 = tpu.matmul %0, %11, %cst_11 {dimension_numbers = #tpu.dot_dimension_numbers<[1], [0], [0], [1], [0, 0, 1, 1], [], []>} : vector<64x3xf32>, vector<3x196xf32>, vector<64x196xf32> -> vector<64x196xf32>
    %13 = vector.broadcast %1 : vector<64x1xf32> to vector<64x196xf32>
    %14 = arith.addf %12, %13 : vector<64x196xf32>
    %c1_12 = arith.constant 1 : index
    %c0_13 = arith.constant 0 : index
    %c0_14 = arith.constant 0 : index
    %15 = vector.load %arg19[%c1_12, %c0_13, %c0_14] : memref<2x64x196xf32, #tpu.memory_space<vmem>>, vector<1x64x196xf32>
    %16 = vector.shape_cast %15 : vector<1x64x196xf32> to vector<64x196xf32>
    %17 = vector.shape_cast %14 : vector<64x196xf32> to vector<1x64x196xf32>
    tpu.vector_store %arg19[%c1_12, %c0_13, %c0_14], %17 {strides = array<i32>} : memref<2x64x196xf32, #tpu.memory_space<vmem>>, vector<1x64x196xf32>,
    %c0_15 = arith.constant 0 : index
    %c0_16 = arith.constant 0 : index
    %18 = vector.load %arg1[%c0_15, %c0_16] : memref<2x640xf32, #tpu.memory_space<vmem>>, vector<2x640xf32>
    %19 = arith.truncf %18 : vector<2x640xf32> to vector<2x640xbf16>
    %c0_17 = arith.constant 0 : index
    %c0_18 = arith.constant 0 : index
    %20 = vector.load %arg4[%c0_17, %c0_18] : memref<640x256xbf16, #tpu.memory_space<vmem>>, vector<640x256xbf16>
    %cst_19 = arith.constant dense<0.000000e+00> : vector<2x256xf32>
    %21 = tpu.matmul %19, %20, %cst_19 {dimension_numbers = #tpu.dot_dimension_numbers<[1], [0], [0], [1], [0, 0, 1, 1], [], []>} : vector<2x640xbf16>, vector<640x256xbf16>, vector<2x256xf32> -> vector<2x256xf32>
    %c0_20 = arith.constant 0 : index
    %c0_21 = arith.constant 0 : index
    %22 = vector.load %arg5[%c0_20, %c0_21] : memref<1x256xf32, #tpu.memory_space<vmem>>, vector<1x256xf32>
    %23 = vector.broadcast %22 : vector<1x256xf32> to vector<2x256xf32>
    %24 = arith.addf %21, %23 : vector<2x256xf32>
    %cst_22 = arith.constant 0.000000e+00 : f32
    %25 = vector.broadcast %cst_22 : f32 to vector<2x256xf32>
    %26 = arith.maximumf %24, %25 : vector<2x256xf32>
    %27 = arith.truncf %26 : vector<2x256xf32> to vector<2x256xbf16>
    %c0_23 = arith.constant 0 : index
    %c0_24 = arith.constant 0 : index
    %28 = vector.load %arg8[%c0_23, %c0_24] : memref<256x1024xbf16, #tpu.memory_space<vmem>>, vector<256x1024xbf16>
    %cst_25 = arith.constant dense<0.000000e+00> : vector<2x1024xf32>
    %29 = tpu.matmul %27, %28, %cst_25 {dimension_numbers = #tpu.dot_dimension_numbers<[1], [0], [0], [1], [0, 0, 1, 1], [], []>} : vector<2x256xbf16>, vector<256x1024xbf16>, vector<2x1024xf32> -> vector<2x1024xf32>
    %c0_26 = arith.constant 0 : index
    %c0_27 = arith.constant 0 : index
    %30 = vector.load %arg6[%c0_26, %c0_27] : memref<2x256xf32, #tpu.memory_space<vmem>>, vector<2x256xf32>
    %31 = arith.truncf %30 : vector<2x256xf32> to vector<2x256xbf16>
    %c0_28 = arith.constant 0 : index
    %c0_29 = arith.constant 0 : index
    %32 = vector.load %arg9[%c0_28, %c0_29] : memref<256x1024xbf16, #tpu.memory_space<vmem>>, vector<256x1024xbf16>
    %cst_30 = arith.constant dense<0.000000e+00> : vector<2x1024xf32>
    %33 = tpu.matmul %31, %32, %cst_30 {dimension_numbers = #tpu.dot_dimension_numbers<[1], [0], [0], [1], [0, 0, 1, 1], [], []>} : vector<2x256xbf16>, vector<256x1024xbf16>, vector<2x1024xf32> -> vector<2x1024xf32>
    %34 = arith.addf %29, %33 : vector<2x1024xf32>
    %c0_31 = arith.constant 0 : index
    %c0_32 = arith.constant 0 : index
    %35 = vector.load %arg10[%c0_31, %c0_32] : memref<1x1024xf32, #tpu.memory_space<vmem>>, vector<1x1024xf32>
    %36 = vector.broadcast %35 : vector<1x1024xf32> to vector<2x1024xf32>
    %37 = arith.addf %34, %36 : vector<2x1024xf32>
    %38 = vector.extract_strided_slice %37 {offsets = [0, 0], sizes = [2, 256], strides = [1, 1]} : vector<2x1024xf32> to vector<2x256xf32>
    %39 = arith.negf %38 : vector<2x256xf32>
    %40 = math.exp %39 : vector<2x256xf32>
    %cst_33 = arith.constant 1.000000e+00 : f32
    %41 = vector.broadcast %cst_33 : f32 to vector<2x256xf32>
    %42 = arith.addf %41, %40 : vector<2x256xf32>
    %43 = arith.divf %41, %42 : vector<2x256xf32>
    %44 = vector.extract_strided_slice %37 {offsets = [0, 256], sizes = [2, 256], strides = [1, 1]} : vector<2x1024xf32> to vector<2x256xf32>
    %45 = arith.negf %44 : vector<2x256xf32>
    %46 = math.exp %45 : vector<2x256xf32>
    %cst_34 = arith.constant 1.000000e+00 : f32
    %47 = vector.broadcast %cst_34 : f32 to vector<2x256xf32>
    %48 = arith.addf %47, %46 : vector<2x256xf32>
    %49 = arith.divf %47, %48 : vector<2x256xf32>
    %50 = vector.extract_strided_slice %37 {offsets = [0, 512], sizes = [2, 256], strides = [1, 1]} : vector<2x1024xf32> to vector<2x256xf32>
    %51 = math.tanh %50 : vector<2x256xf32>
    %52 = vector.extract_strided_slice %37 {offsets = [0, 768], sizes = [2, 256], strides = [1, 1]} : vector<2x1024xf32> to vector<2x256xf32>
    %53 = arith.negf %52 : vector<2x256xf32>
    %54 = math.exp %53 : vector<2x256xf32>
    %cst_35 = arith.constant 1.000000e+00 : f32
    %55 = vector.broadcast %cst_35 : f32 to vector<2x256xf32>
    %56 = arith.addf %55, %54 : vector<2x256xf32>
    %57 = arith.divf %55, %56 : vector<2x256xf32>
    %c0_36 = arith.constant 0 : index
    %c0_37 = arith.constant 0 : index
    %58 = vector.load %arg7[%c0_36, %c0_37] : memref<2x256xf32, #tpu.memory_space<vmem>>, vector<2x256xf32>
    %59 = arith.mulf %49, %58 : vector<2x256xf32>
    %60 = arith.mulf %43, %51 : vector<2x256xf32>
    %61 = arith.addf %59, %60 : vector<2x256xf32>
    %62 = math.tanh %61 : vector<2x256xf32>
    %63 = arith.mulf %57, %62 : vector<2x256xf32>
    %c0_38 = arith.constant 0 : index
    %c0_39 = arith.constant 0 : index
    %64 = vector.load %arg23[%c0_38, %c0_39] : memref<2x256xf32, #tpu.memory_space<vmem>>, vector<2x256xf32>
    tpu.vector_store %arg23[%c0_38, %c0_39], %61 {strides = array<i32>} : memref<2x256xf32, #tpu.memory_space<vmem>>, vector<2x256xf32>,
    %c0_40 = arith.constant 0 : index
    %c0_41 = arith.constant 0 : index
    %65 = vector.load %arg22[%c0_40, %c0_41] : memref<2x256xf32, #tpu.memory_space<vmem>>, vector<2x256xf32>
    tpu.vector_store %arg22[%c0_40, %c0_41], %63 {strides = array<i32>} : memref<2x256xf32, #tpu.memory_space<vmem>>, vector<2x256xf32>,
    %66 = arith.truncf %63 : vector<2x256xf32> to vector<2x256xbf16>
    %c0_42 = arith.constant 0 : index
    %c0_43 = arith.constant 0 : index
    %67 = vector.load %arg13[%c0_42, %c0_43] : memref<256x256xbf16, #tpu.memory_space<vmem>>, vector<256x256xbf16>
    %cst_44 = arith.constant dense<0.000000e+00> : vector<2x256xf32>
    %68 = tpu.matmul %66, %67, %cst_44 {dimension_numbers = #tpu.dot_dimension_numbers<[1], [0], [0], [1], [0, 0, 1, 1], [], []>} : vector<2x256xbf16>, vector<256x256xbf16>, vector<2x256xf32> -> vector<2x256xf32>
    %c0_45 = arith.constant 0 : index
    %c0_46 = arith.constant 0 : index
    %69 = vector.load %arg11[%c0_45, %c0_46] : memref<2x32xf32, #tpu.memory_space<vmem>>, vector<2x32xf32>
    %70 = arith.truncf %69 : vector<2x32xf32> to vector<2x32xbf16>
    %c0_47 = arith.constant 0 : index
    %c0_48 = arith.constant 0 : index
    %71 = vector.load %arg14[%c0_47, %c0_48] : memref<32x256xbf16, #tpu.memory_space<vmem>>, vector<32x256xbf16>
    %cst_49 = arith.constant dense<0.000000e+00> : vector<2x256xf32>
    %72 = tpu.matmul %70, %71, %cst_49 {dimension_numbers = #tpu.dot_dimension_numbers<[1], [0], [0], [1], [0, 0, 1, 1], [], []>} : vector<2x32xbf16>, vector<32x256xbf16>, vector<2x256xf32> -> vector<2x256xf32>
    %73 = arith.addf %68, %72 : vector<2x256xf32>
    %c0_50 = arith.constant 0 : index
    %c0_51 = arith.constant 0 : index
    %74 = vector.load %arg12[%c0_50, %c0_51] : memref<2x256xf32, #tpu.memory_space<vmem>>, vector<2x256xf32>
    %75 = arith.truncf %74 : vector<2x256xf32> to vector<2x256xbf16>
    %c0_52 = arith.constant 0 : index
    %c0_53 = arith.constant 0 : index
    %76 = vector.load %arg15[%c0_52, %c0_53] : memref<256x256xbf16, #tpu.memory_space<vmem>>, vector<256x256xbf16>
    %cst_54 = arith.constant dense<0.000000e+00> : vector<2x256xf32>
    %77 = tpu.matmul %75, %76, %cst_54 {dimension_numbers = #tpu.dot_dimension_numbers<[1], [0], [0], [1], [0, 0, 1, 1], [], []>} : vector<2x256xbf16>, vector<256x256xbf16>, vector<2x256xf32> -> vector<2x256xf32>
    %78 = arith.addf %73, %77 : vector<2x256xf32>
    %c0_55 = arith.constant 0 : index
    %c0_56 = arith.constant 0 : index
    %79 = vector.load %arg16[%c0_55, %c0_56] : memref<1x256xf32, #tpu.memory_space<vmem>>, vector<1x256xf32>
    %80 = vector.broadcast %79 : vector<1x256xf32> to vector<2x256xf32>
    %81 = arith.addf %78, %80 : vector<2x256xf32>
    %cst_57 = arith.constant 0.000000e+00 : f32
    %82 = vector.broadcast %cst_57 : f32 to vector<2x256xf32>
    %83 = arith.cmpf ogt, %81, %82 : vector<2x256xf32>
    %cst_58 = arith.constant 0.00999999977 : f32
    %84 = vector.broadcast %cst_58 : f32 to vector<2x256xf32>
    %85 = arith.mulf %84, %81 : vector<2x256xf32>
    %86 = arith.select %83, %81, %85 : vector<2x256xi1>, vector<2x256xf32>
    %c0_59 = arith.constant 0 : index
    %c0_60 = arith.constant 0 : index
    %87 = vector.load %arg21[%c0_59, %c0_60] : memref<2x256xf32, #tpu.memory_space<vmem>>, vector<2x256xf32>
    tpu.vector_store %arg21[%c0_59, %c0_60], %86 {strides = array<i32>} : memref<2x256xf32, #tpu.memory_space<vmem>>, vector<2x256xf32>,
    %88 = arith.truncf %86 : vector<2x256xf32> to vector<2x256xbf16>
    %c0_61 = arith.constant 0 : index
    %c0_62 = arith.constant 0 : index
    %89 = vector.load %arg17[%c0_61, %c0_62] : memref<256x7xbf16, #tpu.memory_space<vmem>>, vector<256x7xbf16>
    %cst_63 = arith.constant dense<0.000000e+00> : vector<2x7xf32>
    %90 = tpu.matmul %88, %89, %cst_63 {dimension_numbers = #tpu.dot_dimension_numbers<[1], [0], [0], [1], [0, 0, 1, 1], [], []>} : vector<2x256xbf16>, vector<256x7xbf16>, vector<2x7xf32> -> vector<2x7xf32>
    %c0_64 = arith.constant 0 : index
    %c0_65 = arith.constant 0 : index
    %91 = vector.load %arg18[%c0_64, %c0_65] : memref<1x7xf32, #tpu.memory_space<vmem>>, vector<1x7xf32>
    %92 = vector.broadcast %91 : vector<1x7xf32> to vector<2x7xf32>
    %93 = arith.addf %90, %92 : vector<2x7xf32>
    %94 = vector.extract_strided_slice %93 {offsets = [0, 0], sizes = [2, 6], strides = [1, 1]} : vector<2x7xf32> to vector<2x6xf32>
    %cst_66 = arith.constant dense<0xFF800000> : vector<2xf32>
    %95 = vector.multi_reduction <maximumf>, %94, %cst_66 [1] : vector<2x6xf32> to vector<2xf32>
    %96 = vector.shape_cast %95 : vector<2xf32> to vector<2x1xf32>
    %97 = vector.broadcast %96 : vector<2x1xf32> to vector<2x6xf32>
    %98 = arith.subf %94, %97 : vector<2x6xf32>
    %99 = math.exp %98 : vector<2x6xf32>
    %cst_67 = arith.constant dense<0.000000e+00> : vector<2xf32>
    %100 = vector.multi_reduction <add>, %99, %cst_67 [1] : vector<2x6xf32> to vector<2xf32>
    %101 = vector.shape_cast %100 : vector<2xf32> to vector<2x1xf32>
    %102 = math.log %101 : vector<2x1xf32>
    %103 = arith.addf %96, %102 : vector<2x1xf32>
    %104 = vector.broadcast %103 : vector<2x1xf32> to vector<2x6xf32>
    %105 = arith.subf %94, %104 : vector<2x6xf32>
    %c0_68 = arith.constant 0 : index
    %c0_69 = arith.constant 0 : index
    %106 = vector.load %arg20[%c0_68, %c0_69] : memref<2x6xf32, #tpu.memory_space<vmem>>, vector<2x6xf32>
    tpu.vector_store %arg20[%c0_68, %c0_69], %105 {strides = array<i32>} : memref<2x6xf32, #tpu.memory_space<vmem>>, vector<2x6xf32>,
    %107 = vector.extract_strided_slice %93 {offsets = [0, 6], sizes = [2, 1], strides = [1, 1]} : vector<2x7xf32> to vector<2x1xf32>
    %c0_70 = arith.constant 0 : index
    %c0_71 = arith.constant 0 : index
    %108 = vector.load %arg24[%c0_70, %c0_71] : memref<2x1xf32, #tpu.memory_space<vmem>>, vector<2x1xf32>
    tpu.vector_store %arg24[%c0_70, %c0_71], %107 {strides = array<i32>} : memref<2x1xf32, #tpu.memory_space<vmem>>, vector<2x1xf32>,
    return
  }
}

</mosaic_0001>

<bundles_post_ra>
// kernel: _lambda_.1
= control target key start
LH: loop header
LB: loop body
LE: loop exit
PB: predicated region body
PF: predicated region fallthrough
CT: control target
= control target key end

     0   :  { %s7646_s0 = inlined_call_operand.vmem [shape: f32[2,3,196], index: 0, kind: input, shape index: {}]   ;;  %s7647_s1 = inlined_call_operand.vmem [shape: f32[2,640], index: 1, kind: input, shape index: {}]   ;;  %s7648_s2 = inlined_call_operand.vmem [shape: f32[64,3], index: 2, kind: input, shape index: {}]   ;;  %s7649_s3 = inlined_call_operand.vmem [shape: f32[64,1], index: 3, kind: input, shape index: {}]   ;;  %s7650_s4 = inlined_call_operand.hbm [shape: bf16[640,256], index: 4, kind: input, shape index: {}]   ;;  %s7651_s5 = inlined_call_operand.vmem [shape: f32[1,256], index: 5, kind: input, shape index: {}]   ;;  %s7652_s6 = inlined_call_operand.vmem [shape: f32[2,256], index: 6, kind: input, shape index: {}, may-alias: {6,7}]   ;;  %s7653_s7 = inlined_call_operand.vmem [shape: f32[2,256], index: 7, kind: input, shape index: {}, may-alias: {6,7}]   ;;  %s7654_s8 = inlined_call_operand.hbm [shape: bf16[256,1024], index: 8, kind: input, shape index: {}]   ;;  %s7655_s9 = inlined_call_operand.hbm [shape: bf16[256,1024], index: 9, kind: input, shape index: {}]   ;;  %s7656_s10 = inlined_call_operand.vmem [shape: f32[1,1024], index: 10, kind: input, shape index: {}]   ;;  %s7657_s11 = inlined_call_operand.vmem [shape: f32[2,32], index: 11, kind: input, shape index: {}]   ;;  %s7658_s12 = inlined_call_operand.vmem [shape: f32[2,256], index: 12, kind: input, shape index: {}]   ;;  %s7659_s13 = inlined_call_operand.vmem [shape: bf16[256,256], index: 13, kind: input, shape index: {}]   ;;  %s7660_s14 = inlined_call_operand.vmem [shape: bf16[32,256], index: 14, kind: input, shape index: {}]   ;;  %s7661_s15 = inlined_call_operand.vmem [shape: bf16[256,256], index: 15, kind: input, shape index: {}]   ;;  %s7662_s16 = inlined_call_operand.vmem [shape: f32[1,256], index: 16, kind: input, shape index: {}]   ;;  %s7663_s17 = inlined_call_operand.vmem [shape: bf16[256,7], index: 17, kind: input, shape index: {}]   ;;  %s7664_s18 = inlined_call_operand.vmem [shape: f32[1,7], index: 18, kind: input, shape index: {}]   ;;  %s7665_s19 = inlined_call_operand.vmem [shape: f32[2,64,196], index: 19, kind: output, shape index: {0}]   ;;  %s7666_s20 = inlined_call_operand.hbm [shape: f32[2,6], index: 20, kind: output, shape index: {1}]   ;;  %s7667_s21 = inlined_call_operand.hbm [shape: f32[2,256], index: 21, kind: output, shape index: {2}]   ;;  %s7668_s22 = inlined_call_operand.hbm [shape: f32[2,256], index: 22, kind: output, shape index: {3}]   ;;  %s7669_s23 = inlined_call_operand.hbm [shape: f32[2,256], index: 23, kind: output, shape index: {4}]   ;;  %s7670_s24 = inlined_call_operand.hbm [shape: f32[2,1], index: 24, kind: output, shape index: {5}]  }
   0x1   :  { %7675 = sst [smem:[#allocation20_spill]] %s7646_s0 }
   0x2   :  { %7676 = sst [smem:[#allocation21_spill]] %s7647_s1 }
   0x3   :  { %7677 = sst [smem:[#allocation22_spill]] %s7648_s2 }
   0x4   :  { %7678 = sst [smem:[#allocation23_spill]] %s7649_s3 }
   0x5   :  { %7679 = sst [smem:[#allocation24_spill]] %s7650_s4 }
   0x6   :  { %7680 = sst [smem:[#allocation25_spill]] %s7651_s5 }
   0x7   :  { %7681 = sst [smem:[#allocation26_spill]] %s7652_s6 }
   0x8   :  { %7682 = sst [smem:[#allocation27_spill]] %s7653_s7 }
   0x9   :  { %7683 = sst [smem:[#allocation28_spill]] %s7654_s8 }
   0xa   :  { %7684 = sst [smem:[#allocation29_spill]] %s7666_s20 }
   0xb   :  { %7685 = sst [smem:[#allocation30_spill]] %s7670_s24 }
   0xc   :  { %30 = vsyncpa [#allocation3], 0 }
   0xd   :  { %31 = vsyncpa [#allocation6], 0 }
   0xe   :  { %32 = vsyncpa [#allocation4], 0 }
   0xf   :  { %33 = vsyncpa [#allocation10], 0  ;;  %s7686_s27 = sld [smem:[#allocation28_spill]] }
  0x15   :  { %s66_s28 = sshll.u32 %s7686_s27, 4  ;;  %s67_s28 = int_to_ptr.hbm [resolvable:$true] %s66_s28 }
  0x16   :  { %34 = vsyncpa [#allocation13], 0  ;;  %s6452_s6 = smov [#allocation5]   ;;  %s7687_s7 = sld [smem:[#allocation24_spill]] }
  0x17   :  { %s68_s2 = sshll.u32 %s6452_s6, 4  ;;  %s6453_s3 = smov 512   ;;  %s69_s2 = int_to_ptr.vmem [resolvable:$true] %s68_s2 }
  0x18   :  { %s6454_s25 = smov 32   ;;  %s6455_s8 = smov [#allocation2]  }
  0x19   :  { %74 = dma.hbm_to_vmem [thread:$0]  %s67_s28, 16384, %s69_s2, [#allocation6], %s6453_s3, %s6453_s3, %s6454_s25  }
  0x1a   :  { %s49_s4 = sshll.u32 %s6455_s8, 4  ;;  %s6456_s1 = smov 128   ;;  %s50_s4 = int_to_ptr.vmem [resolvable:$true] %s49_s4 }
  0x1b   :  { %s6457_s20 = smov 8   ;;  %s79_s27 = sshll.u32 %s7655_s9, 4  ;;  %s80_s27 = int_to_ptr.hbm [resolvable:$true] %s79_s27 }
  0x1c   :  { %s47_s30 = sshll.u32 %s7687_s7, 4  ;;  %s6458_s6 = smov [#allocation7]   ;;  %s48_s30 = int_to_ptr.hbm [resolvable:$true] %s47_s30 }
  0x1d   :  { %55 = dma.hbm_to_vmem [thread:$0]  %s48_s30, 10240, %s50_s4, [#allocation3], %s6456_s1, %s6456_s1, %s6457_s20  }
  0x1e   :  { %s81_s24 = sshll.u32 %s6458_s6, 4  ;;  %s82_s24 = int_to_ptr.vmem [resolvable:$true] %s81_s24 }
  0x1f   :  { %87 = dma.hbm_to_vmem [thread:$0]  %s80_s27, 16384, %s82_s24, [#allocation6], %s6453_s3, %s6453_s3, %s6454_s25  }
  0x20   :  { %6442 = dma.done.wait [#allocation3], 10240  }
  0x21   :  { %6443 = vsyncadd [#allocation3], 4294957056 }
  0x22   :  { %6444 = dma.done.wait [#allocation6], 32768  }
  0x23   :  { %6445 = vsyncadd [#allocation6], 4294934528  ;;  %v6459_v0 = vmov 0   ;;  %s7688_s20 = sld [smem:[#allocation20_spill]]  ;;  %v4146_v2 = vld [vmem:[#allocation2 + $0x70] sm:$0xf] }
  0x24   :  { %6211 = vset.pattern.permute.xlu1 %v6459_v0  ;;  %6212 = vset.pattern.permute.xlu2 %v6459_v0  ;;  %v5791_v3 = vld [vmem:[#allocation2 + $0x74] sm:$0xf0]  ;;  %v4210_v4 = vld [vmem:[#allocation2 + $0xf0] sm:$0xf]  ;;  %vm205_vm0 = vcmask 1042432   ;;  %s7689_s7 = sld [smem:[#allocation22_spill]] }
  0x25   :  { %6210 = vset.pattern.permute.xlu0 %v6459_v0  ;;  %v5807_v5 = vld [vmem:[#allocation2 + $0xf4] sm:$0xf0]  ;;  %vm180_vm1 = vcmask 23552   ;;  %v4138_v8 = vld [vmem:[#allocation2 + $0x60] sm:$0xf]  ;;  %v4147_v9 = vor.u32 %v5791_v3, %v4146_v2  ;;  %s7690_s25 = sld [smem:[#allocation23_spill]] }
  0x26   :  { %v4211_v10 = vor.u32 %v5807_v5, %v4210_v4  ;;  %v5789_v11 = vld [vmem:[#allocation2 + $0x64] sm:$0xf0]  ;;  %v4202_v12 = vld [vmem:[#allocation2 + $0xe0] sm:$0xf]  ;;  %s7691_s1 = sld [smem:[#allocation21_spill]]  ;;  %vm293_vm2 = vcmask 556032  }
  0x27   :  { %v5805_v13 = vld [vmem:[#allocation2 + $0xe4] sm:$0xf0]  ;;  %v4139_v16 = vor.u32 %v5789_v11, %v4138_v8  ;;  %v4130_v20 = vld [vmem:[#allocation2 + $0x50] sm:$0xf]  ;;  %v5787_v21 = vld [vmem:[#allocation2 + $0x54] sm:$0xf0] }
  0x28   :  { %v4203_v17 = vor.u32 %v5805_v13, %v4202_v12  ;;  %v4194_v23 = vld [vmem:[#allocation2 + $0xd0] sm:$0xf]  ;;  %v5803_v24 = vld [vmem:[#allocation2 + $0xd4] sm:$0xf0]  ;;  %v4122_v29 = vld [vmem:[#allocation2 + $0x40] sm:$0xf]  ;;  %v4131_v34 = vor.u32 %v5787_v21, %v4130_v20 }
  0x29   :  { %v135_v1 = vld [vmem:[%s7688_s20] sm:$0x77]  ;;  %v4053_v6 = vld [vmem:[%s7688_s20 + $0x8] sm:$0x77]  ;;  %v4274_v25 = vld [vmem:[#allocation2 + $0x170] sm:$0xf]  ;;  %v4195_v35 = vor.u32 %v5803_v24, %v4194_v23 }
  0x2a   :  { %177 = vst [vmem:[#allocation1] ss:$2 sm:$0xff] %v135_v1  ;;  %v119_v7 = vld [vmem:[%s7689_s7] sm:$0xff]  ;;  %v6622_v22 = vld [vmem:[%s7689_s7 + $0x8] sm:$0xff]  ;;  %v4338_v27 = vld [vmem:[#allocation2 + $0x1f0] sm:$0xf] }
  0x2b   :  { %v128_v18 = vld [vmem:[%s7690_s25 + $0x8] sm:$0xff]  ;;  %v5823_v26 = vld [vmem:[#allocation2 + $0x174] sm:$0xf0]  ;;  %v5785_v30 = vld [vmem:[#allocation2 + $0x44] sm:$0xf0]  ;;  %s7692_s2 = sld [smem:[#allocation26_spill]] }
  0x2c   :  { %v418_v19 = vld [vmem:[%s7691_s1] sm:$0xff]  ;;  %143 = vperm.xlu1 %6211, %v128_v18   ;;  %v4186_v31 = vld [vmem:[#allocation2 + $0xc0] sm:$0xf]  ;;  %v4275_v36 = vor.u32 %v5823_v26, %v4274_v25  ;;  %v5801_v38 = vld [vmem:[#allocation2 + $0xc4] sm:$0xf0]  ;;  %v4123_v43 = vor.u32 %v5785_v30, %v4122_v29  ;;  %s7694_s26 = sld [smem:[#allocation27_spill]] }
  0x2d   :  { %v5839_v28 = vld [vmem:[#allocation2 + $0x1f4] sm:$0xf0]  ;;  %v4266_v39 = vld [vmem:[#allocation2 + $0x160] sm:$0xf]  ;;  %v5821_v40 = vld [vmem:[#allocation2 + $0x164] sm:$0xf0]  ;;  %v4187_v44 = vor.u32 %v5801_v38, %v4186_v31 }
  0x2e   :  { %v4339_v37 = vor.u32 %v5839_v28, %v4338_v27  ;;  %v4330_v41 = vld [vmem:[#allocation2 + $0x1e0] sm:$0xf]  ;;  %v5837_v42 = vld [vmem:[#allocation2 + $0x1e4] sm:$0xf0]  ;;  %v4114_v45 = vld [vmem:[#allocation2 + $0x30] sm:$0xf]  ;;  %v4267_v47 = vor.u32 %v5821_v40, %v4266_v39 }
  0x2f   :  { %v5783_v46 = vld [vmem:[#allocation2 + $0x34] sm:$0xf0]  ;;  %v4331_v48 = vor.u32 %v5837_v42, %v4330_v41  ;;  %v4178_v49 = vld [vmem:[#allocation2 + $0xb0] sm:$0xf]  ;;  %v121_v55 = vld [vmem:[%s7689_s7 + $0x10] sm:$0xff]  ;;  %vm3253_vm14 = vcmask 261120  }
  0x30   :  { %v5799_v50 = vld [vmem:[#allocation2 + $0xb4] sm:$0xf0]  ;;  %v4258_v51 = vld [vmem:[#allocation2 + $0x150] sm:$0xf]  ;;  %v4115_v56 = vor.u32 %v5783_v46, %v4114_v45  ;;  %v4106_v58 = vld [vmem:[#allocation2 + $0x20] sm:$0xf] }
  0x31   :  { %v178_v14 = vld.sshfl [vmem:[#allocation1] sm:$0xff pattern:$0x75316420]  ;;  %v179_v15 = vld.sshfl [vmem:[#allocation1 + $0x8] sm:$0xff pattern:$0x75316420]  ;;  %v4179_v57 = vor.u32 %v5799_v50, %v4178_v49 }
  0x32   :  { %4035 = vmatpush.msk.msra.mxu0 %vm205_vm0, %v178_v14  ;;  %4044 = vmatpush.msk.msra.mxu1 %vm205_vm0, %v179_v15  ;;  %312 = vst [vmem:[#allocation1] ss:$2 sm:$0xff] %v4053_v6  ;;  %v5819_v52 = vld [vmem:[#allocation2 + $0x154] sm:$0xf0]  ;;  %v4322_v53 = vld [vmem:[#allocation2 + $0x1d0] sm:$0xf] }
  0x33   :  { %4036 = vmatmul.msk.f32.vlgmr.msra.gmra.mxu0 %vm180_vm1, %v119_v7  ;;  %4045 = vmatmul.msk.f32.vlgmr.msra.gmra.mxu1 %vm180_vm1, %v119_v7  ;;  %v5835_v54 = vld [vmem:[#allocation2 + $0x1d4] sm:$0xf0]  ;;  %v5781_v59 = vld [vmem:[#allocation2 + $0x24] sm:$0xf0]  ;;  %v4259_v60 = vor.u32 %v5819_v52, %v4258_v51  ;;  %v4170_v62 = vld [vmem:[#allocation2 + $0xa0] sm:$0xf] }
  0x34   :  { %926 = vmatpush.bf16.msrb.mxu0 %v4147_v9  ;;  %939 = vmatpush.bf16.msrb.mxu1 %v4211_v10  ;;  %v4323_v61 = vor.u32 %v5835_v54, %v4322_v53  ;;  %v5797_v63 = vld [vmem:[#allocation2 + $0xa4] sm:$0xf0]  ;;  %v4250_v0 = vld [vmem:[#allocation2 + $0x140] sm:$0xf]  ;;  %v4107_v4 = vor.u32 %v5781_v59, %v4106_v58  ;;  %v4098_v6 = vld [vmem:[#allocation2 + $0x10] sm:$0xf] }
  0x35   :  { %v5817_v1 = vld [vmem:[#allocation2 + $0x144] sm:$0xf0]  ;;  %v4314_v2 = vld [vmem:[#allocation2 + $0x1c0] sm:$0xf]  ;;  %v4171_v5 = vor.u32 %v5797_v63, %v4170_v62  ;;  %v4162_v10 = vld [vmem:[#allocation2 + $0x90] sm:$0xf] }
  0x36   :  { %v5833_v3 = vld [vmem:[#allocation2 + $0x1c4] sm:$0xf0]  ;;  %v4251_v8 = vor.u32 %v5817_v1, %v4250_v0  ;;  %v5795_v11 = vld [vmem:[#allocation2 + $0x94] sm:$0xf0]  ;;  %v4242_v12 = vld [vmem:[#allocation2 + $0x130] sm:$0xf] }
  0x37   :  { %v4315_v9 = vor.u32 %v5833_v3, %v4314_v2  ;;  %v5815_v13 = vld [vmem:[#allocation2 + $0x134] sm:$0xf0]  ;;  %v4306_v14 = vld [vmem:[#allocation2 + $0x1b0] sm:$0xf]  ;;  %v4163_v18 = vor.u32 %v5795_v11, %v4162_v10  ;;  %v5777_v20 = vld [vmem:[#allocation2 + $0x4] sm:$0xf0] }
  0x38   :  { %927 = vmatpush.bf16.msrb.mxu0 %v4139_v16  ;;  %940 = vmatpush.bf16.msrb.mxu1 %v4203_v17  ;;  %v5831_v15 = vld [vmem:[#allocation2 + $0x1b4] sm:$0xf0]  ;;  %v122_v16 = vld [vmem:[%s7689_s7 + $0x18] sm:$0xff]  ;;  %v4243_v21 = vor.u32 %v5815_v13, %v4242_v12  ;;  %v4154_v23 = vld [vmem:[#allocation2 + $0x80] sm:$0xf]  ;;  %s6460_s6 = smov 122  }
  0x39   :  { %v313_v32 = vld.sshfl [vmem:[#allocation1] sm:$0xff pattern:$0x75316420]  ;;  %v314_v33 = vld.sshfl [vmem:[#allocation1 + $0x8] sm:$0xff pattern:$0x75316420] }
  0x3a   :  { %4054 = vmatpush.msk.msra.mxu2 %vm205_vm0, %v313_v32  ;;  %4063 = vmatpush.msk.msra.mxu3 %vm205_vm0, %v314_v33  ;;  %422 = vst [vmem:[#allocation1] ss:$4 sm:$0xff] %v418_v19  ;;  %v4090_v19 = vld [vmem:[#allocation2] sm:$0xf]  ;;  %v5793_v24 = vld [vmem:[#allocation2 + $0x84] sm:$0xf0] }
  0x3b   :  { %4037 = vmatmul.msk.f32.gmra.mxu0 %vm180_vm1, %v6622_v22  ;;  %4046 = vmatmul.msk.f32.gmra.mxu1 %vm180_vm1, %v6622_v22  ;;  %v4234_v25 = vld [vmem:[#allocation2 + $0x120] sm:$0xf]  ;;  %v5813_v26 = vld [vmem:[#allocation2 + $0x124] sm:$0xf0]  ;;  %v4091_v29 = vor.u32 %v5777_v20, %v4090_v19  ;;  %v4155_v30 = vor.u32 %v5793_v24, %v4154_v23  ;;  %v4402_v31 = vld [vmem:[#allocation2 + $0x270] sm:$0xf] }
  0x3c   :  { %4055 = vmatmul.msk.f32.vlgmr.msra.gmra.mxu2 %vm180_vm1, %v119_v7  ;;  %4064 = vmatmul.msk.f32.vlgmr.msra.gmra.mxu3 %vm180_vm1, %v119_v7  ;;  %v5779_v7 = vld [vmem:[#allocation2 + $0x14] sm:$0xf0]  ;;  %v4298_v27 = vld [vmem:[#allocation2 + $0x1a0] sm:$0xf]  ;;  %v5829_v28 = vld [vmem:[#allocation2 + $0x1a4] sm:$0xf0] }
  0x3d   :  { %928 = vmatpush.bf16.msrb.mxu0 %v4131_v34  ;;  %941 = vmatpush.bf16.msrb.mxu1 %v4195_v35  ;;  %v4099_v17 = vor.u32 %v5779_v7, %v4098_v6  ;;  %v5855_v32 = vld [vmem:[#allocation2 + $0x274] sm:$0xf0]  ;;  %v129_v33 = vld [vmem:[%s7690_s25 + $0x10] sm:$0xff]  ;;  %v4235_v34 = vor.u32 %v5813_v26, %v4234_v25  ;;  %v4299_v35 = vor.u32 %v5829_v28, %v4298_v27  ;;  %v4226_v38 = vld [vmem:[#allocation2 + $0x110] sm:$0xf]  ;;  %s3971_s3 = sshll.u32 %s7667_s21, 4  ;;  %s3972_s3 = int_to_ptr.hbm [resolvable:$true] %s3971_s3 }
  0x3e   :  { %952 = vmatpush.bf16.msrb.mxu2 %v4275_v36  ;;  %965 = vmatpush.bf16.msrb.mxu3 %v4339_v37  ;;  %v5790_v36 = vld [vmem:[#allocation2 + $0x74] sm:$0xf]  ;;  %v4148_v37 = vld [vmem:[#allocation2 + $0x78] sm:$0xf0]  ;;  %v5811_v39 = vld [vmem:[#allocation2 + $0x114] sm:$0xf0] }
  0x3f   :  { %v4290_v40 = vld [vmem:[#allocation2 + $0x190] sm:$0xf]  ;;  %v5827_v41 = vld [vmem:[#allocation2 + $0x194] sm:$0xf0]  ;;  %148 = vperm.xlu2 %6212, %v129_v33   ;;  %v4394_v45 = vld [vmem:[#allocation2 + $0x260] sm:$0xf] }
  0x40   :  { %v123_v42 = vld [vmem:[%s7689_s7 + $0x20] sm:$0xff]  ;;  %v5853_v46 = vld [vmem:[#allocation2 + $0x264] sm:$0xf0]  ;;  %v5788_v49 = vld [vmem:[#allocation2 + $0x64] sm:$0xf]  ;;  %s6463_s27 = smov [#allocation11]  }
  0x41   :  { %929 = vmatpush.bf16.msrb.mxu0 %v4123_v43  ;;  %942 = vmatpush.bf16.msrb.mxu1 %v4187_v44  ;;  %v4403_v43 = vor.u32 %v5855_v32, %v4402_v31  ;;  %v4151_v44 = vor.u32 %v5790_v36, %v4148_v37  ;;  %v4140_v50 = vld [vmem:[#allocation2 + $0x68] sm:$0xf0]  ;;  %v4218_v51 = vld [vmem:[#allocation2 + $0x100] sm:$0xf]  ;;  %v5809_v52 = vld [vmem:[#allocation2 + $0x104] sm:$0xf0] }
  0x42   :  { %953 = vmatpush.bf16.msrb.mxu2 %v4267_v47  ;;  %966 = vmatpush.bf16.msrb.mxu3 %v4331_v48  ;;  %v4227_v47 = vor.u32 %v5811_v39, %v4226_v38  ;;  %v4291_v48 = vor.u32 %v5827_v41, %v4290_v40  ;;  %v4282_v53 = vld [vmem:[#allocation2 + $0x180] sm:$0xf]  ;;  %v5825_v54 = vld [vmem:[#allocation2 + $0x184] sm:$0xf0]  ;;  %v4386_v58 = vld [vmem:[#allocation2 + $0x250] sm:$0xf] }
  0x43   :  { %4038 = vmatmul.msk.f32.gmra.mxu0 %vm180_vm1, %v121_v55  ;;  %4047 = vmatmul.msk.f32.gmra.mxu1 %vm180_vm1, %v121_v55  ;;  %v5851_v59 = vld [vmem:[#allocation2 + $0x254] sm:$0xf0]  ;;  %v5786_v62 = vld [vmem:[#allocation2 + $0x54] sm:$0xf]  ;;  %v4132_v63 = vld [vmem:[#allocation2 + $0x58] sm:$0xf0] }
  0x44   :  { %4056 = vmatmul.msk.f32.gmra.mxu2 %vm180_vm1, %v6622_v22  ;;  %4065 = vmatmul.msk.f32.gmra.mxu3 %vm180_vm1, %v6622_v22  ;;  %v4307_v22 = vor.u32 %v5831_v15, %v4306_v14  ;;  %v5806_v0 = vld [vmem:[#allocation2 + $0xf4] sm:$0xf]  ;;  %v4212_v1 = vld [vmem:[#allocation2 + $0xf8] sm:$0xf0]  ;;  %v4135_v6 = vor.u32 %v5786_v62, %v4132_v63  ;;  %v4378_v7 = vld [vmem:[#allocation2 + $0x240] sm:$0xf] }
  0x45   :  { %930 = vmatpush.bf16.msrb.mxu0 %v4115_v56  ;;  %943 = vmatpush.bf16.msrb.mxu1 %v4179_v57  ;;  %v4395_v56 = vor.u32 %v5853_v46, %v4394_v45  ;;  %v4143_v57 = vor.u32 %v5788_v49, %v4140_v50  ;;  %v5822_v2 = vld [vmem:[#allocation2 + $0x174] sm:$0xf]  ;;  %v4276_v3 = vld [vmem:[#allocation2 + $0x178] sm:$0xf0]  ;;  %v5784_v11 = vld [vmem:[#allocation2 + $0x44] sm:$0xf] }
  0x46   :  { %954 = vmatpush.bf16.msrb.mxu2 %v4259_v60  ;;  %967 = vmatpush.bf16.msrb.mxu3 %v4323_v61  ;;  %v4219_v60 = vor.u32 %v5809_v52, %v4218_v51  ;;  %v4283_v61 = vor.u32 %v5825_v54, %v4282_v53  ;;  %v4279_v10 = vor.u32 %v5822_v2, %v4276_v3  ;;  %v4124_v12 = vld [vmem:[#allocation2 + $0x48] sm:$0xf0]  ;;  %v5804_v13 = vld [vmem:[#allocation2 + $0xe4] sm:$0xf]  ;;  %v5782_v19 = vld [vmem:[#allocation2 + $0x34] sm:$0xf] }
  0x47   :  { %v4204_v14 = vld [vmem:[#allocation2 + $0xe8] sm:$0xf0]  ;;  %v5820_v15 = vld [vmem:[#allocation2 + $0x164] sm:$0xf]  ;;  %v4116_v20 = vld [vmem:[#allocation2 + $0x38] sm:$0xf0]  ;;  %v4127_v23 = vor.u32 %v5784_v11, %v4124_v12 }
  0x48   :  { %v5802_v24 = vld [vmem:[#allocation2 + $0xd4] sm:$0xf]  ;;  %v4196_v25 = vld [vmem:[#allocation2 + $0xd8] sm:$0xf0]  ;;  %v4207_v27 = vor.u32 %v5804_v13, %v4204_v14  ;;  %v6684_v33 = vld [vmem:[%s7689_s7 + $0x30] sm:$0xff]  ;;  %v4119_v37 = vor.u32 %v5782_v19, %v4116_v20  ;;  %s6464_s20 = smov [#allocation14]  }
  0x49   :  { %931 = vmatpush.bf16.msrb.mxu0 %v4107_v4  ;;  %944 = vmatpush.bf16.msrb.mxu1 %v4171_v5  ;;  %v6664_v4 = vld [vmem:[%s7689_s7 + $0x28] sm:$0xff]  ;;  %v4387_v5 = vor.u32 %v5851_v59, %v4386_v58  ;;  %v5818_v26 = vld [vmem:[#allocation2 + $0x154] sm:$0xf]  ;;  %v6679_v32 = vld.sshfl [vmem:[#allocation1 + $0x10] sm:$0xff pattern:$0x73625140]  ;;  %v4199_v40 = vor.u32 %v5802_v24, %v4196_v25 }
  0x4a   :  { %955 = vmatpush.bf16.msrb.mxu2 %v4251_v8  ;;  %968 = vmatpush.bf16.msrb.mxu3 %v4315_v9  ;;  %v5849_v8 = vld [vmem:[#allocation2 + $0x244] sm:$0xf0]  ;;  %v4215_v9 = vor.u32 %v5806_v0, %v4212_v1  ;;  %v6677_v31 = vld.sshfl [vmem:[#allocation1 + $0x8] sm:$0xff pattern:$0x73625140]  ;;  %s7710_s29 = sld [smem:[#allocation29_spill]] }
  0x4b   :  { %4039 = vmatmul.msk.f32.gmra.mxu0 %vm180_vm1, %v122_v16  ;;  %4048 = vmatmul.msk.f32.gmra.mxu1 %vm180_vm1, %v122_v16  ;;  %v4362_v38 = vld [vmem:[#allocation2 + $0x220] sm:$0xf]  ;;  %v5845_v39 = vld [vmem:[#allocation2 + $0x224] sm:$0xf0]  ;;  %v4188_v45 = vld [vmem:[#allocation2 + $0xc8] sm:$0xf0] }
  0x4c   :  { %4057 = vmatmul.msk.f32.gmra.mxu2 %vm180_vm1, %v121_v55  ;;  %4066 = vmatmul.msk.f32.gmra.mxu3 %vm180_vm1, %v121_v55  ;;  %v130_v55 = vld [vmem:[%s7690_s25 + $0x18] sm:$0xff]  ;;  %v5816_v46 = vld [vmem:[#allocation2 + $0x144] sm:$0xf]  ;;  %v4363_v49 = vor.u32 %v5845_v39, %v4362_v38  ;;  %v5843_v52 = vld [vmem:[#allocation2 + $0x214] sm:$0xf0] }
  0x4d   :  { %932 = vmatpush.bf16.msrb.mxu0 %v4099_v17  ;;  %945 = vmatpush.bf16.msrb.mxu1 %v4163_v18  ;;  %v4370_v17 = vld [vmem:[#allocation2 + $0x230] sm:$0xf]  ;;  %v5847_v18 = vld [vmem:[#allocation2 + $0x234] sm:$0xf0]  ;;  %v4180_v58 = vld [vmem:[#allocation2 + $0xb8] sm:$0xf0] }
  0x4e   :  { %956 = vmatpush.bf16.msrb.mxu2 %v4243_v21  ;;  %969 = vmatpush.bf16.msrb.mxu3 %v4307_v22  ;;  %v131_v21 = vld [vmem:[%s7690_s25 + $0x20] sm:$0xff]  ;;  %v4379_v22 = vor.u32 %v5849_v8, %v4378_v7  ;;  %v4371_v36 = vor.u32 %v5847_v18, %v4370_v17  ;;  %v4354_v51 = vld [vmem:[#allocation2 + $0x210] sm:$0xf]  ;;  %v5814_v59 = vld [vmem:[#allocation2 + $0x134] sm:$0xf] }
  0x4f   :  { %153 = vperm.xlu2 %6212, %v130_v55   ;;  %v5778_v55 = vld [vmem:[#allocation2 + $0x14] sm:$0xf]  ;;  %v4346_v62 = vld [vmem:[#allocation2 + $0x200] sm:$0xf]  ;;  %v4355_v63 = vor.u32 %v5843_v52, %v4354_v51  ;;  %v5841_v1 = vld [vmem:[#allocation2 + $0x204] sm:$0xf0]  ;;  %v6731_v52 = vpack.c.bf16 %v6679_v32, %v6679_v32 }
  0x50   :  { %v5776_v2 = vld [vmem:[#allocation2 + $0x4] sm:$0xf]  ;;  %v419_v3 = vld [vmem:[%s7691_s1 + $0x8] sm:$0x3]  ;;  %v4172_v8 = vld [vmem:[#allocation2 + $0xa8] sm:$0xf0]  ;;  %v4347_v12 = vor.u32 %v5841_v1, %v4346_v62 }
  0x51   :  { %933 = vmatpush.bf16.msrb.mxu0 %v4091_v29  ;;  %946 = vmatpush.bf16.msrb.mxu1 %v4155_v30  ;;  %v4260_v29 = vld [vmem:[#allocation2 + $0x158] sm:$0xf0]  ;;  %v5796_v7 = vld [vmem:[#allocation2 + $0xa4] sm:$0xf]  ;;  %424 = vst [vmem:[#allocation1 + $0x20] ss:$4 sm:$0xff] %v419_v3 }
  0x52   :  { %957 = vmatpush.bf16.msrb.mxu2 %v4235_v34  ;;  %970 = vmatpush.bf16.msrb.mxu3 %v4299_v35  ;;  %v6675_v30 = vld.sshfl [vmem:[#allocation1] sm:$0xff pattern:$0x73625140]  ;;  %v6686_v34 = vld.sshfl [vmem:[#allocation1 + $0x18] sm:$0xff pattern:$0x73625140]  ;;  %v4263_v41 = vor.u32 %v5818_v26, %v4260_v29 }
  0x53   :  { %4040 = vmatmul.msk.f32.gmra.mxu0 %vm180_vm1, %v123_v42  ;;  %4049 = vmatmul.msk.f32.gmra.mxu1 %vm180_vm1, %v123_v42  ;;  %v1188_v35 = vld [vmem:[%s7692_s2] sm:$0xf]  ;;  %v133_v11 = vld [vmem:[%s7690_s25 + $0x30] sm:$0xff]  ;;  %v5838_v14 = vld [vmem:[#allocation2 + $0x1f4] sm:$0xf]  ;;  %s7693_s1 = sld [smem:[#allocation25_spill]] }
  0x54   :  { %4058 = vmatmul.msk.f32.gmra.mxu2 %vm180_vm1, %v122_v16  ;;  %4067 = vmatmul.msk.f32.gmra.mxu3 %vm180_vm1, %v122_v16  ;;  %v4268_v16 = vld [vmem:[#allocation2 + $0x168] sm:$0xf0]  ;;  %1190 = vst [vmem:[#allocation1] ss:$4 sm:$0xff] %v1188_v35  ;;  %v5854_v18 = vld [vmem:[#allocation2 + $0x274] sm:$0xf] }
  0x55   :  { %978 = vmatpush.bf16.msra.mxu0 %v4403_v43  ;;  %991 = vmatpush.bf16.msra.mxu1 %v4151_v44  ;;  %v4271_v28 = vor.u32 %v5820_v15, %v4268_v16  ;;  %v4108_v43 = vld [vmem:[#allocation2 + $0x28] sm:$0xf0]  ;;  %v5800_v44 = vld [vmem:[#allocation2 + $0xc4] sm:$0xf]  ;;  %v4340_v15 = vld [vmem:[#allocation2 + $0x1f8] sm:$0xf0]  ;;  %v4175_v16 = vor.u32 %v5796_v7, %v4172_v8 }
  0x56   :  { %958 = vmatpush.bf16.msrb.mxu2 %v4227_v47  ;;  %971 = vmatpush.bf16.msrb.mxu3 %v4291_v48  ;;  %v4252_v47 = vld [vmem:[#allocation2 + $0x148] sm:$0xf0]  ;;  %v132_v48 = vld [vmem:[%s7690_s25 + $0x28] sm:$0xff]  ;;  %v4191_v53 = vor.u32 %v5800_v44, %v4188_v45  ;;  %v4404_v19 = vld [vmem:[#allocation2 + $0x278] sm:$0xf0]  ;;  %v4343_v26 = vor.u32 %v5838_v14, %v4340_v15  ;;  %s3960_s0 = sshll.u32 %s7710_s29, 4  ;;  %s3961_s0 = int_to_ptr.hbm [resolvable:$true] %s3960_s0 }
  0x57   :  { %158 = vperm.xlu2 %6212, %v131_v21   ;;  %v4255_v54 = vor.u32 %v5816_v46, %v4252_v47  ;;  %v5794_v20 = vld [vmem:[#allocation2 + $0x94] sm:$0xf]  ;;  %v6719_v21 = vpack.c.bf16 %v6675_v30, %v6675_v30  ;;  %v4228_v25 = vld [vmem:[#allocation2 + $0x118] sm:$0xf0]  ;;  %v4332_v29 = vld [vmem:[#allocation2 + $0x1e8] sm:$0xf0] }
  0x58   :  { %v5810_v24 = vld [vmem:[#allocation2 + $0x114] sm:$0xf]  ;;  %v5852_v30 = vld [vmem:[#allocation2 + $0x264] sm:$0xf]  ;;  %v4220_v39 = vld [vmem:[#allocation2 + $0x108] sm:$0xf0] }
  0x59   :  { %979 = vmatpush.bf16.msra.mxu0 %v4395_v56  ;;  %992 = vmatpush.bf16.msra.mxu1 %v4143_v57  ;;  %v4100_v56 = vld [vmem:[#allocation2 + $0x18] sm:$0xf0]  ;;  %v5798_v57 = vld [vmem:[#allocation2 + $0xb4] sm:$0xf]  ;;  %v4231_v35 = vor.u32 %v5810_v24, %v4228_v25  ;;  %v5808_v38 = vld [vmem:[#allocation2 + $0x104] sm:$0xf] }
  0x5a   :  { %959 = vmatpush.bf16.msrb.mxu2 %v4219_v60  ;;  %972 = vmatpush.bf16.msrb.mxu3 %v4283_v61  ;;  %v4244_v60 = vld [vmem:[#allocation2 + $0x138] sm:$0xf0]  ;;  %v126_v61 = vld [vmem:[%s7689_s7 + $0x38] sm:$0xff]  ;;  %v4103_v0 = vor.u32 %v5778_v55, %v4100_v56  ;;  %v4223_v45 = vor.u32 %v5808_v38, %v4220_v39  ;;  %v6108_v51 = vld [vmem:[#allocation7 + $0x3dc] sm:$0xf0]  ;;  %s6461_s7 = smov [#allocation9]  }
  0x5b   :  { %4041 = vmatmul.msk.f32.gmra.mxu0 %vm180_vm1, %v6664_v4  ;;  %4050 = vmatmul.msk.f32.gmra.mxu1 %vm180_vm1, %v6664_v4  ;;  %v5850_v46 = vld [vmem:[#allocation2 + $0x254] sm:$0xf]  ;;  %v4388_v47 = vld [vmem:[#allocation2 + $0x258] sm:$0xf0]  ;;  %v5832_v56 = vld [vmem:[#allocation2 + $0x1c4] sm:$0xf] }
  0x5c   :  { %4059 = vmatmul.msk.f32.gmra.mxu2 %vm180_vm1, %v123_v42  ;;  %4068 = vmatmul.msk.f32.gmra.mxu3 %vm180_vm1, %v123_v42  ;;  %v5780_v42 = vld [vmem:[#allocation2 + $0x24] sm:$0xf]  ;;  %v4391_v55 = vor.u32 %v5850_v46, %v4388_v47  ;;  %v4602_v62 = vld [vmem:[#allocation7 + $0x180] sm:$0xf]  ;;  %v5830_v3 = vld [vmem:[#allocation2 + $0x1b4] sm:$0xf] }
  0x5d   :  { %980 = vmatpush.bf16.msra.mxu0 %v4387_v5  ;;  %993 = vmatpush.bf16.msra.mxu1 %v4135_v6  ;;  %v4111_v50 = vor.u32 %v5780_v42, %v4108_v43  ;;  %v4247_v5 = vor.u32 %v5814_v59, %v4244_v60  ;;  %v4092_v6 = vld [vmem:[#allocation2 + $0x8] sm:$0xf0]  ;;  %v5834_v42 = vld [vmem:[#allocation2 + $0x1d4] sm:$0xf]  ;;  %v4324_v43 = vld [vmem:[#allocation2 + $0x1d8] sm:$0xf0] }
  0x5e   :  { %1004 = vmatpush.bf16.msra.mxu2 %v4215_v9  ;;  %1017 = vmatpush.bf16.msra.mxu3 %v4279_v10  ;;  %v5812_v9 = vld [vmem:[#allocation2 + $0x124] sm:$0xf]  ;;  %v4236_v10 = vld [vmem:[#allocation2 + $0x128] sm:$0xf0]  ;;  %v4095_v13 = vor.u32 %v5776_v2, %v4092_v6  ;;  %v4858_v32 = vld [vmem:[#allocation7 + $0x380] sm:$0xf] }
  0x5f   :  { %163 = vperm.xlu2 %6212, %v132_v48   ;;  %v4239_v17 = vor.u32 %v5812_v9, %v4236_v10  ;;  %v4634_v48 = vld [vmem:[#allocation7 + $0x1c0] sm:$0xf]  ;;  %v5846_v7 = vld [vmem:[#allocation2 + $0x234] sm:$0xf]  ;;  %v4372_v8 = vld [vmem:[#allocation2 + $0x238] sm:$0xf0] }
  0x60   :  { %v4570_v9 = vld [vmem:[#allocation7 + $0x140] sm:$0xf]  ;;  %v4375_v15 = vor.u32 %v5846_v7, %v4372_v8 }
  0x61   :  { %981 = vmatpush.bf16.msra.mxu0 %v4379_v22  ;;  %994 = vmatpush.bf16.msra.mxu1 %v4127_v23  ;;  %v6723_v22 = vpack.c.bf16 %v6677_v31, %v6677_v31  ;;  %v4164_v23 = vld [vmem:[#allocation2 + $0x98] sm:$0xf0]  ;;  %v4156_v31 = vld [vmem:[#allocation2 + $0x88] sm:$0xf0]  ;;  %v6028_v10 = vld [vmem:[#allocation7 + $0x15c] sm:$0xf0] }
  0x62   :  { %1005 = vmatpush.bf16.msra.mxu2 %v4207_v27  ;;  %1018 = vmatpush.bf16.msra.mxu3 %v4271_v28  ;;  %v4407_v27 = vor.u32 %v5854_v18, %v4404_v19  ;;  %v5836_v28 = vld [vmem:[#allocation2 + $0x1e4] sm:$0xf]  ;;  %v4571_v18 = vor.u32 %v6028_v10, %v4570_v9  ;;  %v4538_v24 = vld [vmem:[#allocation7 + $0x100] sm:$0xf] }
  0x63   :  { %4042 = vmatmul.msk.f32.gmra.mxu0 %vm180_vm1, %v6684_v33  ;;  %4051 = vmatmul.msk.f32.gmra.mxu1 %vm180_vm1, %v6684_v33  ;;  %v6020_v25 = vld [vmem:[#allocation7 + $0x11c] sm:$0xf0] }
  0x64   :  { %4060 = vmatmul.msk.f32.gmra.mxu2 %vm180_vm1, %v6664_v4  ;;  %4069 = vmatmul.msk.f32.gmra.mxu3 %vm180_vm1, %v6664_v4  ;;  %v4183_v4 = vor.u32 %v5798_v57, %v4180_v58  ;;  %v4316_v57 = vld [vmem:[#allocation2 + $0x1c8] sm:$0xf0]  ;;  %v5848_v58 = vld [vmem:[#allocation2 + $0x244] sm:$0xf]  ;;  %v4506_v38 = vld [vmem:[#allocation7 + $0xc0] sm:$0xf] }
  0x65   :  { %982 = vmatpush.bf16.msra.mxu0 %v4371_v36  ;;  %995 = vmatpush.bf16.msra.mxu1 %v4119_v37  ;;  %v4396_v36 = vld [vmem:[#allocation2 + $0x268] sm:$0xf0]  ;;  %v5792_v37 = vld [vmem:[#allocation2 + $0x84] sm:$0xf]  ;;  %v4319_v1 = vor.u32 %v5832_v56, %v4316_v57  ;;  %v6012_v39 = vld [vmem:[#allocation7 + $0xdc] sm:$0xf0] }
  0x66   :  { %1006 = vmatpush.bf16.msra.mxu2 %v4199_v40  ;;  %1019 = vmatpush.bf16.msra.mxu3 %v4263_v41  ;;  %v4335_v40 = vor.u32 %v5836_v28, %v4332_v29  ;;  %v4399_v41 = vor.u32 %v5852_v30, %v4396_v36  ;;  %v4159_v44 = vor.u32 %v5792_v37, %v4156_v31  ;;  %v5842_v37 = vld [vmem:[#allocation2 + $0x214] sm:$0xf]  ;;  %v4356_v31 = vld [vmem:[#allocation2 + $0x218] sm:$0xf0]  ;;  %v4636_v56 = vld [vmem:[#allocation7 + $0x1e0] sm:$0xf0] }
  0x67   :  { %168 = vperm.xlu2 %6212, %v133_v11   ;;  %v4826_v11 = vld [vmem:[#allocation7 + $0x340] sm:$0xf]  ;;  %v4539_v30 = vor.u32 %v6020_v25, %v4538_v24  ;;  %v4507_v46 = vor.u32 %v6012_v39, %v4506_v38  ;;  %v6104_v57 = vld [vmem:[#allocation7 + $0x3c4] sm:$0xf]  ;;  %v4866_v38 = vld [vmem:[#allocation7 + $0x388] sm:$0xf] }
  0x68   :  { %v4410_v7 = vld [vmem:[#allocation7] sm:$0xf]  ;;  %v6101_v39 = vld [vmem:[#allocation7 + $0x3a4] sm:$0xf0] }
  0x69   :  { %983 = vmatpush.bf16.msra.mxu0 %v4363_v49  ;;  %996 = vmatpush.bf16.msra.mxu1 %v4111_v50  ;;  %v6044_v49 = vld [vmem:[#allocation7 + $0x1dc] sm:$0xf0] }
  0x6a   :  { %1007 = vmatpush.bf16.msra.mxu2 %v4191_v53  ;;  %1020 = vmatpush.bf16.msra.mxu3 %v4255_v54  ;;  %v4890_v50 = vld [vmem:[#allocation7 + $0x3c0] sm:$0xf]  ;;  %v6735_v53 = vpack.c.bf16 %v6686_v34, %v6686_v34  ;;  %v4327_v54 = vor.u32 %v5834_v42, %v4324_v43  ;;  %v4635_v59 = vor.u32 %v6044_v49, %v4634_v48  ;;  %v429_v34 = vld.sshfl [vmem:[#allocation1 + $0x20] sm:$0xff pattern:$0x73625140] }
  0x6b   :  { %4043 = vmatmul.msk.f32.gmra.mxu0 %vm180_vm1, %v126_v61  ;;  %4052 = vmatmul.msk.f32.gmra.mxu1 %vm180_vm1, %v126_v61  ;;  %v4891_v60 = vor.u32 %v6108_v51, %v4890_v50  ;;  %v4359_v42 = vor.u32 %v5842_v37, %v4356_v31  ;;  %v5824_v43 = vld [vmem:[#allocation2 + $0x184] sm:$0xf]  ;;  %v4348_v48 = vld [vmem:[#allocation2 + $0x208] sm:$0xf0]  ;;  %v4474_v49 = vld [vmem:[#allocation7 + $0x80] sm:$0xf] }
  0x6c   :  { %4061 = vmatmul.msk.f32.gmra.mxu2 %vm180_vm1, %v6684_v33  ;;  %4070 = vmatmul.msk.f32.gmra.mxu3 %vm180_vm1, %v6684_v33  ;;  %v4167_v33 = vor.u32 %v5794_v20, %v4164_v23  ;;  %v5844_v20 = vld [vmem:[#allocation2 + $0x224] sm:$0xf]  ;;  %v4364_v23 = vld [vmem:[#allocation2 + $0x228] sm:$0xf0]  ;;  %v6004_v50 = vld [vmem:[#allocation7 + $0x9c] sm:$0xf0] }
  0x6d   :  { %984 = vmatpush.bf16.msra.mxu0 %v4355_v63  ;;  %997 = vmatpush.bf16.msra.mxu1 %v4103_v0  ;;  %v6036_v63 = vld [vmem:[#allocation7 + $0x19c] sm:$0xf0]  ;;  %v4367_v29 = vor.u32 %v5844_v20, %v4364_v23  ;;  %v4898_v20 = vld [vmem:[#allocation7 + $0x3c8] sm:$0xf] }
  0x6e   :  { %1008 = vmatpush.bf16.msra.mxu2 %v4183_v4  ;;  %1021 = vmatpush.bf16.msra.mxu3 %v4247_v5  ;;  %v6100_v0 = vld [vmem:[#allocation7 + $0x39c] sm:$0xf0]  ;;  %v4308_v4 = vld [vmem:[#allocation2 + $0x1b8] sm:$0xf0]  ;;  %v4603_v5 = vor.u32 %v6036_v63, %v4602_v62  ;;  %v6109_v23 = vld [vmem:[#allocation7 + $0x3e4] sm:$0xf0] }
  0x6f   :  { %v4859_v6 = vor.u32 %v6100_v0, %v4858_v32  ;;  %v4311_v14 = vor.u32 %v5830_v3, %v4308_v4  ;;  %v4730_v51 = vld [vmem:[#allocation7 + $0x280] sm:$0xf]  ;;  %v4604_v3 = vld [vmem:[#allocation7 + $0x1a0] sm:$0xf0]  ;;  %v4610_v37 = vld [vmem:[#allocation7 + $0x188] sm:$0xf] }
  0x70   :  { %v4442_v63 = vld [vmem:[#allocation7 + $0x40] sm:$0xf]  ;;  %v4860_v4 = vld [vmem:[#allocation7 + $0x3a0] sm:$0xf0]  ;;  %v6037_v31 = vld [vmem:[#allocation7 + $0x1a4] sm:$0xf0] }
  0x71   :  { %985 = vmatpush.bf16.msra.mxu0 %v4347_v12  ;;  %998 = vmatpush.bf16.msra.mxu1 %v4095_v13  ;;  %v6092_v12 = vld [vmem:[#allocation7 + $0x35c] sm:$0xf0]  ;;  %v6739_v13 = vpack.c.bf16 %v429_v34, %v429_v34 }
  0x72   :  { %1009 = vmatpush.bf16.msra.mxu2 %v4175_v16  ;;  %1022 = vmatpush.bf16.msra.mxu3 %v4239_v17  ;;  %v5828_v16 = vld [vmem:[#allocation2 + $0x1a4] sm:$0xf]  ;;  %v4300_v17 = vld [vmem:[#allocation2 + $0x1a8] sm:$0xf0]  ;;  %v4827_v19 = vor.u32 %v6092_v12, %v4826_v11  ;;  %v5996_v32 = vld [vmem:[#allocation7 + $0x5c] sm:$0xf0] }
  0x73   :  { %934 = vmatmul.bf16.vlgmr.msrb.gmra.mxu0 %v6719_v21  ;;  %947 = vmatmul.bf16.vlgmr.msrb.gmra.mxu1 %v6723_v22  ;;  %v4303_v28 = vor.u32 %v5828_v16, %v4300_v17  ;;  %v5988_v8 = vld [vmem:[#allocation7 + $0x1c] sm:$0xf0]  ;;  %v6088_v16 = vld [vmem:[#allocation7 + $0x344] sm:$0xf] }
  0x74   :  { %4062 = vmatmul.msk.f32.gmra.mxu2 %vm180_vm1, %v126_v61  ;;  %4071 = vmatmul.msk.f32.gmra.mxu3 %vm180_vm1, %v126_v61  ;;  %v4380_v61 = vld [vmem:[#allocation2 + $0x248] sm:$0xf0]  ;;  %v4666_v9 = vld [vmem:[#allocation7 + $0x200] sm:$0xf]  ;;  %v4828_v17 = vld [vmem:[#allocation7 + $0x360] sm:$0xf0]  ;;  %v4411_v24 = vor.u32 %v5988_v8, %v4410_v7 }
  0x75   :  { %1030 = vmatpush.bf16.msrb.mxu0 %v4343_v26  ;;  %1043 = vmatpush.bf16.msrb.mxu1 %v4407_v27  ;;  %v4383_v2 = vor.u32 %v5848_v58, %v4380_v61  ;;  %v4794_v26 = vld [vmem:[#allocation7 + $0x300] sm:$0xf]  ;;  %v4892_v58 = vld [vmem:[#allocation7 + $0x3e0] sm:$0xf0]  ;;  %v4475_v61 = vor.u32 %v6004_v50, %v4474_v49  ;;  %v4578_v49 = vld [vmem:[#allocation7 + $0x148] sm:$0xf] }
  0x76   :  { %1010 = vmatpush.bf16.msra.mxu2 %v4167_v33  ;;  %1023 = vmatpush.bf16.msra.mxu3 %v4231_v35  ;;  %v6084_v27 = vld [vmem:[#allocation7 + $0x31c] sm:$0xf0]  ;;  %v5826_v33 = vld [vmem:[#allocation2 + $0x194] sm:$0xf]  ;;  %v4292_v35 = vld [vmem:[#allocation2 + $0x198] sm:$0xf0]  ;;  %v4895_v34 = vor.u32 %v6104_v57, %v4892_v58 }
  0x77   :  { %v4795_v36 = vor.u32 %v6084_v27, %v4794_v26  ;;  %v6052_v12 = vld [vmem:[#allocation7 + $0x21c] sm:$0xf0]  ;;  %v6016_v26 = vld [vmem:[#allocation7 + $0x104] sm:$0xf]  ;;  %v6029_v50 = vld [vmem:[#allocation7 + $0x164] sm:$0xf0] }
  0x78   :  { %v4667_v25 = vor.u32 %v6052_v12, %v4666_v9  ;;  %v1191_v27 = vld.sshfl [vmem:[#allocation1] sm:$0xff pattern:$0x73625140]  ;;  %v6000_v57 = vld [vmem:[#allocation7 + $0x84] sm:$0xf] }
  0x79   :  { %1031 = vmatpush.bf16.msrb.mxu0 %v4335_v40  ;;  %1044 = vmatpush.bf16.msrb.mxu1 %v4399_v41  ;;  %v4762_v40 = vld [vmem:[#allocation7 + $0x2c0] sm:$0xf]  ;;  %v4476_v58 = vld [vmem:[#allocation7 + $0xa0] sm:$0xf0]  ;;  %v4514_v7 = vld [vmem:[#allocation7 + $0xc8] sm:$0xf] }
  0x7a   :  { %1011 = vmatpush.bf16.msra.mxu2 %v4159_v44  ;;  %1024 = vmatpush.bf16.msra.mxu3 %v4223_v45  ;;  %v6076_v41 = vld [vmem:[#allocation7 + $0x2dc] sm:$0xf0]  ;;  %v4284_v44 = vld [vmem:[#allocation2 + $0x188] sm:$0xf0]  ;;  %v5840_v45 = vld [vmem:[#allocation2 + $0x204] sm:$0xf] }
  0x7b   :  { %v4763_v47 = vor.u32 %v6076_v41, %v4762_v40  ;;  %v6747_v40 = vpack.c.bf16 %v1191_v27, %v1191_v27  ;;  %v6013_v8 = vld [vmem:[#allocation7 + $0xe4] sm:$0xf0]  ;;  %v4644_v27 = vld [vmem:[#allocation7 + $0x1e8] sm:$0xf0] }
  0x7c   :  { %960 = vmatmul.bf16.vlgmr.msrb.gmra.mxu2 %v6731_v52  ;;  %973 = vmatmul.bf16.vlgmr.msrb.gmra.mxu3 %v6735_v53  ;;  %v4770_v9 = vld [vmem:[#allocation7 + $0x2c8] sm:$0xf] }
  0x7d   :  { %1032 = vmatpush.bf16.msrb.mxu0 %v4327_v54  ;;  %1045 = vmatpush.bf16.msrb.mxu1 %v4391_v55  ;;  %v6068_v54 = vld [vmem:[#allocation7 + $0x29c] sm:$0xf0]  ;;  %v6040_v55 = vld [vmem:[#allocation7 + $0x1c4] sm:$0xf] }
  0x7e   :  { %1965 = vmatpush.bf16.msrb.mxu2 %v4635_v59  ;;  %1978 = vmatpush.bf16.msrb.mxu3 %v4891_v60  ;;  %v4287_v59 = vor.u32 %v5824_v43, %v4284_v44  ;;  %v4351_v60 = vor.u32 %v5840_v45, %v4348_v48  ;;  %v4731_v62 = vor.u32 %v6068_v54, %v4730_v51  ;;  %v6008_v43 = vld [vmem:[#allocation7 + $0xc4] sm:$0xf]  ;;  %v4834_v51 = vld [vmem:[#allocation7 + $0x348] sm:$0xf] }
  0x7f   :  { %v4639_v0 = vor.u32 %v6040_v55, %v4636_v56  ;;  %v4508_v44 = vld [vmem:[#allocation7 + $0xe0] sm:$0xf0]  ;;  %v4611_v45 = vor.u32 %v6037_v31, %v4610_v37  ;;  %v6093_v54 = vld [vmem:[#allocation7 + $0x364] sm:$0xf0] }
  0x80   :  { %v4764_v48 = vld [vmem:[#allocation7 + $0x2e0] sm:$0xf0]  ;;  %v4511_v55 = vor.u32 %v6008_v43, %v4508_v44  ;;  %v6097_v43 = vld [vmem:[#allocation7 + $0x38c] sm:$0xf] }
  0x81   :  { %1033 = vmatpush.bf16.msrb.mxu0 %v4319_v1  ;;  %1046 = vmatpush.bf16.msrb.mxu1 %v4383_v2  ;;  %v4698_v1 = vld [vmem:[#allocation7 + $0x240] sm:$0xf]  ;;  %v4868_v44 = vld [vmem:[#allocation7 + $0x3a8] sm:$0xf0] }
  0x82   :  { %1966 = vmatpush.bf16.msrb.mxu2 %v4603_v5  ;;  %1979 = vmatpush.bf16.msrb.mxu3 %v4859_v6  ;;  %v6060_v2 = vld [vmem:[#allocation7 + $0x25c] sm:$0xf0]  ;;  %v4443_v5 = vor.u32 %v5996_v32, %v4442_v63  ;;  %v4546_v63 = vld [vmem:[#allocation7 + $0x108] sm:$0xf] }
  0x83   :  { %986 = vmatmul.bf16.vlgmr.msra.gmra.mxu0 %v6739_v13  ;;  %999 = vmatmul.bf16.vlgmr.msra.gmra.mxu1 %v6719_v21  ;;  %v4295_v21 = vor.u32 %v5826_v33, %v4292_v35  ;;  %v4699_v6 = vor.u32 %v6060_v2, %v4698_v1  ;;  %v4540_v33 = vld [vmem:[#allocation7 + $0x120] sm:$0xf0]  ;;  %v6021_v32 = vld [vmem:[#allocation7 + $0x124] sm:$0xf0]  ;;  %v4479_v1 = vor.u32 %v6000_v57, %v4476_v58  ;;  %v6025_v57 = vld [vmem:[#allocation7 + $0x14c] sm:$0xf] }
  0x84   :  { %v4580_v58 = vld [vmem:[#allocation7 + $0x168] sm:$0xf0] }
  0x85   :  { %1034 = vmatpush.bf16.msrb.mxu0 %v4311_v14  ;;  %1047 = vmatpush.bf16.msrb.mxu1 %v4375_v15  ;;  %v6024_v14 = vld [vmem:[#allocation7 + $0x144] sm:$0xf] }
  0x86   :  { %1967 = vmatpush.bf16.msrb.mxu2 %v4571_v18  ;;  %1980 = vmatpush.bf16.msrb.mxu3 %v4827_v19  ;;  %v4572_v15 = vld [vmem:[#allocation7 + $0x160] sm:$0xf0]  ;;  %v4642_v18 = vld [vmem:[#allocation7 + $0x1c8] sm:$0xf] }
  0x87   :  { %v6045_v19 = vld [vmem:[#allocation7 + $0x1e4] sm:$0xf0] }
  0x88   :  { %v4643_v35 = vor.u32 %v6045_v19, %v4642_v18  ;;  %v4668_v19 = vld [vmem:[#allocation7 + $0x220] sm:$0xf0] }
  0x89   :  { %1035 = vmatpush.bf16.msrb.mxu0 %v4303_v28  ;;  %1048 = vmatpush.bf16.msrb.mxu1 %v4367_v29  ;;  %v4575_v28 = vor.u32 %v6024_v14, %v4572_v15  ;;  %v4831_v29 = vor.u32 %v6088_v16, %v4828_v17  ;;  %v5984_v14 = vld [vmem:[#allocation7 + $0x4] sm:$0xf]  ;;  %v4515_v17 = vor.u32 %v6013_v8, %v4514_v7  ;;  %v6081_v7 = vld [vmem:[#allocation7 + $0x30c] sm:$0xf] }
  0x8a   :  { %1968 = vmatpush.bf16.msrb.mxu2 %v4539_v30  ;;  %1981 = vmatpush.bf16.msrb.mxu3 %v4795_v36  ;;  %v6080_v30 = vld [vmem:[#allocation7 + $0x304] sm:$0xf]  ;;  %v4804_v8 = vld [vmem:[#allocation7 + $0x328] sm:$0xf0] }
  0x8b   :  { %v4796_v36 = vld [vmem:[#allocation7 + $0x320] sm:$0xf0] }
  0x8c   :  { %1012 = vmatmul.bf16.vlgmr.msra.gmra.mxu2 %v6723_v22  ;;  %1025 = vmatmul.bf16.vlgmr.msra.gmra.mxu3 %v6731_v52  ;;  %v6032_v22 = vld [vmem:[#allocation7 + $0x184] sm:$0xf] }
  0x8d   :  { %1036 = vmatpush.bf16.msrb.mxu0 %v4295_v21  ;;  %1049 = vmatpush.bf16.msrb.mxu1 %v4359_v42  ;;  %v6096_v52 = vld [vmem:[#allocation7 + $0x384] sm:$0xf]  ;;  %v4607_v10 = vor.u32 %v6032_v22, %v4604_v3  ;;  %v4543_v21 = vor.u32 %v6016_v26, %v4540_v33  ;;  %v4799_v42 = vor.u32 %v6080_v30, %v4796_v36  ;;  %v6041_v26 = vld [vmem:[#allocation7 + $0x1cc] sm:$0xf]  ;;  %v4450_v30 = vld [vmem:[#allocation7 + $0x48] sm:$0xf] }
  0x8e   :  { %1969 = vmatpush.bf16.msrb.mxu2 %v4507_v46  ;;  %1982 = vmatpush.bf16.msrb.mxu3 %v4763_v47  ;;  %v4863_v11 = vor.u32 %v6096_v52, %v4860_v4  ;;  %v4867_v46 = vor.u32 %v6101_v39, %v4866_v38  ;;  %v6072_v47 = vld [vmem:[#allocation7 + $0x2c4] sm:$0xf]  ;;  %v4547_v52 = vor.u32 %v6021_v32, %v4546_v63  ;;  %v5997_v36 = vld [vmem:[#allocation7 + $0x64] sm:$0xf0]  ;;  %v4906_v63 = vld [vmem:[#allocation7 + $0x3d0] sm:$0xf] }
  0x8f   :  { %v4767_v56 = vor.u32 %v6072_v47, %v4764_v48  ;;  %v5992_v22 = vld [vmem:[#allocation7 + $0x44] sm:$0xf]  ;;  %v4647_v37 = vor.u32 %v6041_v26, %v4644_v27  ;;  %v4706_v38 = vld [vmem:[#allocation7 + $0x248] sm:$0xf]  ;;  %v4451_v47 = vor.u32 %v5997_v36, %v4450_v30  ;;  %v6110_v32 = vld [vmem:[#allocation7 + $0x3ec] sm:$0xf0] }
  0x90   :  { %v4444_v3 = vld [vmem:[#allocation7 + $0x60] sm:$0xf0]  ;;  %v6061_v39 = vld [vmem:[#allocation7 + $0x264] sm:$0xf0]  ;;  %v4772_v27 = vld [vmem:[#allocation7 + $0x2e8] sm:$0xf0] }
  0x91   :  { %1037 = vmatpush.bf16.msrb.mxu0 %v4287_v59  ;;  %1050 = vmatpush.bf16.msrb.mxu1 %v4351_v60  ;;  %v4579_v59 = vor.u32 %v6029_v50, %v4578_v49  ;;  %v4835_v60 = vor.u32 %v6093_v54, %v4834_v51  ;;  %v4412_v15 = vld [vmem:[#allocation7 + $0x20] sm:$0xf0]  ;;  %v4707_v48 = vor.u32 %v6061_v39, %v4706_v38  ;;  %v4418_v49 = vld [vmem:[#allocation7 + $0x8] sm:$0xf]  ;;  %v6001_v30 = vld [vmem:[#allocation7 + $0x8c] sm:$0xf] }
  0x92   :  { %1970 = vmatpush.bf16.msrb.mxu2 %v4475_v61  ;;  %1983 = vmatpush.bf16.msrb.mxu3 %v4731_v62  ;;  %v6064_v61 = vld [vmem:[#allocation7 + $0x284] sm:$0xf]  ;;  %v4415_v33 = vor.u32 %v5984_v14, %v4412_v15  ;;  %v5989_v50 = vld [vmem:[#allocation7 + $0x24] sm:$0xf0]  ;;  %v4484_v36 = vld [vmem:[#allocation7 + $0xa8] sm:$0xf0] }
  0x93   :  { %v4732_v62 = vld [vmem:[#allocation7 + $0x2a0] sm:$0xf0]  ;;  %v4674_v51 = vld [vmem:[#allocation7 + $0x208] sm:$0xf]  ;;  %v6065_v38 = vld [vmem:[#allocation7 + $0x28c] sm:$0xf] }
  0x94   :  { %1038 = vmatmul.bf16.vlgmr.msrb.gmra.mxu0 %v6735_v53  ;;  %1051 = vmatmul.bf16.vlgmr.msrb.gmra.mxu1 %v6739_v13  ;;  %v1192_v53 = vld.sshfl [vmem:[#allocation1 + $0x8] sm:$0xff pattern:$0x73625140]  ;;  %v4899_v13 = vor.u32 %v6109_v23, %v4898_v20  ;;  %v4735_v2 = vor.u32 %v6064_v61, %v4732_v62  ;;  %v4482_v20 = vld [vmem:[#allocation7 + $0x88] sm:$0xf] }
  0x95   :  { %1991 = vmatpush.bf16.msra.mxu0 %v4639_v0  ;;  %2004 = vmatpush.bf16.msra.mxu1 %v4895_v34  ;;  %v6749_v41 = vpack.c.bf16 %v1192_v53, %v1192_v53  ;;  %v4802_v0 = vld [vmem:[#allocation7 + $0x308] sm:$0xf]  ;;  %v6048_v16 = vld [vmem:[#allocation7 + $0x204] sm:$0xf]  ;;  %v4650_v61 = vld [vmem:[#allocation7 + $0x1d0] sm:$0xf] }
  0x96   :  { %1971 = vmatpush.bf16.msrb.mxu2 %v4443_v5  ;;  %1984 = vmatpush.bf16.msrb.mxu3 %v4699_v6  ;;  %v6085_v34 = vld [vmem:[#allocation7 + $0x324] sm:$0xf0]  ;;  %v6056_v5 = vld [vmem:[#allocation7 + $0x244] sm:$0xf]  ;;  %v4671_v53 = vor.u32 %v6048_v16, %v4668_v19  ;;  %v6046_v62 = vld [vmem:[#allocation7 + $0x1ec] sm:$0xf0]  ;;  %v4807_v19 = vor.u32 %v6081_v7, %v4804_v8 }
  0x97   :  { %v4803_v4 = vor.u32 %v6085_v34, %v4802_v0  ;;  %v4700_v6 = vld [vmem:[#allocation7 + $0x260] sm:$0xf0]  ;;  %v6005_v23 = vld [vmem:[#allocation7 + $0xa4] sm:$0xf0]  ;;  %v4419_v0 = vor.u32 %v5989_v50, %v4418_v49  ;;  %v4740_v39 = vld [vmem:[#allocation7 + $0x2a8] sm:$0xf0] }
  0x98   :  { %v4703_v12 = vor.u32 %v6056_v5, %v4700_v6  ;;  %v4907_v5 = vor.u32 %v6110_v32, %v4906_v63  ;;  %v6086_v49 = vld [vmem:[#allocation7 + $0x32c] sm:$0xf0]  ;;  %v4708_v63 = vld [vmem:[#allocation7 + $0x268] sm:$0xf0] }
  0x99   :  { %1992 = vmatpush.bf16.msra.mxu0 %v4607_v10  ;;  %2005 = vmatpush.bf16.msra.mxu1 %v4863_v11  ;;  %v6077_v10 = vld [vmem:[#allocation7 + $0x2e4] sm:$0xf0]  ;;  %v4447_v11 = vor.u32 %v5992_v22, %v4444_v3  ;;  %v6017_v3 = vld [vmem:[#allocation7 + $0x10c] sm:$0xf]  ;;  %v4522_v32 = vld [vmem:[#allocation7 + $0xd0] sm:$0xf] }
  0x9a   :  { %1972 = vmatpush.bf16.msrb.mxu2 %v4411_v24  ;;  %1985 = vmatpush.bf16.msrb.mxu3 %v4667_v25  ;;  %v4771_v18 = vor.u32 %v6077_v10, %v4770_v9  ;;  %v4738_v24 = vld [vmem:[#allocation7 + $0x288] sm:$0xf]  ;;  %v4618_v9 = vld [vmem:[#allocation7 + $0x190] sm:$0xf]  ;;  %v4676_v7 = vld [vmem:[#allocation7 + $0x228] sm:$0xf0] }
  0x9b   :  { %v6069_v25 = vld [vmem:[#allocation7 + $0x2a4] sm:$0xf0]  ;;  %v6038_v10 = vld [vmem:[#allocation7 + $0x1ac] sm:$0xf0] }
  0x9d   :  { %1993 = vmatpush.bf16.msra.mxu0 %v4575_v28  ;;  %2006 = vmatpush.bf16.msra.mxu1 %v4831_v29  ;;  %v6105_v28 = vld [vmem:[#allocation7 + $0x3cc] sm:$0xf] }
  0x9e   :  { %2017 = vmatpush.bf16.msra.mxu2 %v4643_v35  ;;  %2030 = vmatpush.bf16.msra.mxu3 %v4899_v13  ;;  %v4900_v29 = vld [vmem:[#allocation7 + $0x3e8] sm:$0xf0]  ;;  %v4483_v35 = vor.u32 %v6005_v23, %v4482_v20  ;;  %v4739_v13 = vor.u32 %v6069_v25, %v4738_v24  ;;  %v6761_v6 = vpop.permute.xlu1 %143  ;;  %v4619_v25 = vor.u32 %v6038_v10, %v4618_v9  ;;  %v4490_v10 = vld [vmem:[#allocation7 + $0x90] sm:$0xf] }
  0x9f   :  { %1973 = vmatmul.bf16.vlgmr.msrb.gmra.mxu2 %v6747_v40  ;;  %1986 = vmatmul.bf16.vlgmr.msrb.gmra.mxu3 %v6749_v41  ;;  %v4903_v31 = vor.u32 %v6105_v28, %v4900_v29  ;;  %v6009_v20 = vld [vmem:[#allocation7 + $0xcc] sm:$0xf]  ;;  %v4586_v28 = vld [vmem:[#allocation7 + $0x150] sm:$0xf] }
  0xa0   :  { %v4516_v23 = vld [vmem:[#allocation7 + $0xe8] sm:$0xf0]  ;;  %v6030_v29 = vld [vmem:[#allocation7 + $0x16c] sm:$0xf0] }
  0xa1   :  { %1994 = vmatpush.bf16.msra.mxu0 %v4543_v21  ;;  %2007 = vmatpush.bf16.msra.mxu1 %v4799_v42  ;;  %v6033_v21 = vld [vmem:[#allocation7 + $0x18c] sm:$0xf] }
  0xa2   :  { %2018 = vmatpush.bf16.msra.mxu2 %v4611_v45  ;;  %2031 = vmatpush.bf16.msra.mxu3 %v4867_v46  ;;  %v4612_v42 = vld [vmem:[#allocation7 + $0x1a8] sm:$0xf0] }
  0xa3   :  { %v4615_v54 = vor.u32 %v6033_v21, %v4612_v42  ;;  %v6073_v24 = vld [vmem:[#allocation7 + $0x2cc] sm:$0xf]  ;;  %v4554_v21 = vld [vmem:[#allocation7 + $0x110] sm:$0xf] }
  0xa5   :  { %1995 = vmatpush.bf16.msra.mxu0 %v4511_v55  ;;  %2008 = vmatpush.bf16.msra.mxu1 %v4767_v56  ;;  %v4871_v55 = vor.u32 %v6097_v43, %v4868_v44  ;;  %v6053_v56 = vld [vmem:[#allocation7 + $0x224] sm:$0xf0] }
  0xa6   :  { %2019 = vmatpush.bf16.msra.mxu2 %v4579_v59  ;;  %2032 = vmatpush.bf16.msra.mxu3 %v4835_v60  ;;  %v6089_v59 = vld [vmem:[#allocation7 + $0x34c] sm:$0xf]  ;;  %v4675_v34 = vor.u32 %v6053_v56, %v4674_v51 }
  0xa7   :  { %v4836_v60 = vld [vmem:[#allocation7 + $0x368] sm:$0xf0] }
  0xa8   :  { %v4839_v22 = vor.u32 %v6089_v59, %v4836_v60  ;;  %v4452_v59 = vld [vmem:[#allocation7 + $0x68] sm:$0xf0] }
  0xa9   :  { %1996 = vmatpush.bf16.msra.mxu0 %v4479_v1  ;;  %2009 = vmatpush.bf16.msra.mxu1 %v4735_v2  ;;  %v6759_v1 = vpop.permute.xlu2 %148  ;;  %v4583_v2 = vor.u32 %v6025_v57, %v4580_v58  ;;  %v4743_v57 = vor.u32 %v6065_v38, %v4740_v39  ;;  %v5993_v58 = vld [vmem:[#allocation7 + $0x4c] sm:$0xf]  ;;  %v6034_v39 = vld [vmem:[#allocation7 + $0x194] sm:$0xf] }
  0xaa   :  { %2020 = vmatpush.bf16.msra.mxu2 %v4547_v52  ;;  %2033 = vmatpush.bf16.msra.mxu3 %v4803_v4  ;;  %v4548_v52 = vld [vmem:[#allocation7 + $0x128] sm:$0xf0]  ;;  %v4651_v4 = vor.u32 %v6046_v62, %v4650_v61 }
  0xab   :  { %v4551_v16 = vor.u32 %v6017_v3, %v4548_v52  ;;  %v6057_v60 = vld [vmem:[#allocation7 + $0x24c] sm:$0xf]  ;;  %v4455_v3 = vor.u32 %v5993_v58, %v4452_v59 }
  0xac   :  { %v4711_v52 = vor.u32 %v6057_v60, %v4708_v63  ;;  %v6054_v60 = vld [vmem:[#allocation7 + $0x22c] sm:$0xf0] }
  0xad   :  { %1997 = vmatpush.bf16.msra.mxu0 %v4447_v11  ;;  %2010 = vmatpush.bf16.msra.mxu1 %v4703_v12  ;;  %v4874_v11 = vld [vmem:[#allocation7 + $0x390] sm:$0xf] }
  0xae   :  { %2021 = vmatpush.bf16.msra.mxu2 %v4515_v17  ;;  %2034 = vmatpush.bf16.msra.mxu3 %v4771_v18  ;;  %v6102_v12 = vld [vmem:[#allocation7 + $0x3ac] sm:$0xf0] }
  0xaf   :  { %v4875_v26 = vor.u32 %v6102_v12, %v4874_v11  ;;  %v6006_v11 = vld [vmem:[#allocation7 + $0xac] sm:$0xf0] }
  0xb0   :  { %v6753_v45 = vpop.f32.mrf.mxu0  ;;  %v6755_v46 = vpop.f32.mrf.mxu1 }
  0xb1   :  { %1998 = vmatpush.bf16.msra.mxu0 %v4415_v33  ;;  %2011 = vmatpush.bf16.msra.mxu1 %v4671_v53  ;;  %v4842_v33 = vld [vmem:[#allocation7 + $0x350] sm:$0xf]  ;;  %v6774_v42 = vpop.permute.xlu2 %153 }
  0xb2   :  { %2022 = vmatpush.bf16.msra.mxu2 %v4483_v35  ;;  %2035 = vmatpush.bf16.msra.mxu3 %v4739_v13  ;;  %v6094_v53 = vld [vmem:[#allocation7 + $0x36c] sm:$0xf0]  ;;  %v4519_v35 = vor.u32 %v6009_v20, %v4516_v23  ;;  %v4775_v13 = vor.u32 %v6073_v24, %v4772_v27  ;;  %v4908_v27 = vld [vmem:[#allocation7 + $0x3f0] sm:$0xf0] }
  0xb4   :  { %1999 = vmatmul.bf16.vlgmr.msra.gmra.mxu0 %v6747_v40  ;;  %2012 = vmatmul.bf16.vlgmr.msra.gmra.mxu1 %v6749_v41 }
  0xb5   :  { %2043 = vmatpush.bf16.msrb.mxu0 %v4647_v37  ;;  %2056 = vmatpush.bf16.msrb.mxu1 %v4903_v31  ;;  %v4587_v37 = vor.u32 %v6030_v29, %v4586_v28  ;;  %v4843_v31 = vor.u32 %v6094_v53, %v4842_v33  ;;  %v4458_v53 = vld [vmem:[#allocation7 + $0x50] sm:$0xf] }
  0xb6   :  { %2023 = vmatpush.bf16.msra.mxu2 %v4451_v47  ;;  %2036 = vmatpush.bf16.msra.mxu3 %v4707_v48  ;;  %v6022_v47 = vld [vmem:[#allocation7 + $0x12c] sm:$0xf0] }
  0xb7   :  { %v4810_v48 = vld [vmem:[#allocation7 + $0x310] sm:$0xf]  ;;  %v4555_v61 = vor.u32 %v6022_v47, %v4554_v21  ;;  %v4620_v21 = vld [vmem:[#allocation7 + $0x1b0] sm:$0xf0] }
  0xb8   :  { %v230_v14 = vpop.f32.mrf.mxu0  ;;  %v271_v15 = vpop.f32.mrf.mxu1  ;;  %v4811_v62 = vor.u32 %v6086_v49, %v4810_v48  ;;  %v6098_v47 = vld [vmem:[#allocation7 + $0x394] sm:$0xf] }
  0xb9   :  { %2044 = vmatpush.bf16.msrb.mxu0 %v4615_v54  ;;  %2057 = vmatpush.bf16.msrb.mxu1 %v4871_v55  ;;  %v231_v17 = vadd.f32 %v230_v14, %v6761_v6  ;;  %v272_v18 = vadd.f32 %v271_v15, %v6761_v6  ;;  %v4487_v54 = vor.u32 %v6001_v30, %v4484_v36  ;;  %v4746_v15 = vld [vmem:[#allocation7 + $0x290] sm:$0xf]  ;;  %v4876_v48 = vld [vmem:[#allocation7 + $0x3b0] sm:$0xf0] }
  0xba   :  { %2024 = vmatpush.bf16.msra.mxu2 %v4419_v0  ;;  %2037 = vmatpush.bf16.msra.mxu3 %v4675_v34  ;;  %v6014_v0 = vld [vmem:[#allocation7 + $0xec] sm:$0xf0]  ;;  %v4879_v58 = vor.u32 %v6098_v47, %v4876_v48 }
  0xbb   :  { %295 = vst [vmem:[%s7665_s19 + $0x10] sm:$0xff] %v231_v17  ;;  %v4778_v34 = vld [vmem:[#allocation7 + $0x2d0] sm:$0xf]  ;;  %v4523_v8 = vor.u32 %v6014_v0, %v4522_v32  ;;  %v6042_v17 = vld [vmem:[#allocation7 + $0x1d4] sm:$0xf] }
  0xbc   :  { %296 = vst.msk [vmem:[%s7665_s19 + $0x18] sm:$0xff] %vm293_vm2, %v272_v18  ;;  %v4714_v36 = vld [vmem:[#allocation7 + $0x250] sm:$0xf] }
  0xbd   :  { %2045 = vmatpush.bf16.msrb.mxu0 %v4583_v2  ;;  %2058 = vmatpush.bf16.msrb.mxu1 %v4839_v22  ;;  %v6078_v2 = vld [vmem:[#allocation7 + $0x2ec] sm:$0xf0]  ;;  %v5985_v22 = vld [vmem:[#allocation7 + $0xc] sm:$0xf] }
  0xbe   :  { %2069 = vmatpush.bf16.msrb.mxu2 %v4651_v4  ;;  %2082 = vmatpush.bf16.msrb.mxu3 %v4907_v5  ;;  %v4420_v4 = vld [vmem:[#allocation7 + $0x28] sm:$0xf0]  ;;  %v4779_v9 = vor.u32 %v6078_v2, %v4778_v34  ;;  %v6090_v34 = vld [vmem:[#allocation7 + $0x354] sm:$0xf] }
  0xbf   :  { %2025 = vmatmul.bf16.vlgmr.msra.gmra.mxu2 %v6747_v40  ;;  %2038 = vmatmul.bf16.vlgmr.msra.gmra.mxu3 %v6749_v41  ;;  %v6776_v43 = vpop.f32.mrf.mxu2  ;;  %v6778_v44 = vpop.f32.mrf.mxu3  ;;  %v6049_v5 = vld [vmem:[#allocation7 + $0x20c] sm:$0xf]  ;;  %v4423_v23 = vor.u32 %v5985_v22, %v4420_v4  ;;  %v4844_v2 = vld [vmem:[#allocation7 + $0x370] sm:$0xf0]  ;;  %v4658_v22 = vld [vmem:[#allocation7 + $0x1d8] sm:$0xf] }
  0xc0   :  { %v233_v50 = vpop.f32.mrf.mxu0  ;;  %v274_v51 = vpop.f32.mrf.mxu1  ;;  %v4679_v24 = vor.u32 %v6049_v5, %v4676_v7  ;;  %v6047_v5 = vld [vmem:[#allocation7 + $0x1f4] sm:$0xf0] }
  0xc1   :  { %2046 = vmatpush.bf16.msrb.mxu0 %v4551_v16  ;;  %2059 = vmatpush.bf16.msrb.mxu1 %v4807_v19  ;;  %v234_v55 = vadd.f32 %v233_v50, %v6759_v1  ;;  %v275_v56 = vadd.f32 %v274_v51, %v6759_v1  ;;  %v6070_v16 = vld [vmem:[#allocation7 + $0x2ac] sm:$0xf0]  ;;  %v4914_v7 = vld [vmem:[#allocation7 + $0x3d8] sm:$0xf] }
  0xc2   :  { %2070 = vmatpush.bf16.msrb.mxu2 %v4619_v25  ;;  %2083 = vmatpush.bf16.msrb.mxu3 %v4875_v26  ;;  %v4652_v25 = vld [vmem:[#allocation7 + $0x1f0] sm:$0xf0]  ;;  %v4747_v30 = vor.u32 %v6070_v16, %v4746_v15  ;;  %v4426_v51 = vld [vmem:[#allocation7 + $0x10] sm:$0xf] }
  0xc3   :  { %297 = vst [vmem:[%s7665_s19 + $0x20] sm:$0xff] %v234_v55  ;;  %v6106_v26 = vld [vmem:[#allocation7 + $0x3d4] sm:$0xf]  ;;  %v4655_v38 = vor.u32 %v6042_v17, %v4652_v25  ;;  %v4682_v55 = vld [vmem:[#allocation7 + $0x210] sm:$0xf]  ;;  %v4659_v17 = vor.u32 %v6047_v5, %v4658_v22 }
  0xc4   :  { %298 = vst.msk [vmem:[%s7665_s19 + $0x28] sm:$0xff] %vm293_vm2, %v275_v56  ;;  %v6082_v15 = vld [vmem:[#allocation7 + $0x314] sm:$0xf]  ;;  %v6103_v25 = vld [vmem:[#allocation7 + $0x3b4] sm:$0xf0] }
  0xc5   :  { %2047 = vmatpush.bf16.msrb.mxu0 %v4519_v35  ;;  %2060 = vmatpush.bf16.msrb.mxu1 %v4775_v13  ;;  %v5998_v35 = vld [vmem:[#allocation7 + $0x6c] sm:$0xf0]  ;;  %v4491_v13 = vor.u32 %v6006_v11, %v4490_v10  ;;  %v4683_v10 = vor.u32 %v6054_v60, %v4682_v55  ;;  %v6018_v11 = vld [vmem:[#allocation7 + $0x114] sm:$0xf] }
  0xc6   :  { %2071 = vmatpush.bf16.msrb.mxu2 %v4587_v37  ;;  %2084 = vmatpush.bf16.msrb.mxu3 %v4843_v31  ;;  %v6062_v37 = vld [vmem:[#allocation7 + $0x26c] sm:$0xf0]  ;;  %v6796_v31 = vpop.permute.xlu2 %158  ;;  %v4459_v49 = vor.u32 %v5998_v35, %v4458_v53  ;;  %v4812_v16 = vld [vmem:[#allocation7 + $0x330] sm:$0xf0] }
  0xc7   :  { %v339_v12 = vpop.f32.mrf.mxu2  ;;  %v380_v14 = vpop.f32.mrf.mxu3  ;;  %v4715_v50 = vor.u32 %v6062_v37, %v4714_v36  ;;  %v4524_v53 = vld [vmem:[#allocation7 + $0xf0] sm:$0xf0] }
  0xc8   :  { %v340_v18 = vadd.f32 %v339_v12, %v6761_v6  ;;  %v236_v19 = vpop.f32.mrf.mxu0  ;;  %v277_v20 = vpop.f32.mrf.mxu1  ;;  %v381_v33 = vadd.f32 %v380_v14, %v6761_v6  ;;  %v4911_v6 = vor.u32 %v6106_v26, %v4908_v27  ;;  %v4556_v12 = vld [vmem:[#allocation7 + $0x130] sm:$0xf0]  ;;  %v4847_v14 = vor.u32 %v6090_v34, %v4844_v2 }
  0xc9   :  { %2048 = vmatpush.bf16.msrb.mxu0 %v4487_v54  ;;  %2061 = vmatpush.bf16.msrb.mxu1 %v4743_v57  ;;  %v237_v28 = vadd.f32 %v236_v19, %v6774_v42  ;;  %v278_v29 = vadd.f32 %v277_v20, %v6774_v42  ;;  %v5990_v54 = vld [vmem:[#allocation7 + $0x2c] sm:$0xf0]  ;;  %v4623_v57 = vor.u32 %v6034_v39, %v4620_v21  ;;  %v4626_v19 = vld [vmem:[#allocation7 + $0x198] sm:$0xf]  ;;  %v4492_v55 = vld [vmem:[#allocation7 + $0xb0] sm:$0xf0] }
  0xca   :  { %2072 = vmatpush.bf16.msrb.mxu2 %v4555_v61  ;;  %2085 = vmatpush.bf16.msrb.mxu3 %v4811_v62  ;;  %4074 = vst [vmem:[%s7665_s19 + $0x90] sm:$0xff] %v340_v18  ;;  %v6026_v61 = vld [vmem:[#allocation7 + $0x154] sm:$0xf]  ;;  %v6039_v20 = vld [vmem:[#allocation7 + $0x1b4] sm:$0xf0]  ;;  %v4559_v27 = vor.u32 %v6018_v11, %v4556_v12 }
  0xcb   :  { %299 = vst [vmem:[%s7665_s19 + $0x30] sm:$0xff] %v237_v28  ;;  %v4588_v62 = vld [vmem:[#allocation7 + $0x170] sm:$0xf0]  ;;  %v4815_v28 = vor.u32 %v6082_v15, %v4812_v16  ;;  %v4594_v39 = vld [vmem:[#allocation7 + $0x158] sm:$0xf] }
  0xcc   :  { %300 = vst.msk [vmem:[%s7665_s19 + $0x38] sm:$0xff] %vm293_vm2, %v278_v29  ;;  %v6058_v11 = vld [vmem:[#allocation7 + $0x254] sm:$0xf] }
  0xcd   :  { %2049 = vmatpush.bf16.msrb.mxu0 %v4455_v3  ;;  %2062 = vmatpush.bf16.msrb.mxu1 %v4711_v52  ;;  %4075 = vst.msk [vmem:[%s7665_s19 + $0x98] sm:$0xff] %vm293_vm2, %v381_v33  ;;  %v6010_v33 = vld [vmem:[#allocation7 + $0xd4] sm:$0xf] }
  0xce   :  { %2073 = vmatpush.bf16.msrb.mxu2 %v4523_v8  ;;  %2086 = vmatpush.bf16.msrb.mxu3 %v4779_v9  ;;  %v6111_v8 = vld [vmem:[#allocation7 + $0x3f4] sm:$0xf0]  ;;  %v4427_v9 = vor.u32 %v5990_v54, %v4426_v51  ;;  %v6002_v54 = vld [vmem:[#allocation7 + $0x94] sm:$0xf] }
  0xcf   :  { %v342_v56 = vpop.f32.mrf.mxu2  ;;  %v383_v59 = vpop.f32.mrf.mxu3  ;;  %v4915_v18 = vor.u32 %v6111_v8, %v4914_v7  ;;  %v6095_v51 = vld [vmem:[#allocation7 + $0x374] sm:$0xf0]  ;;  %v4495_v2 = vor.u32 %v6002_v54, %v4492_v55  ;;  %v4716_v12 = vld [vmem:[#allocation7 + $0x270] sm:$0xf0] }
  0xd0   :  { %v343_v63 = vadd.f32 %v342_v56, %v6759_v1  ;;  %v239_v32 = vpop.f32.mrf.mxu0  ;;  %v280_v0 = vpop.f32.mrf.mxu1  ;;  %v384_v4 = vadd.f32 %v383_v59, %v6759_v1  ;;  %v4591_v1 = vor.u32 %v6026_v61, %v4588_v62  ;;  %v4562_v61 = vld [vmem:[#allocation7 + $0x118] sm:$0xf] }
  0xd1   :  { %2050 = vmatpush.bf16.msrb.mxu0 %v4423_v23  ;;  %2063 = vmatpush.bf16.msrb.mxu1 %v4679_v24  ;;  %v240_v3 = vadd.f32 %v239_v32, %v6796_v31  ;;  %v281_v52 = vadd.f32 %v280_v0, %v6796_v31  ;;  %v6825_v23 = vpop.permute.xlu2 %163  ;;  %v4882_v24 = vld [vmem:[#allocation7 + $0x398] sm:$0xf] }
  0xd2   :  { %2074 = vmatpush.bf16.msrb.mxu2 %v4491_v13  ;;  %2087 = vmatpush.bf16.msrb.mxu3 %v4747_v30  ;;  %4076 = vst [vmem:[%s7665_s19 + $0xa0] sm:$0xff] %v343_v63  ;;  %v4627_v13 = vor.u32 %v6039_v20, %v4626_v19  ;;  %v4883_v30 = vor.u32 %v6103_v25, %v4882_v24  ;;  %v6023_v62 = vld [vmem:[#allocation7 + $0x134] sm:$0xf0]  ;;  %v5986_v20 = vld [vmem:[#allocation7 + $0x14] sm:$0xf] }
  0xd3   :  { %301 = vst [vmem:[%s7665_s19 + $0x40] sm:$0xff] %v240_v3  ;;  %v4818_v63 = vld [vmem:[#allocation7 + $0x318] sm:$0xf]  ;;  %v4563_v7 = vor.u32 %v6023_v62, %v4562_v61  ;;  %v4428_v24 = vld [vmem:[#allocation7 + $0x30] sm:$0xf0] }
  0xd4   :  { %2051 = vmatmul.bf16.vlgmr.msrb.gmra.mxu0 %v6747_v40  ;;  %2064 = vmatmul.bf16.vlgmr.msrb.gmra.mxu1 %v6749_v41  ;;  %302 = vst.msk [vmem:[%s7665_s19 + $0x48] sm:$0xff] %vm293_vm2, %v281_v52  ;;  %v6087_v32 = vld [vmem:[#allocation7 + $0x334] sm:$0xf0]  ;;  %v5994_v52 = vld [vmem:[#allocation7 + $0x54] sm:$0xf] }
  0xd5   :  { %2095 = vmatpush.bf16.msra.mxu0 %v4655_v38  ;;  %2108 = vmatpush.bf16.msra.mxu1 %v4911_v6  ;;  %4077 = vst.msk [vmem:[%s7665_s19 + $0xa8] sm:$0xff] %vm293_vm2, %v384_v4  ;;  %v6074_v38 = vld [vmem:[#allocation7 + $0x2d4] sm:$0xf]  ;;  %v4819_v8 = vor.u32 %v6087_v32, %v4818_v63  ;;  %v6079_v19 = vld [vmem:[#allocation7 + $0x2f4] sm:$0xf0] }
  0xd6   :  { %2075 = vmatpush.bf16.msrb.mxu2 %v4459_v49  ;;  %2088 = vmatpush.bf16.msrb.mxu3 %v4715_v50  ;;  %v4780_v6 = vld [vmem:[#allocation7 + $0x2f0] sm:$0xf0]  ;;  %v6031_v49 = vld [vmem:[#allocation7 + $0x174] sm:$0xf0]  ;;  %v6035_v61 = vld [vmem:[#allocation7 + $0x19c] sm:$0xf] }
  0xd7   :  { %v345_v26 = vpop.f32.mrf.mxu2  ;;  %v386_v29 = vpop.f32.mrf.mxu3  ;;  %v4850_v50 = vld [vmem:[#allocation7 + $0x358] sm:$0xf]  ;;  %v4783_v56 = vor.u32 %v6074_v38, %v4780_v6  ;;  %v4595_v59 = vor.u32 %v6031_v49, %v4594_v39  ;;  %v4460_v4 = vld [vmem:[#allocation7 + $0x70] sm:$0xf0]  ;;  %v4916_v38 = vld [vmem:[#allocation7 + $0x3f8] sm:$0xf0]  ;;  %v4431_v39 = vor.u32 %v5986_v20, %v4428_v24 }
  0xd8   :  { %v346_v35 = vadd.f32 %v345_v26, %v6774_v42  ;;  %v242_v36 = vpop.f32.mrf.mxu0  ;;  %v283_v37 = vpop.f32.mrf.mxu1  ;;  %v387_v48 = vadd.f32 %v386_v29, %v6774_v42  ;;  %v4527_v42 = vor.u32 %v6010_v33, %v4524_v53  ;;  %v4851_v60 = vor.u32 %v6095_v51, %v4850_v50  ;;  %v6050_v25 = vld [vmem:[#allocation7 + $0x214] sm:$0xf]  ;;  %v6007_v53 = vld [vmem:[#allocation7 + $0xb4] sm:$0xf0]  ;;  %v4628_v62 = vld [vmem:[#allocation7 + $0x1b8] sm:$0xf0] }
  0xd9   :  { %2096 = vmatpush.bf16.msra.mxu0 %v4623_v57  ;;  %2109 = vmatpush.bf16.msra.mxu1 %v4879_v58  ;;  %v243_v21 = vadd.f32 %v242_v36, %v6825_v23  ;;  %v284_v47 = vadd.f32 %v283_v37, %v6825_v23  ;;  %v6066_v57 = vld [vmem:[#allocation7 + $0x294] sm:$0xf]  ;;  %v6851_v0 = vpop.permute.xlu2 %168  ;;  %v4463_v26 = vor.u32 %v5994_v52, %v4460_v4  ;;  %v4660_v36 = vld [vmem:[#allocation7 + $0x1f8] sm:$0xf0] }
  0xda   :  { %2076 = vmatpush.bf16.msrb.mxu2 %v4427_v9  ;;  %2089 = vmatpush.bf16.msrb.mxu3 %v4683_v10  ;;  %4078 = vst [vmem:[%s7665_s19 + $0xb0] sm:$0xff] %v346_v35  ;;  %v4748_v58 = vld [vmem:[#allocation7 + $0x2b0] sm:$0xf0]  ;;  %v4754_v35 = vld [vmem:[#allocation7 + $0x298] sm:$0xf]  ;;  %v4631_v52 = vor.u32 %v6035_v61, %v4628_v62 }
  0xdb   :  { %303 = vst [vmem:[%s7665_s19 + $0x50] sm:$0xff] %v243_v21  ;;  %v4751_v22 = vor.u32 %v6066_v57, %v4748_v58  ;;  %v6107_v37 = vld [vmem:[#allocation7 + $0x3dc] sm:$0xf]  ;;  %v4722_v57 = vld [vmem:[#allocation7 + $0x258] sm:$0xf] }
  0xdc   :  { %304 = vst.msk [vmem:[%s7665_s19 + $0x58] sm:$0xff] %vm293_vm2, %v284_v47  ;;  %v6099_v63 = vld [vmem:[#allocation7 + $0x39c] sm:$0xf] }
  0xdd   :  { %2097 = vmatpush.bf16.msra.mxu0 %v4591_v1  ;;  %2110 = vmatpush.bf16.msra.mxu1 %v4847_v14  ;;  %4079 = vst.msk [vmem:[%s7665_s19 + $0xb8] sm:$0xff] %vm293_vm2, %v387_v48  ;;  %v4530_v1 = vld [vmem:[#allocation7 + $0xd8] sm:$0xf]  ;;  %v4884_v32 = vld [vmem:[#allocation7 + $0x3b8] sm:$0xf0] }
  0xde   :  { %2121 = vmatpush.bf16.msra.mxu2 %v4659_v17  ;;  %2134 = vmatpush.bf16.msra.mxu3 %v4915_v18  ;;  %v6015_v17 = vld [vmem:[#allocation7 + $0xf4] sm:$0xf0]  ;;  %v4887_v4 = vor.u32 %v6099_v63, %v4884_v32 }
  0xdf   :  { %2077 = vmatmul.bf16.vlgmr.msrb.gmra.mxu2 %v6747_v40  ;;  %2090 = vmatmul.bf16.vlgmr.msrb.gmra.mxu3 %v6749_v41  ;;  %v348_v34 = vpop.f32.mrf.mxu2  ;;  %v389_v3 = vpop.f32.mrf.mxu3  ;;  %v4786_v18 = vld [vmem:[#allocation7 + $0x2d8] sm:$0xf]  ;;  %v4531_v29 = vor.u32 %v6015_v17, %v4530_v1 }
  0xe0   :  { %v349_v5 = vadd.f32 %v348_v34, %v6796_v31  ;;  %v245_v9 = vpop.f32.mrf.mxu0  ;;  %v286_v10 = vpop.f32.mrf.mxu1  ;;  %v390_v16 = vadd.f32 %v389_v3, %v6796_v31  ;;  %v4498_v31 = vld [vmem:[#allocation7 + $0x98] sm:$0xf]  ;;  %v4787_v33 = vor.u32 %v6079_v19, %v4786_v18 }
  0xe1   :  { %2098 = vmatpush.bf16.msra.mxu0 %v4559_v27  ;;  %2111 = vmatpush.bf16.msra.mxu1 %v4815_v28  ;;  %v246_v14 = vadd.f32 %v245_v9, %v6851_v0  ;;  %v287_v15 = vadd.f32 %v286_v10, %v6851_v0  ;;  %v4719_v27 = vor.u32 %v6058_v11, %v4716_v12  ;;  %v4684_v28 = vld [vmem:[#allocation7 + $0x230] sm:$0xf0]  ;;  %v4690_v3 = vld [vmem:[#allocation7 + $0x218] sm:$0xf]  ;;  %v6091_v9 = vld [vmem:[#allocation7 + $0x35c] sm:$0xf] }
  0xe2   :  { %2122 = vmatpush.bf16.msra.mxu2 %v4627_v13  ;;  %2135 = vmatpush.bf16.msra.mxu3 %v4883_v30  ;;  %4080 = vst [vmem:[%s7665_s19 + $0xc0] sm:$0xff] %v349_v5  ;;  %v6071_v13 = vld [vmem:[#allocation7 + $0x2b4] sm:$0xf0]  ;;  %v6043_v30 = vld [vmem:[#allocation7 + $0x1dc] sm:$0xf]  ;;  %v4687_v21 = vor.u32 %v6050_v25, %v4684_v28  ;;  %v4499_v47 = vor.u32 %v6007_v53, %v4498_v31 }
  0xe3   :  { %305 = vst [vmem:[%s7665_s19 + $0x60] sm:$0xff] %v246_v14  ;;  %v4755_v50 = vor.u32 %v6071_v13, %v4754_v35  ;;  %v4663_v58 = vor.u32 %v6043_v30, %v4660_v36  ;;  %v6055_v5 = vld [vmem:[#allocation7 + $0x234] sm:$0xf0]  ;;  %v4852_v10 = vld [vmem:[#allocation7 + $0x378] sm:$0xf0] }
  0xe4   :  { %306 = vst.msk [vmem:[%s7665_s19 + $0x68] sm:$0xff] %vm293_vm2, %v287_v15  ;;  %v5146_v11 = vld [vmem:[#allocation5 + $0x1c0] sm:$0xf]  ;;  %v4691_v19 = vor.u32 %v6055_v5, %v4690_v3  ;;  %v4855_v28 = vor.u32 %v6091_v9, %v4852_v10  ;;  %v4564_v31 = vld [vmem:[#allocation7 + $0x138] sm:$0xf0] }
  0xe5   :  { %2099 = vmatpush.bf16.msra.mxu0 %v4527_v42  ;;  %2112 = vmatpush.bf16.msra.mxu1 %v4783_v56  ;;  %4081 = vst.msk [vmem:[%s7665_s19 + $0xc8] sm:$0xff] %vm293_vm2, %v390_v16  ;;  %v4466_v42 = vld [vmem:[#allocation7 + $0x58] sm:$0xf]  ;;  %v5916_v14 = vld [vmem:[#allocation5 + $0x1dc] sm:$0xf0] }
  0xe6   :  { %2123 = vmatpush.bf16.msra.mxu2 %v4595_v59  ;;  %2136 = vmatpush.bf16.msra.mxu3 %v4851_v60  ;;  %v5999_v56 = vld [vmem:[#allocation7 + $0x74] sm:$0xf0]  ;;  %v4919_v59 = vor.u32 %v6107_v37, %v4916_v38  ;;  %v5402_v15 = vld [vmem:[#allocation5 + $0x3c0] sm:$0xf]  ;;  %v5147_v53 = vor.u32 %v5916_v14, %v5146_v11  ;;  %v6067_v3 = vld [vmem:[#allocation7 + $0x29c] sm:$0xf] }
  0xe7   :  { %v351_v6 = vpop.f32.mrf.mxu2  ;;  %v392_v48 = vpop.f32.mrf.mxu3  ;;  %v6063_v60 = vld [vmem:[#allocation7 + $0x274] sm:$0xf0]  ;;  %v5980_v16 = vld [vmem:[#allocation5 + $0x3dc] sm:$0xf0] }
  0xe8   :  { %v352_v49 = vadd.f32 %v351_v6, %v6825_v23  ;;  %v6872_v51 = vpop.f32.mrf.mxu0  ;;  %v6874_v54 = vpop.f32.mrf.mxu1  ;;  %v393_v55 = vadd.f32 %v392_v48, %v6825_v23  ;;  %v4467_v23 = vor.u32 %v5999_v56, %v4466_v42  ;;  %v4723_v34 = vor.u32 %v6063_v60, %v4722_v57  ;;  %v5114_v13 = vld [vmem:[#allocation5 + $0x180] sm:$0xf]  ;;  %v6900_v37 = vld [vmem:[%s7693_s1] sm:$0x3] }
  0xe9   :  { %2100 = vmatpush.bf16.msra.mxu0 %v4495_v2  ;;  %2113 = vmatpush.bf16.msra.mxu1 %v4751_v22  ;;  %v4434_v2 = vld [vmem:[#allocation7 + $0x18] sm:$0xf]  ;;  %v5403_v35 = vor.u32 %v5980_v16, %v5402_v15  ;;  %v5908_v30 = vld [vmem:[#allocation5 + $0x19c] sm:$0xf0]  ;;  %v522_v62 = vperm.slane %v6900_v37, 0 }
  0xea   :  { %2124 = vmatpush.bf16.msra.mxu2 %v4563_v7  ;;  %2137 = vmatpush.bf16.msra.mxu3 %v4819_v8  ;;  %4082 = vst [vmem:[%s7665_s19 + $0xd0] sm:$0xff] %v352_v49  ;;  %v5991_v22 = vld [vmem:[#allocation7 + $0x34] sm:$0xf0]  ;;  %v6027_v7 = vld [vmem:[#allocation7 + $0x15c] sm:$0xf] }
  0xeb   :  { %4083 = vst.msk [vmem:[%s7665_s19 + $0xd8] sm:$0xff] %vm293_vm2, %v393_v55  ;;  %v4596_v8 = vld [vmem:[#allocation7 + $0x178] sm:$0xf0]  ;;  %v4435_v1 = vor.u32 %v5991_v22, %v4434_v2  ;;  %v5972_v36 = vld [vmem:[#allocation5 + $0x39c] sm:$0xf0] }
  0xec   :  { %v6075_v49 = vld [vmem:[#allocation7 + $0x2dc] sm:$0xf]  ;;  %v5082_v55 = vld [vmem:[#allocation5 + $0x140] sm:$0xf] }
  0xed   :  { %2101 = vmatpush.bf16.msra.mxu0 %v4463_v26  ;;  %2114 = vmatpush.bf16.msra.mxu1 %v4719_v27  ;;  %v6019_v26 = vld [vmem:[#allocation7 + $0x11c] sm:$0xf]  ;;  %v4599_v27 = vor.u32 %v6027_v7, %v4596_v8  ;;  %v5900_v56 = vld [vmem:[#allocation5 + $0x15c] sm:$0xf0] }
  0xee   :  { %2125 = vmatpush.bf16.msra.mxu2 %v4531_v29  ;;  %2138 = vmatpush.bf16.msra.mxu3 %v4787_v33  ;;  %v6083_v29 = vld [vmem:[#allocation7 + $0x31c] sm:$0xf]  ;;  %v4567_v38 = vor.u32 %v6019_v26, %v4564_v31  ;;  %v5338_v57 = vld [vmem:[#allocation5 + $0x340] sm:$0xf]  ;;  %v5083_v2 = vor.u32 %v5900_v56, %v5082_v55  ;;  %v5404_v55 = vld [vmem:[#allocation5 + $0x3e0] sm:$0xf0] }
  0xef   :  { %v354_v12 = vpop.f32.mrf.mxu2  ;;  %v395_v17 = vpop.f32.mrf.mxu3  ;;  %v4820_v33 = vld [vmem:[#allocation7 + $0x338] sm:$0xf0]  ;;  %v5892_v5 = vld [vmem:[#allocation5 + $0x11c] sm:$0xf0] }
  0xf0   :  { %v355_v18 = vadd.f32 %v354_v12, %v6851_v0  ;;  %v396_v20 = vadd.f32 %v395_v17, %v6851_v0  ;;  %v935_v24 = vpop.f32.mrf.mxu0  ;;  %v6888_v25 = vpop.f32.mrf.mxu1  ;;  %v5370_v0 = vld [vmem:[#allocation5 + $0x380] sm:$0xf]  ;;  %v4823_v6 = vor.u32 %v6083_v29, %v4820_v33  ;;  %v5995_v12 = vld [vmem:[#allocation7 + $0x5c] sm:$0xf] }
  0xf1   :  { %2102 = vmatpush.bf16.msra.mxu0 %v4431_v39  ;;  %2115 = vmatpush.bf16.msra.mxu1 %v4687_v21  ;;  %v6011_v39 = vld [vmem:[#allocation7 + $0xdc] sm:$0xf]  ;;  %v5371_v48 = vor.u32 %v5972_v36, %v5370_v0  ;;  %v5306_v7 = vld [vmem:[#allocation5 + $0x300] sm:$0xf]  ;;  %v936_v9 = vadd.f32 %v935_v24, %v522_v62 }
  0xf2   :  { %2126 = vmatpush.bf16.msra.mxu2 %v4499_v47  ;;  %2139 = vmatpush.bf16.msra.mxu3 %v4755_v50  ;;  %4084 = vst [vmem:[%s7665_s19 + $0xe0] sm:$0xff] %v355_v18  ;;  %v4532_v21 = vld [vmem:[#allocation7 + $0xf8] sm:$0xf0]  ;;  %v5115_v47 = vor.u32 %v5908_v30, %v5114_v13  ;;  %v5956_v8 = vld [vmem:[#allocation5 + $0x31c] sm:$0xf0] }
  0xf3   :  { %4085 = vst.msk [vmem:[%s7665_s19 + $0xe8] sm:$0xff] %vm293_vm2, %v396_v20  ;;  %v4788_v50 = vld [vmem:[#allocation7 + $0x2f8] sm:$0xf0]  ;;  %v4535_v63 = vor.u32 %v6011_v39, %v4532_v21  ;;  %v5307_v15 = vor.u32 %v5956_v8, %v5306_v7  ;;  %v5018_v18 = vld [vmem:[#allocation5 + $0xc0] sm:$0xf]  ;;  %v949_v29 = vadd.f32 %v6888_v25, %v936_v9 }
  0xf4   :  { %2103 = vmatmul.bf16.vlgmr.msra.gmra.mxu0 %v6747_v40  ;;  %2116 = vmatmul.bf16.vlgmr.msra.gmra.mxu1 %v6749_v41  ;;  %v4791_v32 = vor.u32 %v6075_v49, %v4788_v50  ;;  %v6059_v16 = vld [vmem:[#allocation7 + $0x25c] sm:$0xf]  ;;  %v5884_v20 = vld [vmem:[#allocation5 + $0xdc] sm:$0xf0]  ;;  %v5912_v49 = vld [vmem:[#allocation5 + $0x1c4] sm:$0xf] }
  0xf5   :  { %2147 = vmatpush.bf16.msrb.mxu0 %v4663_v58  ;;  %2160 = vmatpush.bf16.msrb.mxu1 %v4919_v59  ;;  %v5964_v58 = vld [vmem:[#allocation5 + $0x35c] sm:$0xf0]  ;;  %v4724_v17 = vld [vmem:[#allocation7 + $0x278] sm:$0xf0]  ;;  %v5019_v0 = vor.u32 %v5884_v20, %v5018_v18  ;;  %v5148_v50 = vld [vmem:[#allocation5 + $0x1e0] sm:$0xf0] }
  0xf6   :  { %2127 = vmatpush.bf16.msra.mxu2 %v4467_v23  ;;  %2140 = vmatpush.bf16.msra.mxu3 %v4723_v34  ;;  %v6003_v23 = vld [vmem:[#allocation7 + $0x9c] sm:$0xf]  ;;  %v5339_v22 = vor.u32 %v5964_v58, %v5338_v57  ;;  %v5274_v26 = vld [vmem:[#allocation5 + $0x2c0] sm:$0xf]  ;;  %v5976_v25 = vld [vmem:[#allocation5 + $0x3c4] sm:$0xf] }
  0xf7   :  { %v6902_v42 = vpop.f32.mrf.mxu2  ;;  %v6904_v59 = vpop.f32.mrf.mxu3  ;;  %v4500_v34 = vld [vmem:[#allocation7 + $0xb8] sm:$0xf0]  ;;  %v5876_v39 = vld [vmem:[#allocation5 + $0x9c] sm:$0xf0]  ;;  %v5968_v7 = vld [vmem:[#allocation5 + $0x384] sm:$0xf] }
  0xf8   :  { %v937_v60 = vpop.f32.mrf.mxu0  ;;  %v950_v61 = vpop.f32.mrf.mxu1  ;;  %v4503_v10 = vor.u32 %v6003_v23, %v4500_v34  ;;  %v4436_v13 = vld [vmem:[#allocation7 + $0x38] sm:$0xf0]  ;;  %v4954_v62 = vld [vmem:[#allocation5 + $0x40] sm:$0xf]  ;;  %v5151_v23 = vor.u32 %v5912_v49, %v5148_v50  ;;  %v5407_v34 = vor.u32 %v5976_v25, %v5404_v55  ;;  %v5372_v8 = vld [vmem:[#allocation5 + $0x3a0] sm:$0xf0] }
  0xf9   :  { %2148 = vmatpush.bf16.msrb.mxu0 %v4631_v52  ;;  %2161 = vmatpush.bf16.msrb.mxu1 %v4887_v4  ;;  %v4756_v52 = vld [vmem:[#allocation7 + $0x2b8] sm:$0xf0]  ;;  %v5050_v4 = vld [vmem:[#allocation5 + $0x100] sm:$0xf]  ;;  %v523_v61 = vperm.slane %v6900_v37, 1 }
  0xfa   :  { %2128 = vmatpush.bf16.msra.mxu2 %v4435_v1  ;;  %2141 = vmatpush.bf16.msra.mxu3 %v4691_v19  ;;  %v4759_v11 = vor.u32 %v6067_v3, %v4756_v52  ;;  %v4468_v1 = vld [vmem:[#allocation7 + $0x78] sm:$0xf0]  ;;  %v5051_v14 = vor.u32 %v5892_v5, %v5050_v4  ;;  %v5932_v3 = vld [vmem:[#allocation5 + $0x25c] sm:$0xf0]  ;;  %v5904_v4 = vld [vmem:[#allocation5 + $0x184] sm:$0xf] }
  0xfb   :  { %v4471_v33 = vor.u32 %v5995_v12, %v4468_v1  ;;  %v6051_v30 = vld [vmem:[#allocation7 + $0x21c] sm:$0xf]  ;;  %v5116_v5 = vld [vmem:[#allocation5 + $0x1a0] sm:$0xf0]  ;;  %v4922_v12 = vld [vmem:[#allocation5] sm:$0xf] }
  0xfc   :  { %v5860_v1 = vld [vmem:[#allocation5 + $0x1c] sm:$0xf0]  ;;  %v5084_v20 = vld [vmem:[#allocation5 + $0x160] sm:$0xf0]  ;;  %v5122_v49 = vld [vmem:[#allocation5 + $0x188] sm:$0xf] }
  0xfd   :  { %2149 = vmatpush.bf16.msrb.mxu0 %v4599_v27  ;;  %2162 = vmatpush.bf16.msrb.mxu1 %v4855_v28  ;;  %v5948_v27 = vld [vmem:[#allocation5 + $0x2dc] sm:$0xf0]  ;;  %v5909_v50 = vld [vmem:[#allocation5 + $0x1a4] sm:$0xf0] }
  0xfe   :  { %2813 = vmatpush.bf16.msrb.mxu2 %v5147_v53  ;;  %2826 = vmatpush.bf16.msrb.mxu3 %v5403_v35  ;;  %v4727_v53 = vor.u32 %v6059_v16, %v4724_v17  ;;  %v5987_v35 = vld [vmem:[#allocation7 + $0x1c] sm:$0xf]  ;;  %v5275_v36 = vor.u32 %v5948_v27, %v5274_v26  ;;  %v5119_v16 = vor.u32 %v5904_v4, %v5116_v5  ;;  %v5924_v18 = vld [vmem:[#allocation5 + $0x21c] sm:$0xf0]  ;;  %v5960_v27 = vld [vmem:[#allocation5 + $0x344] sm:$0xf] }
  0xff   :  { %2129 = vmatmul.bf16.vlgmr.msra.gmra.mxu2 %v6747_v40  ;;  %2142 = vmatmul.bf16.vlgmr.msra.gmra.mxu3 %v6749_v41  ;;  %v961_v19 = vpop.f32.mrf.mxu2  ;;  %v974_v28 = vpop.f32.mrf.mxu3  ;;  %v4439_v56 = vor.u32 %v5987_v35, %v4436_v13  ;;  %v5375_v17 = vor.u32 %v5968_v7, %v5372_v8  ;;  %v5981_v35 = vld [vmem:[#allocation5 + $0x3e4] sm:$0xf0] }
 0x100   :  { %v987_v31 = vpop.f32.mrf.mxu0  ;;  %v6909_v24 = vpop.f32.mrf.mxu1  ;;  %v962_v21 = vadd.f32 %v961_v19, %v949_v29  ;;  %v5896_v19 = vld [vmem:[#allocation5 + $0x144] sm:$0xf]  ;;  %v5154_v29 = vld [vmem:[#allocation5 + $0x1c8] sm:$0xf] }
 0x101   :  { %2150 = vmatpush.bf16.msrb.mxu0 %v4567_v38  ;;  %2163 = vmatpush.bf16.msrb.mxu1 %v4823_v6  ;;  %v4692_v38 = vld [vmem:[#allocation7 + $0x238] sm:$0xf0]  ;;  %v4986_v6 = vld [vmem:[#allocation5 + $0x80] sm:$0xf]  ;;  %v1001_v26 = vadd.f32 %v6909_v24, %v523_v61  ;;  %v5378_v25 = vld [vmem:[#allocation5 + $0x388] sm:$0xf] }
 0x102   :  { %2814 = vmatpush.bf16.msrb.mxu2 %v5115_v47  ;;  %2827 = vmatpush.bf16.msrb.mxu3 %v5371_v48  ;;  %v5242_v47 = vld [vmem:[#allocation5 + $0x280] sm:$0xf]  ;;  %v4695_v57 = vor.u32 %v6051_v30, %v4692_v38  ;;  %v4987_v58 = vor.u32 %v5876_v39, %v4986_v6  ;;  %v5888_v6 = vld [vmem:[#allocation5 + $0x104] sm:$0xf]  ;;  %v5973_v55 = vld [vmem:[#allocation5 + $0x3a4] sm:$0xf0] }
 0x103   :  { %v5940_v48 = vld [vmem:[#allocation5 + $0x29c] sm:$0xf0]  ;;  %v5052_v39 = vld [vmem:[#allocation5 + $0x120] sm:$0xf0]  ;;  %v5901_v4 = vld [vmem:[#allocation5 + $0x164] sm:$0xf0] }
 0x104   :  { %v5243_v60 = vor.u32 %v5940_v48, %v5242_v47  ;;  %v5308_v48 = vld [vmem:[#allocation5 + $0x320] sm:$0xf0]  ;;  %v5055_v61 = vor.u32 %v5888_v6, %v5052_v39  ;;  %v5346_v5 = vld [vmem:[#allocation5 + $0x348] sm:$0xf] }
 0x105   :  { %2151 = vmatpush.bf16.msrb.mxu0 %v4535_v63  ;;  %2164 = vmatpush.bf16.msrb.mxu1 %v4791_v32  ;;  %v5868_v63 = vld [vmem:[#allocation5 + $0x5c] sm:$0xf0]  ;;  %v975_v32 = vadd.f32 %v974_v28, %v962_v21  ;;  %v5340_v28 = vld [vmem:[#allocation5 + $0x360] sm:$0xf0]  ;;  %v5965_v7 = vld [vmem:[#allocation5 + $0x364] sm:$0xf0] }
 0x106   :  { %2815 = vmatpush.bf16.msrb.mxu2 %v5083_v2  ;;  %2828 = vmatpush.bf16.msrb.mxu3 %v5339_v22  ;;  %v5210_v22 = vld [vmem:[#allocation5 + $0x240] sm:$0xf]  ;;  %v4955_v37 = vor.u32 %v5868_v63, %v4954_v62  ;;  %v5880_v63 = vld [vmem:[#allocation5 + $0xc4] sm:$0xf]  ;;  %v5885_v6 = vld [vmem:[#allocation5 + $0xe4] sm:$0xf0] }
 0x107   :  { %v963_v2 = vpop.f32.mrf.mxu2  ;;  %v976_v52 = vpop.f32.mrf.mxu3  ;;  %v5282_v39 = vld [vmem:[#allocation5 + $0x2c8] sm:$0xf] }
 0x108   :  { %v989_v9 = vpop.f32.mrf.mxu0  ;;  %v5090_v52 = vld [vmem:[#allocation5 + $0x148] sm:$0xf] }
 0x109   :  { %2152 = vmatpush.bf16.msrb.mxu0 %v4503_v10  ;;  %2165 = vmatpush.bf16.msrb.mxu1 %v4759_v11  ;;  %v1002_v10 = vpop.f32.mrf.mxu1  ;;  %v5211_v11 = vor.u32 %v5932_v3, %v5210_v22  ;;  %v5944_v22 = vld [vmem:[#allocation5 + $0x2c4] sm:$0xf] }
 0x10a   :  { %2816 = vmatpush.bf16.msrb.mxu2 %v5051_v14  ;;  %2829 = vmatpush.bf16.msrb.mxu3 %v5307_v15  ;;  %v5178_v14 = vld [vmem:[#allocation5 + $0x200] sm:$0xf]  ;;  %v988_v15 = vadd.f32 %v987_v31, %v975_v32  ;;  %v4923_v31 = vor.u32 %v5860_v1, %v4922_v12  ;;  %v5020_v32 = vld [vmem:[#allocation5 + $0xe0] sm:$0xf0] }
 0x10b   :  { %v5179_v13 = vor.u32 %v5924_v18, %v5178_v14  ;;  %v5276_v3 = vld [vmem:[#allocation5 + $0x2e0] sm:$0xf0]  ;;  %v5023_v9 = vor.u32 %v5880_v63, %v5020_v32  ;;  %v5156_v63 = vld [vmem:[#allocation5 + $0x1e8] sm:$0xf0] }
 0x10c   :  { %v1056_v30 = vmax.f32 %v988_v15, 0.0  ;;  %v5279_v10 = vor.u32 %v5944_v22, %v5276_v3  ;;  %v5936_v12 = vld [vmem:[#allocation5 + $0x284] sm:$0xf]  ;;  %v5977_v32 = vld [vmem:[#allocation5 + $0x3cc] sm:$0xf] }
 0x10d   :  { %2153 = vmatpush.bf16.msrb.mxu0 %v4471_v33  ;;  %2166 = vmatpush.bf16.msrb.mxu1 %v4727_v53  ;;  %v5917_v33 = vld [vmem:[#allocation5 + $0x1e4] sm:$0xf0]  ;;  %v5244_v18 = vld [vmem:[#allocation5 + $0x2a0] sm:$0xf0] }
 0x10e   :  { %2817 = vmatpush.bf16.msrb.mxu2 %v5019_v0  ;;  %2830 = vmatpush.bf16.msrb.mxu3 %v5275_v36  ;;  %v5410_v53 = vld [vmem:[#allocation5 + $0x3c8] sm:$0xf]  ;;  %v5087_v0 = vor.u32 %v5896_v19, %v5084_v20  ;;  %v5343_v36 = vor.u32 %v5960_v27, %v5340_v28  ;;  %v5155_v21 = vor.u32 %v5917_v33, %v5154_v29 }
 0x10f   :  { %v1013_v24 = vpop.f32.mrf.mxu2  ;;  %v1026_v38 = vpop.f32.mrf.mxu3  ;;  %v5058_v19 = vld [vmem:[#allocation5 + $0x108] sm:$0xf] }
 0x110   :  { %v1014_v47 = vadd.f32 %v1013_v24, %v1001_v26  ;;  %v5893_v20 = vld [vmem:[#allocation5 + $0x124] sm:$0xf0]  ;;  %v5212_v24 = vld [vmem:[#allocation5 + $0x260] sm:$0xf0] }
 0x111   :  { %2154 = vmatpush.bf16.msrb.mxu0 %v4439_v56  ;;  %2167 = vmatpush.bf16.msrb.mxu1 %v4695_v57  ;;  %v1039_v56 = vpop.f32.mrf.mxu0  ;;  %v1052_v57 = vpop.f32.mrf.mxu1  ;;  %v5314_v26 = vld [vmem:[#allocation5 + $0x308] sm:$0xf] }
 0x112   :  { %2818 = vmatpush.bf16.msrb.mxu2 %v4987_v58  ;;  %2831 = vmatpush.bf16.msrb.mxu3 %v5243_v60  ;;  %v1027_v58 = vadd.f32 %v1026_v38, %v1014_v47  ;;  %v6916_v60 = vpack.c.bf16 %v1056_v30, %v1056_v30  ;;  %v5957_v27 = vld [vmem:[#allocation5 + $0x324] sm:$0xf0]  ;;  %v5059_v30 = vor.u32 %v5893_v20, %v5058_v19 }
 0x113   :  { %v5026_v38 = vld [vmem:[#allocation5 + $0xc8] sm:$0xf] }
 0x114   :  { %2155 = vmatmul.bf16.vlgmr.msrb.gmra.mxu0 %v6747_v40  ;;  %2168 = vmatmul.bf16.vlgmr.msrb.gmra.mxu1 %v6749_v41  ;;  %v5411_v40 = vor.u32 %v5981_v35, %v5410_v53  ;;  %v5952_v41 = vld [vmem:[#allocation5 + $0x304] sm:$0xf]  ;;  %v1040_v2 = vadd.f32 %v1039_v56, %v1027_v58  ;;  %v5247_v35 = vor.u32 %v5936_v12, %v5244_v18  ;;  %v4994_v56 = vld [vmem:[#allocation5 + $0x88] sm:$0xf]  ;;  %v5380_v12 = vld [vmem:[#allocation5 + $0x3a8] sm:$0xf0] }
 0x115   :  { %2839 = vmatpush.bf16.msra.mxu0 %v5151_v23  ;;  %2852 = vmatpush.bf16.msra.mxu1 %v5407_v34  ;;  %v5311_v62 = vor.u32 %v5952_v41, %v5308_v48  ;;  %v5123_v23 = vor.u32 %v5909_v50, %v5122_v49  ;;  %v5379_v34 = vor.u32 %v5973_v55, %v5378_v25  ;;  %v5856_v41 = vld [vmem:[#allocation5 + $0x4] sm:$0xf]  ;;  %v5250_v58 = vld [vmem:[#allocation5 + $0x288] sm:$0xf] }
 0x116   :  { %2819 = vmatpush.bf16.msrb.mxu2 %v4955_v37  ;;  %2832 = vmatpush.bf16.msrb.mxu3 %v5211_v11  ;;  %v1053_v8 = vadd.f32 %v1052_v57, %v1040_v2  ;;  %v5872_v37 = vld [vmem:[#allocation5 + $0x84] sm:$0xf]  ;;  %v5027_v50 = vor.u32 %v5885_v6, %v5026_v38  ;;  %v5877_v57 = vld [vmem:[#allocation5 + $0xa4] sm:$0xf0] }
 0x117   :  { %v4988_v11 = vld [vmem:[#allocation5 + $0xa0] sm:$0xf0]  ;;  %v1015_v1 = vpop.f32.mrf.mxu2  ;;  %v1028_v14 = vpop.f32.mrf.mxu3  ;;  %v4995_v22 = vor.u32 %v5877_v57, %v4994_v56  ;;  %v5186_v18 = vld [vmem:[#allocation5 + $0x208] sm:$0xf]  ;;  %v5974_v56 = vld [vmem:[#allocation5 + $0x3ac] sm:$0xf0] }
 0x118   :  { %v1057_v15 = vmax.f32 %v1053_v8, 0.0  ;;  %v4991_v53 = vor.u32 %v5872_v37, %v4988_v11  ;;  %v4924_v48 = vld [vmem:[#allocation5 + $0x20] sm:$0xf0]  ;;  %v5218_v8 = vld [vmem:[#allocation5 + $0x248] sm:$0xf] }
 0x119   :  { %2840 = vmatpush.bf16.msra.mxu0 %v5119_v16  ;;  %2853 = vmatpush.bf16.msra.mxu1 %v5375_v17  ;;  %v5091_v16 = vor.u32 %v5901_v4, %v5090_v52  ;;  %v5347_v17 = vor.u32 %v5965_v7, %v5346_v5  ;;  %v1041_v28 = vpop.f32.mrf.mxu0  ;;  %v1054_v29 = vpop.f32.mrf.mxu1  ;;  %v5920_v49 = vld [vmem:[#allocation5 + $0x204] sm:$0xf]  ;;  %v4962_v52 = vld [vmem:[#allocation5 + $0x48] sm:$0xf]  ;;  %v5124_v37 = vld [vmem:[#allocation5 + $0x1a8] sm:$0xf0] }
 0x11a   :  { %2820 = vmatpush.bf16.msrb.mxu2 %v4923_v31  ;;  %2833 = vmatpush.bf16.msrb.mxu3 %v5179_v13  ;;  %v6919_v33 = vpack.c.bf16 %v1057_v15, %v1057_v15  ;;  %v5864_v31 = vld [vmem:[#allocation5 + $0x44] sm:$0xf]  ;;  %v5869_v4 = vld [vmem:[#allocation5 + $0x64] sm:$0xf0]  ;;  %v5969_v11 = vld [vmem:[#allocation5 + $0x38c] sm:$0xf] }
 0x11b   :  { %v4956_v13 = vld [vmem:[#allocation5 + $0x60] sm:$0xf0]  ;;  %v4963_v14 = vor.u32 %v5869_v4, %v4962_v52  ;;  %v5897_v28 = vld [vmem:[#allocation5 + $0x14c] sm:$0xf] }
 0x11c   :  { %v5180_v55 = vld [vmem:[#allocation5 + $0x220] sm:$0xf0]  ;;  %v5092_v29 = vld [vmem:[#allocation5 + $0x168] sm:$0xf0] }
 0x11d   :  { %2841 = vmatpush.bf16.msra.mxu0 %v5087_v0  ;;  %2854 = vmatpush.bf16.msra.mxu1 %v5343_v36  ;;  %v5315_v0 = vor.u32 %v5957_v27, %v5314_v26  ;;  %v5928_v36 = vld [vmem:[#allocation5 + $0x244] sm:$0xf]  ;;  %v5183_v2 = vor.u32 %v5920_v49, %v5180_v55  ;;  %v5383_v26 = vor.u32 %v5969_v11, %v5380_v12  ;;  %v5925_v27 = vld [vmem:[#allocation5 + $0x224] sm:$0xf0]  ;;  %v5316_v49 = vld [vmem:[#allocation5 + $0x328] sm:$0xf0] }
 0x11e   :  { %2865 = vmatpush.bf16.msra.mxu2 %v5155_v21  ;;  %2878 = vmatpush.bf16.msra.mxu3 %v5411_v40  ;;  %v5949_v21 = vld [vmem:[#allocation5 + $0x2e4] sm:$0xf0]  ;;  %v4959_v40 = vor.u32 %v5864_v31, %v4956_v13  ;;  %v5215_v47 = vor.u32 %v5928_v36, %v5212_v24  ;;  %v5348_v31 = vld [vmem:[#allocation5 + $0x368] sm:$0xf0]  ;;  %v5162_v13 = vld [vmem:[#allocation5 + $0x1d0] sm:$0xf]  ;;  %v5187_v38 = vor.u32 %v5925_v27, %v5186_v18 }
 0x11f   :  { %2821 = vmatmul.bf16.vlgmr.msrb.gmra.mxu2 %v6916_v60  ;;  %2834 = vmatmul.bf16.vlgmr.msrb.gmra.mxu3 %v6919_v33  ;;  %v5283_v25 = vor.u32 %v5949_v21, %v5282_v39  ;;  %v5982_v36 = vld [vmem:[#allocation5 + $0x3ec] sm:$0xf0]  ;;  %v5095_v6 = vor.u32 %v5897_v28, %v5092_v29  ;;  %v5889_v21 = vld [vmem:[#allocation5 + $0x10c] sm:$0xf] }
 0x120   :  { %v5386_v55 = vld [vmem:[#allocation5 + $0x390] sm:$0xf]  ;;  %v5945_v52 = vld [vmem:[#allocation5 + $0x2cc] sm:$0xf] }
 0x121   :  { %2842 = vmatpush.bf16.msra.mxu0 %v5055_v61  ;;  %2855 = vmatpush.bf16.msra.mxu1 %v5311_v62  ;;  %v5941_v61 = vld [vmem:[#allocation5 + $0x2a4] sm:$0xf0]  ;;  %v5913_v62 = vld [vmem:[#allocation5 + $0x1cc] sm:$0xf]  ;;  %v5894_v18 = vld [vmem:[#allocation5 + $0x12c] sm:$0xf0] }
 0x122   :  { %2866 = vmatpush.bf16.msra.mxu2 %v5123_v23  ;;  %2879 = vmatpush.bf16.msra.mxu3 %v5379_v34  ;;  %v5412_v23 = vld [vmem:[#allocation5 + $0x3e8] sm:$0xf0]  ;;  %v4927_v34 = vor.u32 %v5856_v41, %v4924_v48  ;;  %v5251_v3 = vor.u32 %v5941_v61, %v5250_v58  ;;  %v5159_v5 = vor.u32 %v5913_v62, %v5156_v63  ;;  %v1974_v1 = vpop.f32.mrf.mxu2  ;;  %v1987_v19 = vpop.f32.mrf.mxu3 }
 0x123   :  { %v5415_v7 = vor.u32 %v5977_v32, %v5412_v23  ;;  %v5953_v48 = vld [vmem:[#allocation5 + $0x30c] sm:$0xf] }
 0x124   :  { %v5319_v23 = vor.u32 %v5953_v48, %v5316_v49  ;;  %v5284_v4 = vld [vmem:[#allocation5 + $0x2e8] sm:$0xf0] }
 0x125   :  { %2843 = vmatpush.bf16.msra.mxu0 %v5023_v9  ;;  %2856 = vmatpush.bf16.msra.mxu1 %v5279_v10  ;;  %v5933_v9 = vld [vmem:[#allocation5 + $0x264] sm:$0xf0]  ;;  %v5905_v10 = vld [vmem:[#allocation5 + $0x18c] sm:$0xf] }
 0x126   :  { %2867 = vmatpush.bf16.msra.mxu2 %v5091_v16  ;;  %2880 = vmatpush.bf16.msra.mxu3 %v5347_v17  ;;  %v5219_v15 = vor.u32 %v5933_v9, %v5218_v8  ;;  %v4930_v16 = vld [vmem:[#allocation5 + $0x8] sm:$0xf]  ;;  %v5127_v20 = vor.u32 %v5905_v10, %v5124_v37  ;;  %v5354_v8 = vld [vmem:[#allocation5 + $0x350] sm:$0xf]  ;;  %v5287_v37 = vor.u32 %v5945_v52, %v5284_v4  ;;  %v5873_v11 = vld [vmem:[#allocation5 + $0x8c] sm:$0xf] }
 0x127   :  { %v5861_v17 = vld [vmem:[#allocation5 + $0x24] sm:$0xf0]  ;;  %v5966_v9 = vld [vmem:[#allocation5 + $0x36c] sm:$0xf0]  ;;  %v4996_v12 = vld [vmem:[#allocation5 + $0xa8] sm:$0xf0] }
 0x128   :  { %v4931_v24 = vor.u32 %v5861_v17, %v4930_v16  ;;  %v5252_v16 = vld [vmem:[#allocation5 + $0x2a8] sm:$0xf0]  ;;  %v5066_v17 = vld [vmem:[#allocation5 + $0x110] sm:$0xf]  ;;  %v4999_v28 = vor.u32 %v5873_v11, %v4996_v12  ;;  %v5970_v11 = vld [vmem:[#allocation5 + $0x394] sm:$0xf] }
 0x129   :  { %2844 = vmatpush.bf16.msra.mxu0 %v4991_v53  ;;  %2857 = vmatpush.bf16.msra.mxu1 %v5247_v35  ;;  %v6922_v53 = vadd.f32 %v1987_v19, %v1974_v1  ;;  %v5961_v35 = vld [vmem:[#allocation5 + $0x34c] sm:$0xf]  ;;  %v5322_v19 = vld [vmem:[#allocation5 + $0x310] sm:$0xf]  ;;  %v5388_v12 = vld [vmem:[#allocation5 + $0x3b0] sm:$0xf0] }
 0x12a   :  { %2868 = vmatpush.bf16.msra.mxu2 %v5059_v30  ;;  %2881 = vmatpush.bf16.msra.mxu3 %v5315_v0  ;;  %v5918_v30 = vld [vmem:[#allocation5 + $0x1ec] sm:$0xf0]  ;;  %v5351_v39 = vor.u32 %v5961_v35, %v5348_v31  ;;  %v1976_v62 = vpop.f32.mrf.mxu2  ;;  %v1989_v63 = vpop.f32.mrf.mxu3  ;;  %v5865_v35 = vld [vmem:[#allocation5 + $0x4c] sm:$0xf] }
 0x12b   :  { %v5418_v0 = vld [vmem:[#allocation5 + $0x3d0] sm:$0xf]  ;;  %v4964_v31 = vld [vmem:[#allocation5 + $0x68] sm:$0xf0]  ;;  %v5914_v62 = vld [vmem:[#allocation5 + $0x1d4] sm:$0xf] }
 0x12c   :  { %v5419_v41 = vor.u32 %v5982_v36, %v5418_v0  ;;  %v5929_v0 = vld [vmem:[#allocation5 + $0x24c] sm:$0xf]  ;;  %v5164_v63 = vld [vmem:[#allocation5 + $0x1f0] sm:$0xf0]  ;;  %v4970_v52 = vld [vmem:[#allocation5 + $0x50] sm:$0xf] }
 0x12d   :  { %2845 = vmatpush.bf16.msra.mxu0 %v4959_v40  ;;  %2858 = vmatpush.bf16.msra.mxu1 %v5215_v47  ;;  %v5060_v40 = vld [vmem:[#allocation5 + $0x128] sm:$0xf0]  ;;  %v5163_v47 = vor.u32 %v5918_v30, %v5162_v13  ;;  %v5067_v13 = vor.u32 %v5894_v18, %v5066_v17  ;;  %v5870_v4 = vld [vmem:[#allocation5 + $0x6c] sm:$0xf0] }
 0x12e   :  { %2869 = vmatpush.bf16.msra.mxu2 %v5027_v50  ;;  %2882 = vmatpush.bf16.msra.mxu3 %v5283_v25  ;;  %v5130_v50 = vld [vmem:[#allocation5 + $0x190] sm:$0xf]  ;;  %v5063_v32 = vor.u32 %v5889_v21, %v5060_v40  ;;  %v5220_v36 = vld [vmem:[#allocation5 + $0x268] sm:$0xf0]  ;;  %v4967_v21 = vor.u32 %v5865_v35, %v4964_v31  ;;  %v5962_v31 = vld [vmem:[#allocation5 + $0x354] sm:$0xf] }
 0x12f   :  { %v5910_v25 = vld [vmem:[#allocation5 + $0x1ac] sm:$0xf0]  ;;  %v5223_v40 = vor.u32 %v5929_v0, %v5220_v36  ;;  %v5921_v48 = vld [vmem:[#allocation5 + $0x20c] sm:$0xf]  ;;  %v5919_v0 = vld [vmem:[#allocation5 + $0x1f4] sm:$0xf0] }
 0x130   :  { %v5862_v17 = vld [vmem:[#allocation5 + $0x2c] sm:$0xf0]  ;;  %v5426_v36 = vld [vmem:[#allocation5 + $0x3d8] sm:$0xf] }
 0x131   :  { %2846 = vmatpush.bf16.msra.mxu0 %v4927_v34  ;;  %2859 = vmatpush.bf16.msra.mxu1 %v5183_v2  ;;  %v2000_v57 = vpop.f32.mrf.mxu0  ;;  %v2013_v58 = vpop.f32.mrf.mxu1  ;;  %v5881_v34 = vld [vmem:[#allocation5 + $0xcc] sm:$0xf]  ;;  %v5194_v18 = vld [vmem:[#allocation5 + $0x210] sm:$0xf] }
 0x132   :  { %2870 = vmatpush.bf16.msra.mxu2 %v4995_v22  ;;  %2883 = vmatpush.bf16.msra.mxu3 %v5251_v3  ;;  %v6926_v61 = vadd.f32 %v2013_v58, %v2000_v57  ;;  %v5028_v2 = vld [vmem:[#allocation5 + $0xe8] sm:$0xf0]  ;;  %v5131_v22 = vor.u32 %v5910_v25, %v5130_v50  ;;  %v5387_v3 = vor.u32 %v5974_v56, %v5386_v55  ;;  %v5002_v55 = vld [vmem:[#allocation5 + $0x90] sm:$0xf] }
 0x133   :  { %v5031_v10 = vor.u32 %v5881_v34, %v5028_v2  ;;  %v5188_v25 = vld [vmem:[#allocation5 + $0x228] sm:$0xf0]  ;;  %v5878_v56 = vld [vmem:[#allocation5 + $0xac] sm:$0xf0] }
 0x134   :  { %2847 = vmatmul.bf16.vlgmr.msra.gmra.mxu0 %v6916_v60  ;;  %2860 = vmatmul.bf16.vlgmr.msra.gmra.mxu1 %v6919_v33  ;;  %v5258_v57 = vld [vmem:[#allocation5 + $0x290] sm:$0xf]  ;;  %v5191_v2 = vor.u32 %v5921_v48, %v5188_v25  ;;  %v5138_v25 = vld [vmem:[#allocation5 + $0x198] sm:$0xf] }
 0x135   :  { %2891 = vmatpush.bf16.msrb.mxu0 %v5159_v5  ;;  %2904 = vmatpush.bf16.msrb.mxu1 %v5415_v7  ;;  %v5098_v5 = vld [vmem:[#allocation5 + $0x150] sm:$0xf] }
 0x136   :  { %2871 = vmatpush.bf16.msra.mxu2 %v4963_v14  ;;  %2884 = vmatpush.bf16.msra.mxu3 %v5219_v15  ;;  %v5902_v7 = vld [vmem:[#allocation5 + $0x16c] sm:$0xf0]  ;;  %v5355_v14 = vor.u32 %v5966_v9, %v5354_v8  ;;  %v5937_v15 = vld [vmem:[#allocation5 + $0x28c] sm:$0xf] }
 0x137   :  { %v5099_v1 = vor.u32 %v5902_v7, %v5098_v5  ;;  %v5255_v29 = vor.u32 %v5937_v15, %v5252_v16  ;;  %v5942_v58 = vld [vmem:[#allocation5 + $0x2ac] sm:$0xf0]  ;;  %v5167_v5 = vor.u32 %v5914_v62, %v5164_v63 }
 0x138   :  { %v5226_v8 = vld [vmem:[#allocation5 + $0x250] sm:$0xf] }
 0x139   :  { %2892 = vmatpush.bf16.msrb.mxu0 %v5127_v20  ;;  %2905 = vmatpush.bf16.msrb.mxu1 %v5383_v26  ;;  %v5958_v20 = vld [vmem:[#allocation5 + $0x32c] sm:$0xf0]  ;;  %v2002_v26 = vpop.f32.mrf.mxu0  ;;  %v2015_v27 = vpop.f32.mrf.mxu1 }
 0x13a   :  { %2872 = vmatpush.bf16.msra.mxu2 %v4931_v24  ;;  %2885 = vmatpush.bf16.msra.mxu3 %v5187_v38  ;;  %v5323_v30 = vor.u32 %v5958_v20, %v5322_v19  ;;  %v5034_v24 = vld [vmem:[#allocation5 + $0xd0] sm:$0xf]  ;;  %v5391_v26 = vor.u32 %v5970_v11, %v5388_v12 }
 0x13b   :  { %v5886_v38 = vld [vmem:[#allocation5 + $0xec] sm:$0xf0] }
 0x13c   :  { %v5035_v49 = vor.u32 %v5886_v38, %v5034_v24  ;;  %v5934_v9 = vld [vmem:[#allocation5 + $0x26c] sm:$0xf0]  ;;  %v5983_v24 = vld [vmem:[#allocation5 + $0x3f4] sm:$0xf0] }
 0x13d   :  { %2893 = vmatpush.bf16.msrb.mxu0 %v5095_v6  ;;  %2906 = vmatpush.bf16.msrb.mxu1 %v5351_v39  ;;  %v5290_v6 = vld [vmem:[#allocation5 + $0x2d0] sm:$0xf]  ;;  %v5227_v15 = vor.u32 %v5934_v9, %v5226_v8  ;;  %v5427_v48 = vor.u32 %v5983_v24, %v5426_v36  ;;  %v5106_v8 = vld [vmem:[#allocation5 + $0x158] sm:$0xf] }
 0x13e   :  { %2917 = vmatpush.bf16.msrb.mxu2 %v5163_v47  ;;  %2930 = vmatpush.bf16.msrb.mxu3 %v5419_v41  ;;  %v5950_v39 = vld [vmem:[#allocation5 + $0x2ec] sm:$0xf0]  ;;  %v5857_v47 = vld [vmem:[#allocation5 + $0xc] sm:$0xf]  ;;  %v5903_v9 = vld [vmem:[#allocation5 + $0x174] sm:$0xf0] }
 0x13f   :  { %2873 = vmatmul.bf16.vlgmr.msra.gmra.mxu2 %v6916_v60  ;;  %2886 = vmatmul.bf16.vlgmr.msra.gmra.mxu3 %v6919_v33  ;;  %v4932_v41 = vld [vmem:[#allocation5 + $0x28] sm:$0xf0]  ;;  %v5291_v50 = vor.u32 %v5950_v39, %v5290_v6  ;;  %v4938_v16 = vld [vmem:[#allocation5 + $0x10] sm:$0xf] }
 0x140   :  { %v4935_v34 = vor.u32 %v5857_v47, %v4932_v41  ;;  %v5926_v27 = vld [vmem:[#allocation5 + $0x22c] sm:$0xf0]  ;;  %v4939_v38 = vor.u32 %v5862_v17, %v4938_v16  ;;  %v5068_v47 = vld [vmem:[#allocation5 + $0x130] sm:$0xf0] }
 0x141   :  { %2894 = vmatpush.bf16.msrb.mxu0 %v5063_v32  ;;  %2907 = vmatpush.bf16.msrb.mxu1 %v5319_v23  ;;  %v5978_v32 = vld [vmem:[#allocation5 + $0x3d4] sm:$0xf]  ;;  %v5195_v6 = vor.u32 %v5926_v27, %v5194_v18  ;;  %v5959_v27 = vld [vmem:[#allocation5 + $0x334] sm:$0xf0] }
 0x142   :  { %2918 = vmatpush.bf16.msrb.mxu2 %v5131_v22  ;;  %2931 = vmatpush.bf16.msrb.mxu3 %v5387_v3  ;;  %v5420_v23 = vld [vmem:[#allocation5 + $0x3f0] sm:$0xf0]  ;;  %v5003_v22 = vor.u32 %v5878_v56, %v5002_v55  ;;  %v5259_v3 = vor.u32 %v5942_v58, %v5258_v57  ;;  %v2039_v19 = vpop.f32.mrf.mxu3  ;;  %v5911_v55 = vld [vmem:[#allocation5 + $0x1b4] sm:$0xf0] }
 0x143   :  { %v5423_v7 = vor.u32 %v5978_v32, %v5420_v23  ;;  %v5394_v56 = vld [vmem:[#allocation5 + $0x398] sm:$0xf]  ;;  %v5938_v17 = vld [vmem:[#allocation5 + $0x294] sm:$0xf] }
 0x144   :  { %v5975_v57 = vld [vmem:[#allocation5 + $0x3b4] sm:$0xf0]  ;;  %v5260_v18 = vld [vmem:[#allocation5 + $0x2b0] sm:$0xf0] }
 0x145   :  { %2895 = vmatpush.bf16.msrb.mxu0 %v5031_v10  ;;  %2908 = vmatpush.bf16.msrb.mxu1 %v5287_v37  ;;  %v5906_v10 = vld [vmem:[#allocation5 + $0x194] sm:$0xf] }
 0x146   :  { %2919 = vmatpush.bf16.msrb.mxu2 %v5099_v1  ;;  %2932 = vmatpush.bf16.msrb.mxu3 %v5355_v14  ;;  %v5132_v37 = vld [vmem:[#allocation5 + $0x1b0] sm:$0xf0]  ;;  %v2026_v1 = vpop.f32.mrf.mxu2  ;;  %v4971_v14 = vor.u32 %v5870_v4, %v4970_v52  ;;  %v5139_v52 = vor.u32 %v5911_v55, %v5138_v25  ;;  %v5395_v4 = vor.u32 %v5975_v57, %v5394_v56 }
 0x147   :  { %v5135_v20 = vor.u32 %v5906_v10, %v5132_v37  ;;  %v6930_v35 = vadd.f32 %v2039_v19, %v2026_v1  ;;  %v5362_v10 = vld [vmem:[#allocation5 + $0x358] sm:$0xf]  ;;  %v5874_v1 = vld [vmem:[#allocation5 + $0x94] sm:$0xf] }
 0x148   :  { %v5967_v37 = vld [vmem:[#allocation5 + $0x374] sm:$0xf0]  ;;  %v5922_v25 = vld [vmem:[#allocation5 + $0x214] sm:$0xf] }
 0x149   :  { %2896 = vmatpush.bf16.msrb.mxu0 %v4999_v28  ;;  %2909 = vmatpush.bf16.msrb.mxu1 %v5255_v29  ;;  %v5898_v28 = vld [vmem:[#allocation5 + $0x154] sm:$0xf]  ;;  %v5363_v16 = vor.u32 %v5967_v37, %v5362_v10  ;;  %v5074_v19 = vld [vmem:[#allocation5 + $0x118] sm:$0xf] }
 0x14a   :  { %2920 = vmatpush.bf16.msrb.mxu2 %v5067_v13  ;;  %2933 = vmatpush.bf16.msrb.mxu3 %v5323_v30  ;;  %v5100_v29 = vld [vmem:[#allocation5 + $0x170] sm:$0xf0]  ;;  %v5170_v30 = vld [vmem:[#allocation5 + $0x1d8] sm:$0xf]  ;;  %v2041_v23 = vpop.f32.mrf.mxu3 }
 0x14b   :  { %v5356_v13 = vld [vmem:[#allocation5 + $0x370] sm:$0xf0]  ;;  %v5103_v39 = vor.u32 %v5898_v28, %v5100_v29  ;;  %v5171_v41 = vor.u32 %v5919_v0, %v5170_v30  ;;  %v5266_v23 = vld [vmem:[#allocation5 + $0x298] sm:$0xf] }
 0x14c   :  { %v5866_v30 = vld [vmem:[#allocation5 + $0x54] sm:$0xf]  ;;  %v5871_v10 = vld [vmem:[#allocation5 + $0x74] sm:$0xf0] }
 0x14d   :  { %2897 = vmatpush.bf16.msrb.mxu0 %v4967_v21  ;;  %2910 = vmatpush.bf16.msrb.mxu1 %v5223_v40  ;;  %v5359_v21 = vor.u32 %v5962_v31, %v5356_v13  ;;  %v5890_v40 = vld [vmem:[#allocation5 + $0x114] sm:$0xf]  ;;  %v5263_v13 = vor.u32 %v5938_v17, %v5260_v18  ;;  %v5396_v17 = vld [vmem:[#allocation5 + $0x3b8] sm:$0xf0] }
 0x14e   :  { %2921 = vmatpush.bf16.msrb.mxu2 %v5035_v49  ;;  %2934 = vmatpush.bf16.msrb.mxu3 %v5291_v50  ;;  %v5954_v49 = vld [vmem:[#allocation5 + $0x314] sm:$0xf]  ;;  %v2028_v32 = vpop.f32.mrf.mxu2 }
 0x14f   :  { %v5324_v50 = vld [vmem:[#allocation5 + $0x330] sm:$0xf0] }
 0x150   :  { %v4972_v0 = vld [vmem:[#allocation5 + $0x70] sm:$0xf0] }
 0x151   :  { %2898 = vmatpush.bf16.msrb.mxu0 %v4935_v34  ;;  %2911 = vmatpush.bf16.msrb.mxu1 %v5191_v2  ;;  %v2052_v58 = vpop.f32.mrf.mxu0  ;;  %v2065_v62 = vpop.f32.mrf.mxu1  ;;  %v5071_v34 = vor.u32 %v5890_v40, %v5068_v47  ;;  %v5327_v2 = vor.u32 %v5954_v49, %v5324_v50  ;;  %v5298_v40 = vld [vmem:[#allocation5 + $0x2d8] sm:$0xf]  ;;  %v5858_v49 = vld [vmem:[#allocation5 + $0x14] sm:$0xf] }
 0x152   :  { %2922 = vmatpush.bf16.msrb.mxu2 %v5003_v22  ;;  %2935 = vmatpush.bf16.msrb.mxu3 %v5259_v3  ;;  %v6934_v63 = vadd.f32 %v2065_v62, %v2052_v58  ;;  %v5882_v22 = vld [vmem:[#allocation5 + $0xd4] sm:$0xf]  ;;  %v5951_v47 = vld [vmem:[#allocation5 + $0x2f4] sm:$0xf0] }
 0x153   :  { %v5036_v3 = vld [vmem:[#allocation5 + $0xf0] sm:$0xf0]  ;;  %v5299_v56 = vor.u32 %v5951_v47, %v5298_v40  ;;  %v5010_v58 = vld [vmem:[#allocation5 + $0x98] sm:$0xf] }
 0x154   :  { %2899 = vmatmul.bf16.vlgmr.msrb.gmra.mxu0 %v6916_v60  ;;  %2912 = vmatmul.bf16.vlgmr.msrb.gmra.mxu1 %v6919_v33  ;;  %v5039_v11 = vor.u32 %v5882_v22, %v5036_v3  ;;  %v4940_v50 = vld [vmem:[#allocation5 + $0x30] sm:$0xf0]  ;;  %v5879_v62 = vld [vmem:[#allocation5 + $0xb4] sm:$0xf0]  ;;  %v5172_v22 = vld [vmem:[#allocation5 + $0x1f8] sm:$0xf0] }
 0x155   :  { %2943 = vmatpush.bf16.msra.mxu0 %v5167_v5  ;;  %2956 = vmatpush.bf16.msra.mxu1 %v5423_v7  ;;  %v5946_v5 = vld [vmem:[#allocation5 + $0x2d4] sm:$0xf]  ;;  %v5979_v3 = vld [vmem:[#allocation5 + $0x3dc] sm:$0xf] }
 0x156   :  { %2923 = vmatpush.bf16.msrb.mxu2 %v4971_v14  ;;  %2936 = vmatpush.bf16.msrb.mxu3 %v5227_v15  ;;  %v5292_v7 = vld [vmem:[#allocation5 + $0x2f0] sm:$0xf0]  ;;  %v5107_v15 = vor.u32 %v5903_v9, %v5106_v8  ;;  %v4978_v9 = vld [vmem:[#allocation5 + $0x58] sm:$0xf] }
 0x157   :  { %v5295_v12 = vor.u32 %v5946_v5, %v5292_v7  ;;  %v5004_v14 = vld [vmem:[#allocation5 + $0xb0] sm:$0xf0]  ;;  %v5011_v7 = vor.u32 %v5879_v62, %v5010_v58  ;;  %v4979_v18 = vor.u32 %v5871_v10, %v4978_v9 }
 0x158   :  { %v5007_v31 = vor.u32 %v5874_v1, %v5004_v14  ;;  %v5196_v57 = vld [vmem:[#allocation5 + $0x230] sm:$0xf0]  ;;  %v5935_v1 = vld [vmem:[#allocation5 + $0x274] sm:$0xf0]  ;;  %v5907_v14 = vld [vmem:[#allocation5 + $0x19c] sm:$0xf] }
 0x159   :  { %2944 = vmatpush.bf16.msra.mxu0 %v5135_v20  ;;  %2957 = vmatpush.bf16.msra.mxu1 %v5391_v26  ;;  %v5895_v20 = vld [vmem:[#allocation5 + $0x134] sm:$0xf0]  ;;  %v2054_v28 = vpop.f32.mrf.mxu0  ;;  %v2067_v29 = vpop.f32.mrf.mxu1  ;;  %v5199_v5 = vor.u32 %v5922_v25, %v5196_v57 }
 0x15a   :  { %2924 = vmatpush.bf16.msrb.mxu2 %v4939_v38  ;;  %2937 = vmatpush.bf16.msrb.mxu3 %v5195_v6  ;;  %v5330_v26 = vld [vmem:[#allocation5 + $0x318] sm:$0xf]  ;;  %v5075_v36 = vor.u32 %v5895_v20, %v5074_v19  ;;  %v5930_v38 = vld [vmem:[#allocation5 + $0x254] sm:$0xf] }
 0x15b   :  { %v5331_v24 = vor.u32 %v5959_v27, %v5330_v26  ;;  %v5228_v6 = vld [vmem:[#allocation5 + $0x270] sm:$0xf0]  ;;  %v4946_v20 = vld [vmem:[#allocation5 + $0x18] sm:$0xf] }
 0x15c   :  { %v5863_v26 = vld [vmem:[#allocation5 + $0x34] sm:$0xf0] }
 0x15d   :  { %2945 = vmatpush.bf16.msra.mxu0 %v5103_v39  ;;  %2958 = vmatpush.bf16.msra.mxu1 %v5359_v21  ;;  %v5042_v39 = vld [vmem:[#allocation5 + $0xd8] sm:$0xf] }
 0x15e   :  { %2969 = vmatpush.bf16.msra.mxu2 %v5171_v41  ;;  %2982 = vmatpush.bf16.msra.mxu3 %v5427_v48  ;;  %v5887_v21 = vld [vmem:[#allocation5 + $0xf4] sm:$0xf0]  ;;  %v4975_v41 = vor.u32 %v5866_v30, %v4972_v0  ;;  %v5231_v48 = vor.u32 %v5930_v38, %v5228_v6  ;;  %v5899_v0 = vld [vmem:[#allocation5 + $0x15c] sm:$0xf] }
 0x15f   :  { %2925 = vmatmul.bf16.vlgmr.msrb.gmra.mxu2 %v6916_v60  ;;  %2938 = vmatmul.bf16.vlgmr.msrb.gmra.mxu3 %v6919_v33  ;;  %v5043_v55 = vor.u32 %v5887_v21, %v5042_v39  ;;  %v5927_v30 = vld [vmem:[#allocation5 + $0x234] sm:$0xf0]  ;;  %v5963_v38 = vld [vmem:[#allocation5 + $0x35c] sm:$0xf]  ;;  %v4947_v39 = vor.u32 %v5863_v26, %v4946_v20 }
 0x160   :  { %v5364_v6 = vld [vmem:[#allocation5 + $0x378] sm:$0xf0] }
 0x161   :  { %2946 = vmatpush.bf16.msra.mxu0 %v5071_v34  ;;  %2959 = vmatpush.bf16.msra.mxu1 %v5327_v2  ;;  %v5943_v34 = vld [vmem:[#allocation5 + $0x2b4] sm:$0xf0]  ;;  %v5915_v2 = vld [vmem:[#allocation5 + $0x1dc] sm:$0xf]  ;;  %v5367_v47 = vor.u32 %v5963_v38, %v5364_v6 }
 0x162   :  { %2970 = vmatpush.bf16.msra.mxu2 %v5139_v52  ;;  %2983 = vmatpush.bf16.msra.mxu3 %v5395_v4  ;;  %v2078_v32 = vpop.f32.mrf.mxu2  ;;  %v5428_v52 = vld [vmem:[#allocation5 + $0x3f8] sm:$0xf0]  ;;  %v4943_v4 = vor.u32 %v5858_v49, %v4940_v50  ;;  %v5267_v8 = vor.u32 %v5943_v34, %v5266_v23  ;;  %v5175_v37 = vor.u32 %v5915_v2, %v5172_v22  ;;  %v2091_v28 = vpop.f32.mrf.mxu3 }
 0x163   :  { %v5955_v49 = vld [vmem:[#allocation5 + $0x31c] sm:$0xf] }
 0x164   :  { %v5332_v50 = vld [vmem:[#allocation5 + $0x338] sm:$0xf0] }
 0x165   :  { %2947 = vmatpush.bf16.msra.mxu0 %v5039_v11  ;;  %2960 = vmatpush.bf16.msra.mxu1 %v5295_v12  ;;  %v5431_v11 = vor.u32 %v5979_v3, %v5428_v52  ;;  %v5234_v12 = vld [vmem:[#allocation5 + $0x258] sm:$0xf]  ;;  %v5335_v62 = vor.u32 %v5955_v49, %v5332_v50  ;;  %v5044_v23 = vld [vmem:[#allocation5 + $0xf8] sm:$0xf0] }
 0x166   :  { %2971 = vmatpush.bf16.msra.mxu2 %v5107_v15  ;;  %2984 = vmatpush.bf16.msra.mxu3 %v5363_v16  ;;  %v5140_v15 = vld [vmem:[#allocation5 + $0x1b8] sm:$0xf0]  ;;  %v5235_v19 = vor.u32 %v5935_v1, %v5234_v12 }
 0x167   :  { %v5971_v16 = vld [vmem:[#allocation5 + $0x39c] sm:$0xf]  ;;  %v5143_v29 = vor.u32 %v5907_v14, %v5140_v15 }
 0x168   :  { %v5947_v34 = vld [vmem:[#allocation5 + $0x2dc] sm:$0xf] }
 0x169   :  { %2948 = vmatpush.bf16.msra.mxu0 %v5007_v31  ;;  %2961 = vmatpush.bf16.msra.mxu1 %v5263_v13  ;;  %v5399_v31 = vor.u32 %v5971_v16, %v5396_v17  ;;  %v5202_v13 = vld [vmem:[#allocation5 + $0x218] sm:$0xf]  ;;  %v5300_v2 = vld [vmem:[#allocation5 + $0x2f8] sm:$0xf0] }
 0x16a   :  { %2972 = vmatpush.bf16.msra.mxu2 %v5075_v36  ;;  %2985 = vmatpush.bf16.msra.mxu3 %v5331_v24  ;;  %v2080_v27 = vpop.f32.mrf.mxu2  ;;  %v6938_v36 = vadd.f32 %v2091_v28, %v2078_v32  ;;  %v5108_v24 = vld [vmem:[#allocation5 + $0x178] sm:$0xf0]  ;;  %v5203_v21 = vor.u32 %v5927_v30, %v5202_v13  ;;  %v2093_v57 = vpop.f32.mrf.mxu3  ;;  %v5303_v3 = vor.u32 %v5947_v34, %v5300_v2 }
 0x16b   :  { %v5111_v40 = vor.u32 %v5899_v0, %v5108_v24  ;;  %v5883_v32 = vld [vmem:[#allocation5 + $0xdc] sm:$0xf] }
 0x16c   :  { %v5047_v22 = vor.u32 %v5883_v32, %v5044_v23  ;;  %v5875_v52 = vld [vmem:[#allocation5 + $0x9c] sm:$0xf] }
 0x16d   :  { %2949 = vmatpush.bf16.msra.mxu0 %v4975_v41  ;;  %2962 = vmatpush.bf16.msra.mxu1 %v5231_v48  ;;  %v5891_v41 = vld [vmem:[#allocation5 + $0x11c] sm:$0xf] }
 0x16e   :  { %2973 = vmatpush.bf16.msra.mxu2 %v5043_v55  ;;  %2986 = vmatpush.bf16.msra.mxu3 %v5299_v56  ;;  %v5076_v48 = vld [vmem:[#allocation5 + $0x138] sm:$0xf0] }
 0x16f   :  { %v5079_v58 = vor.u32 %v5891_v41, %v5076_v48  ;;  %v4980_v12 = vld [vmem:[#allocation5 + $0x78] sm:$0xf0] }
 0x170   :  { %v5931_v1 = vld [vmem:[#allocation5 + $0x25c] sm:$0xf] }
 0x171   :  { %2950 = vmatpush.bf16.msra.mxu0 %v4943_v4  ;;  %2963 = vmatpush.bf16.msra.mxu1 %v5199_v5  ;;  %v2104_v25 = vpop.f32.mrf.mxu0  ;;  %v2117_v55 = vpop.f32.mrf.mxu1  ;;  %v5012_v4 = vld [vmem:[#allocation5 + $0xb8] sm:$0xf0] }
 0x172   :  { %2974 = vmatpush.bf16.msra.mxu2 %v5011_v7  ;;  %2987 = vmatpush.bf16.msra.mxu3 %v5267_v8  ;;  %v6942_v56 = vadd.f32 %v2117_v55, %v2104_v25  ;;  %v5939_v5 = vld [vmem:[#allocation5 + $0x29c] sm:$0xf]  ;;  %v5015_v10 = vor.u32 %v5875_v52, %v5012_v4 }
 0x173   :  { %v5268_v7 = vld [vmem:[#allocation5 + $0x2b8] sm:$0xf0] }
 0x174   :  { %2951 = vmatmul.bf16.vlgmr.msra.gmra.mxu0 %v6916_v60  ;;  %2964 = vmatmul.bf16.vlgmr.msra.gmra.mxu1 %v6919_v33  ;;  %v5236_v14 = vld [vmem:[#allocation5 + $0x278] sm:$0xf0] }
 0x175   :  { %2995 = vmatpush.bf16.msrb.mxu0 %v5175_v37  ;;  %3008 = vmatpush.bf16.msrb.mxu1 %v5431_v11  ;;  %v5271_v37 = vor.u32 %v5939_v5, %v5268_v7  ;;  %v5867_v11 = vld [vmem:[#allocation5 + $0x5c] sm:$0xf]  ;;  %v5239_v16 = vor.u32 %v5931_v1, %v5236_v14 }
 0x176   :  { %2975 = vmatpush.bf16.msra.mxu2 %v4979_v18  ;;  %2988 = vmatpush.bf16.msra.mxu3 %v5235_v19  ;;  %v4983_v15 = vor.u32 %v5867_v11, %v4980_v12  ;;  %v5859_v17 = vld [vmem:[#allocation5 + $0x1c] sm:$0xf] }
 0x177   :  { %v4948_v18 = vld [vmem:[#allocation5 + $0x38] sm:$0xf0] }
 0x178   :  { %v5923_v19 = vld [vmem:[#allocation5 + $0x21c] sm:$0xf] }
 0x179   :  { %2996 = vmatpush.bf16.msrb.mxu0 %v5143_v29  ;;  %3009 = vmatpush.bf16.msrb.mxu1 %v5399_v31  ;;  %v2106_v8 = vpop.f32.mrf.mxu0  ;;  %v2119_v9 = vpop.f32.mrf.mxu1  ;;  %v5204_v20 = vld [vmem:[#allocation5 + $0x238] sm:$0xf0]  ;;  %v4951_v29 = vor.u32 %v5859_v17, %v4948_v18 }
 0x17a   :  { %2976 = vmatpush.bf16.msra.mxu2 %v4947_v39  ;;  %2989 = vmatpush.bf16.msra.mxu3 %v5203_v21  ;;  %v5207_v31 = vor.u32 %v5923_v19, %v5204_v20  ;;  %v6955_v49 = vld [vmem:[%s7656_s10] sm:$0xff] }
 0x17b   :  { %v3023_v25 = vperm.slane %v6955_v49, 0  ;;  %v3024_v52 = vperm.slane %v6955_v49, 1 }
 0x17d   :  { %2997 = vmatpush.bf16.msrb.mxu0 %v5111_v40  ;;  %3010 = vmatpush.bf16.msrb.mxu1 %v5367_v47 }
 0x17e   :  { %2977 = vmatmul.bf16.vlgmr.msra.gmra.mxu2 %v6916_v60  ;;  %2990 = vmatmul.bf16.vlgmr.msra.gmra.mxu3 %v6919_v33 }
 0x181   :  { %2998 = vmatpush.bf16.msrb.mxu0 %v5079_v58  ;;  %3011 = vmatpush.bf16.msrb.mxu1 %v5335_v62  ;;  %v3163_v62 = vld [vmem:[%s7694_s26] sm:$0xf]  ;;  %s3993_s26 = sshll.u32 %s7669_s23, 4  ;;  %s7709_s23 = sld [smem:[#allocation30_spill]]  ;;  %s3994_s26 = int_to_ptr.hbm [resolvable:$true] %s3993_s26 }
 0x182   :  { %v2130_v26 = vpop.f32.mrf.mxu2  ;;  %v2143_v27 = vpop.f32.mrf.mxu3  ;;  %3165 = vst [vmem:[#allocation1] ss:$4 sm:$0xff] %v3163_v62  ;;  %v5450_v62 = vld [vmem:[%s7660_s14 + $0x18] sm:$0xf0] }
 0x183   :  { %v6946_v28 = vadd.f32 %v2143_v27, %v2130_v26  ;;  %v5448_v27 = vld [vmem:[%s7660_s14 + $0x10] sm:$0xf] }
 0x185   :  { %2999 = vmatpush.bf16.msrb.mxu0 %v5047_v22  ;;  %3012 = vmatpush.bf16.msrb.mxu1 %v5303_v3 }
 0x189   :  { %3000 = vmatpush.bf16.msrb.mxu0 %v5015_v10  ;;  %3013 = vmatpush.bf16.msrb.mxu1 %v5271_v37 }
 0x18a   :  { %v2132_v13 = vpop.f32.mrf.mxu2  ;;  %v2145_v30 = vpop.f32.mrf.mxu3 }
 0x18d   :  { %3001 = vmatpush.bf16.msrb.mxu0 %v4983_v15  ;;  %3014 = vmatpush.bf16.msrb.mxu1 %v5239_v16  ;;  %v3026_v16 = vperm.slane %v6955_v49, 3 }
 0x191   :  { %3002 = vmatpush.bf16.msrb.mxu0 %v4951_v29  ;;  %3015 = vmatpush.bf16.msrb.mxu1 %v5207_v31  ;;  %v2156_v0 = vpop.f32.mrf.mxu0  ;;  %v2169_v24 = vpop.f32.mrf.mxu1  ;;  %v6147_v29 = vld [vmem:[%s7660_s14 + $0x14] sm:$0xf0] }
 0x192   :  { %v6950_v38 = vadd.f32 %v2169_v24, %v2156_v0  ;;  %v5449_v13 = vor.u32 %v6147_v29, %v5448_v27  ;;  %v5578_v29 = vld [vmem:[%s7659_s13 + $0xf0] sm:$0xf] }
 0x194   :  { %3003 = vmatmul.bf16.vlgmr.msrb.gmra.mxu0 %v6916_v60  ;;  %3016 = vmatmul.bf16.vlgmr.msrb.gmra.mxu1 %v6919_v33 }
 0x195   :  { %3263 = vmatpush.bf16.msrb.mxu2 %v5449_v13 }
 0x199   :  { %v2158_v6 = vpop.f32.mrf.mxu0  ;;  %v2171_v39 = vpop.f32.mrf.mxu1 }
 0x19a   :  { %v5440_v39 = vld [vmem:[%s7660_s14] sm:$0xf] }
 0x1a2   :  { %v2822_v21 = vpop.f32.mrf.mxu2  ;;  %v2835_v47 = vpop.f32.mrf.mxu3 }
 0x1a3   :  { %v2823_v60 = vadd.f32 %v2822_v21, %v6922_v53  ;;  %v3025_v53 = vperm.slane %v6955_v49, 2  ;;  %v6145_v21 = vld [vmem:[%s7660_s14 + $0x4] sm:$0xf0] }
 0x1a5   :  { %v2836_v33 = vadd.f32 %v2835_v47, %v2823_v60  ;;  %v5441_v47 = vor.u32 %v6145_v21, %v5440_v39  ;;  %v6124_v39 = vld [vmem:[%s7659_s13 + $0x64] sm:$0xf] }
 0x1a7   :  { %v3039_v55 = vadd.f32 %v3023_v25, %v2836_v33  ;;  %3264 = vmatpush.bf16.msrb.mxu2 %v5441_v47  ;;  %v3028_v47 = vperm.slane %v6955_v49, 5 }
 0x1a9   :  { %v5432_v32 = vmul.f32 -1.442695, %v3039_v55 }
 0x1aa   :  { %v2824_v40 = vpop.f32.mrf.mxu2  ;;  %v2837_v50 = vpop.f32.mrf.mxu3 }
 0x1ab   :  { %6214 = vpow2.f32 %v5432_v32 }
 0x1b1   :  { %v2848_v41 = vpop.f32.mrf.mxu0  ;;  %v2861_v48 = vpop.f32.mrf.mxu1 }
 0x1b2   :  { %v2849_v23 = vadd.f32 %v2848_v41, %v6926_v61  ;;  %v6215_v7 = vpop.eup %6214  ;;  %v5514_v41 = vld [vmem:[%s7659_s13 + $0x70] sm:$0xf] }
 0x1b3   :  { %v6966_v11 = vadd.f32 1.0, %v6215_v7  ;;  %v6126_v7 = vld [vmem:[%s7659_s13 + $0x74] sm:$0xf] }
 0x1b4   :  { %v2862_v3 = vadd.f32 %v2861_v48, %v2849_v23  ;;  %v6127_v48 = vld [vmem:[%s7659_s13 + $0x74] sm:$0xf0] }
 0x1b5   :  { %v5515_v60 = vor.u32 %v6127_v48, %v5514_v41  ;;  %vm3060_vm8 = vweird.f32 %v6966_v11 }
 0x1b6   :  { %v3040_v8 = vadd.f32 %v3024_v52, %v2862_v3  ;;  %v3064_v3 = vand.u32 2147483647, %v6966_v11 }
 0x1b7   :  { %3443 = vmatpush.bf16.msra.mxu2 %v5515_v60  ;;  %v5508_v60 = vld [vmem:[%s7659_s13 + $0x68] sm:$0xf0] }
 0x1b8   :  { %v5433_v61 = vmul.f32 -1.442695, %v3040_v8  ;;  %v5516_v8 = vld [vmem:[%s7659_s13 + $0x78] sm:$0xf0]  ;;  %vm7056_vm7 = vcmp.eq.f32.partialorder %v3064_v3, 8.507059e+37 }
 0x1b9   :  { %v2850_v57 = vpop.f32.mrf.mxu0  ;;  %v2863_v58 = vpop.f32.mrf.mxu1 }
 0x1ba   :  { %v6146_v58 = vld [vmem:[%s7660_s14 + $0x14] sm:$0xf] }
 0x1bb   :  { %v5453_v52 = vor.u32 %v6146_v58, %v5450_v62  ;;  %v5570_v58 = vld [vmem:[%s7659_s13 + $0xe0] sm:$0xf] }
 0x1bd   :  { %3276 = vmatpush.bf16.msrb.mxu3 %v5453_v52 }
 0x1c2   :  { %v2874_v34 = vpop.f32.mrf.mxu2  ;;  %v2887_v2 = vpop.f32.mrf.mxu3 }
 0x1c3   :  { %v2875_v22 = vadd.f32 %v2874_v34, %v6930_v35  ;;  %v3027_v34 = vperm.slane %v6955_v49, 4 }
 0x1c5   :  { %v2888_v4 = vadd.f32 %v2887_v2, %v2875_v22  ;;  %v5506_v2 = vld [vmem:[%s7659_s13 + $0x60] sm:$0xf]  ;;  %v6125_v22 = vld [vmem:[%s7659_s13 + $0x64] sm:$0xf0] }
 0x1c7   :  { %v3041_v5 = vadd.f32 %v3025_v53, %v2888_v4  ;;  %v5507_v4 = vor.u32 %v6125_v22, %v5506_v2  ;;  %v6141_v2 = vld [vmem:[%s7659_s13 + $0xe4] sm:$0xf0]  ;;  %v6140_v22 = vld [vmem:[%s7659_s13 + $0xe4] sm:$0xf] }
 0x1c9   :  { %v5434_v9 = vmul.f32 -1.442695, %v3041_v5  ;;  %3444 = vmatpush.bf16.msra.mxu2 %v5507_v4 }
 0x1ca   :  { %v2876_v10 = vpop.f32.mrf.mxu2  ;;  %v2889_v37 = vpop.f32.mrf.mxu3 }
 0x1cb   :  { %6216 = vpow2.f32 %v5434_v9 }
 0x1cc   :  { %6218 = vrcp.f32 %v6966_v11 }
 0x1cd   :  { %6220 = vpow2.f32 %v5433_v61  ;;  %v5519_v61 = vor.u32 %v6126_v7, %v5516_v8 }
 0x1cf   :  { %3469 = vmatpush.bf16.msra.mxu0 %v5519_v61 }
 0x1d1   :  { %v6217_v12 = vpop.eup %6216  ;;  %v2900_v35 = vpop.f32.mrf.mxu0 }
 0x1d2   :  { %v2913_v1 = vpop.f32.mrf.mxu1  ;;  %v6969_v14 = vadd.f32 1.0, %v6217_v12  ;;  %v2901_v15 = vadd.f32 %v2900_v35, %v6934_v63  ;;  %v6974_v18 = vpop.eup %6218  ;;  %v6144_v12 = vld [vmem:[%s7660_s14 + $0x4] sm:$0xf]  ;;  %v5442_v35 = vld [vmem:[%s7660_s14 + $0x8] sm:$0xf0]  ;;  %s6462_s14 = smov [#allocation12]  }
 0x1d3   :  { %v6221_v20 = vpop.eup %6220  ;;  %v3056_v0 = vmul.f32 %v6974_v18, %v6966_v11  ;;  %vm3061_vm5 = vweird.f32 %v6974_v18  ;;  %s3991_s8 = sshll.u32 %s6462_s14, 4  ;;  %s3992_s8 = int_to_ptr.vmem [resolvable:$true] %s3991_s8 }
 0x1d4   :  { %6222 = vrcp.f32 %v6969_v14  ;;  %v2914_v17 = vadd.f32 %v2913_v1, %v2901_v15  ;;  %v6986_v24 = vadd.f32 1.0, %v6221_v20  ;;  %v3102_v37 = vand.u32 2147483647, %v6969_v14  ;;  %vm7083_vm9 = vmor %vm3060_vm8, %vm3061_vm5  ;;  %v6138_v20 = vld [vmem:[%s7659_s13 + $0xd4] sm:$0xf] }
 0x1d5   :  { %v3057_v50 = vsub.f32 1.0, %v3056_v0  ;;  %vm3098_vm4 = vweird.f32 %v6969_v14  ;;  %v5445_v15 = vor.u32 %v6144_v12, %v5442_v35  ;;  %v6142_v0 = vld [vmem:[%s7659_s13 + $0xf4] sm:$0xf]  ;;  %v5482_v35 = vld [vmem:[%s7659_s13 + $0x30] sm:$0xf]  ;;  %vm3183_vm5 = vcmask 1041408  }
 0x1d6   :  { %v3042_v19 = vadd.f32 %v3026_v16, %v2914_v17  ;;  %v5498_v16 = vld [vmem:[%s7659_s13 + $0x50] sm:$0xf]  ;;  %v6123_v17 = vld [vmem:[%s7659_s13 + $0x54] sm:$0xf0]  ;;  %vm7090_vm10 = vcmp.eq.f32.partialorder %v3102_v37, 8.507059e+37  ;;  %vm3075_vm0 = vweird.f32 %v6986_v24 }
 0x1d7   :  { %v3058_v53 = vmul.f32 %v6974_v18, %v3057_v50  ;;  %v5499_v27 = vor.u32 %v6123_v17, %v5498_v16  ;;  %3277 = vmatpush.bf16.msrb.mxu3 %v5445_v15  ;;  %v5562_v15 = vld [vmem:[%s7659_s13 + $0xd0] sm:$0xf] }
 0x1d8   :  { %v5435_v26 = vmul.f32 -1.442695, %v3042_v19 }
 0x1d9   :  { %v2902_v31 = vpop.f32.mrf.mxu0  ;;  %3445 = vmatpush.bf16.msra.mxu2 %v5499_v27 }
 0x1da   :  { %v2915_v63 = vpop.f32.mrf.mxu1  ;;  %v6982_v30 = vpop.eup %6222  ;;  %6224 = vpow2.f32 %v5435_v26  ;;  %v3066_v26 = vand.u32 2147483648, %v6966_v11  ;;  %v6143_v31 = vld [vmem:[%s7659_s13 + $0xf4] sm:$0xf0] }
 0x1db   :  { %v3094_v6 = vmul.f32 %v6982_v30, %v6969_v14  ;;  %6226 = vrcp.f32 %v6986_v24  ;;  %vm3099_vm3 = vweird.f32 %v6982_v30  ;;  %v5579_v13 = vor.u32 %v6143_v31, %v5578_v29 }
 0x1dc   :  { %vm7051_vm6 = vmor %vm3098_vm4, %vm3099_vm3  ;;  %v3067_v3 = vor.u32 1.1754944e-38, %v3066_v26  ;;  %v5564_v26 = vld [vmem:[%s7659_s13 + $0xd8] sm:$0xf0] }
 0x1dd   :  { %v3095_v40 = vsub.f32 1.0, %v3094_v6  ;;  %v5580_v6 = vld [vmem:[%s7659_s13 + $0xf8] sm:$0xf0]  ;;  %3456 = vmatpush.bf16.msra.mxu3 %v5579_v13 }
 0x1de   :  { %v5583_v50 = vor.u32 %v6142_v0, %v5580_v6  ;;  %v5567_v0 = vor.u32 %v6138_v20, %v5564_v26  ;;  %v6120_v6 = vld [vmem:[%s7659_s13 + $0x44] sm:$0xf] }
 0x1df   :  { %v3096_v25 = vmul.f32 %v6982_v30, %v3095_v40  ;;  %v6116_v20 = vld [vmem:[%s7659_s13 + $0x24] sm:$0xf] }
 0x1e0   :  { %v6225_v33 = vpop.eup %6224  ;;  %3482 = vmatpush.bf16.msra.mxu1 %v5583_v50  ;;  %v5474_v50 = vld [vmem:[%s7659_s13 + $0x20] sm:$0xf] }
 0x1e1   :  { %v7010_v32 = vadd.f32 1.0, %v6225_v33  ;;  %v7031_v9 = vpop.eup %6226  ;;  %v3097_v10 = vadd.f32 %v6982_v30, %v3096_v25  ;;  %v3166_v25 = vld.sshfl [vmem:[#allocation1] sm:$0xff pattern:$0x73625140] }
 0x1e2   :  { %v2926_v55 = vpop.f32.mrf.mxu2  ;;  %v2939_v57 = vpop.f32.mrf.mxu3  ;;  %v7069_v63 = vmul.f32 %v7031_v9, %v6986_v24  ;;  %vm3076_vm15 = vweird.f32 %v7031_v9 }
 0x1e3   :  { %v2927_v23 = vadd.f32 %v2926_v55, %v6938_v36  ;;  %v3104_v36 = vand.u32 2147483648, %v6969_v14  ;;  %6228 = vrcp.f32 %v7010_v32  ;;  %v3059_v14 = vadd.f32 %v6974_v18, %v3058_v53  ;;  %v5572_v53 = vld [vmem:[%s7659_s13 + $0xe8] sm:$0xf0]  ;;  %vm7245_vm3 = vmor %vm3075_vm0, %vm3076_vm15 }
 0x1e4   :  { %v3101_v11 = vsel %vm7051_vm6, %v6982_v30, %v3097_v10  ;;  %v5511_v55 = vor.u32 %v6124_v39, %v5508_v60  ;;  %v5490_v30 = vld [vmem:[%s7659_s13 + $0x40] sm:$0xf]  ;;  %v5575_v4 = vor.u32 %v6140_v22, %v5572_v53  ;;  %v3072_v7 = vsub.f32 1.0, %v7069_v63  ;;  %v5492_v39 = vld [vmem:[%s7659_s13 + $0x48] sm:$0xf0] }
 0x1e5   :  { %v2940_v5 = vadd.f32 %v2939_v57, %v2927_v23  ;;  %v3105_v21 = vor.u32 1.1754944e-38, %v3104_v36  ;;  %v6121_v57 = vld [vmem:[%s7659_s13 + $0x44] sm:$0xf0]  ;;  %v3063_v23 = vsel %vm7083_vm9, %v6974_v18, %v3059_v14  ;;  %v5571_v18 = vor.u32 %v6141_v2, %v5570_v58  ;;  %v6122_v36 = vld [vmem:[%s7659_s13 + $0x54] sm:$0xf] }
 0x1e6   :  { %3470 = vmatpush.bf16.msra.mxu0 %v5511_v55  ;;  %v3079_v10 = vand.u32 2147483647, %v6986_v24  ;;  %v3068_v12 = vsel %vm7056_vm7, %v3067_v3, %v3063_v23  ;;  %3483 = vmatpush.bf16.msra.mxu1 %v5575_v4  ;;  %v6139_v14 = vld [vmem:[%s7659_s13 + $0xd4] sm:$0xf0]  ;;  %v3081_v63 = vand.u32 2147483648, %v6986_v24  ;;  %vm3113_vm12 = vweird.f32 %v7010_v32 }
 0x1e7   :  { %v3043_v1 = vadd.f32 %v3027_v34, %v2940_v5  ;;  %v5491_v34 = vor.u32 %v6121_v57, %v5490_v30  ;;  %v3106_v52 = vsel %vm7090_vm10, %v3105_v21, %v3101_v11  ;;  %v5500_v5 = vld [vmem:[%s7659_s13 + $0x58] sm:$0xf0]  ;;  %3457 = vmatpush.bf16.msra.mxu3 %v5571_v18  ;;  %v5563_v13 = vor.u32 %v6139_v14, %v5562_v15  ;;  %v6117_v60 = vld [vmem:[%s7659_s13 + $0x24] sm:$0xf0]  ;;  %v6136_v57 = vld [vmem:[%s7659_s13 + $0xc4] sm:$0xf] }
 0x1e8   :  { %v5503_v37 = vor.u32 %v6122_v36, %v5500_v5  ;;  %v3170_v16 = vmul.f32 %v3166_v25, %v3106_v52  ;;  %v3119_v21 = vand.u32 2147483648, %v7010_v32  ;;  %v5475_v55 = vor.u32 %v6117_v60, %v5474_v50  ;;  %v6137_v30 = vld [vmem:[%s7659_s13 + $0xc4] sm:$0xf0]  ;;  %v5556_v58 = vld [vmem:[%s7659_s13 + $0xc8] sm:$0xf0] }
 0x1e9   :  { %6230 = vtanh.f32 %v3043_v1  ;;  %v7097_v33 = vpop.eup %6228  ;;  %3446 = vmatpush.bf16.msra.mxu2 %v5491_v34  ;;  %v6119_v1 = vld [vmem:[%s7659_s13 + $0x34] sm:$0xf0]  ;;  %v5559_v34 = vor.u32 %v6136_v57, %v5556_v58  ;;  %v3227_v2 = vld [vmem:[%s7657_s11] sm:$0x3]  ;;  %v6118_v22 = vld [vmem:[%s7659_s13 + $0x34] sm:$0xf] }
 0x1ea   :  { %v2928_v41 = vpop.f32.mrf.mxu2  ;;  %v2941_v48 = vpop.f32.mrf.mxu3  ;;  %v3109_v62 = vmul.f32 %v7097_v33, %v7010_v32  ;;  %v5483_v19 = vor.u32 %v6119_v1, %v5482_v35  ;;  %3471 = vmatpush.bf16.msra.mxu0 %v5503_v37  ;;  %vm3114_vm11 = vweird.f32 %v7097_v33  ;;  %3484 = vmatpush.bf16.msra.mxu1 %v5567_v0  ;;  %v5484_v53 = vld [vmem:[%s7659_s13 + $0x38] sm:$0xf0]  ;;  %v3117_v18 = vand.u32 2147483647, %v7010_v32  ;;  %v5546_v32 = vld [vmem:[%s7659_s13 + $0xb0] sm:$0xf] }
 0x1eb   :  { %v3073_v41 = vmul.f32 %v7031_v9, %v3072_v7  ;;  %3458 = vmatpush.bf16.msra.mxu3 %v5563_v13  ;;  %v5495_v48 = vor.u32 %v6120_v6, %v5492_v39  ;;  %vm7198_vm13 = vmor %vm3113_vm12, %vm3114_vm11  ;;  %v3228_v4 = vpack.c.bf16 %v3227_v2, %v3227_v2  ;;  %v5487_v5 = vor.u32 %v6118_v22, %v5484_v53  ;;  %v5466_v7 = vld [vmem:[%s7659_s13 + $0x10] sm:$0xf]  ;;  %v5548_v35 = vld [vmem:[%s7659_s13 + $0xb8] sm:$0xf0] }
 0x1ec   :  { %v3110_v8 = vsub.f32 1.0, %v3109_v62  ;;  %vm7227_vm1 = vcmp.eq.f32.partialorder %v3079_v10, 8.507059e+37  ;;  %v5476_v10 = vld [vmem:[%s7659_s13 + $0x28] sm:$0xf0]  ;;  %v3120_v26 = vor.u32 1.1754944e-38, %v3119_v21  ;;  %vm3118_vm4 = vcmp.eq.f32.partialorder %v3117_v18, 8.507059e+37 }
 0x1ed   :  { %3447 = vmatpush.bf16.msra.mxu2 %v5483_v19  ;;  %v3074_v36 = vadd.f32 %v7031_v9, %v3073_v41  ;;  %5455 = vmatmul.msk.bf16.vlgmr.msrb.gmra.mxu3 %vm3253_vm14, %v3228_v4  ;;  %v5458_v0 = vld [vmem:[%s7659_s13] sm:$0xf]  ;;  %v6113_v6 = vld [vmem:[%s7659_s13 + $0x4] sm:$0xf0]  ;;  %v6132_v21 = vld [vmem:[%s7659_s13 + $0xa4] sm:$0xf] }
 0x1ee   :  { %v3111_v27 = vmul.f32 %v7097_v33, %v3110_v8  ;;  %3472 = vmatpush.bf16.msra.mxu0 %v5495_v48  ;;  %v6115_v8 = vld [vmem:[%s7659_s13 + $0x14] sm:$0xf0]  ;;  %3485 = vmatpush.bf16.msra.mxu1 %v5559_v34  ;;  %v5538_v24 = vld [vmem:[%s7659_s13 + $0xa0] sm:$0xf]  ;;  %v5459_v39 = vor.u32 %v6113_v6, %v5458_v0  ;;  %v5642_v48 = vld [vmem:[%s7661_s15 + $0x70] sm:$0xf] }
 0x1ef   :  { %v6231_v61 = vpop.eup %6230  ;;  %5454 = vmatmul.msk.bf16.vlgmr.msrb.gmra.mxu2 %vm3253_vm14, %v3228_v4  ;;  %v5467_v37 = vor.u32 %v6115_v8, %v5466_v7  ;;  %v3078_v13 = vsel %vm7245_vm3, %v7031_v9, %v3074_v36  ;;  %v6133_v9 = vld [vmem:[%s7659_s13 + $0xa4] sm:$0xf0]  ;;  %v6163_v50 = vld [vmem:[%s7661_s15 + $0x74] sm:$0xf0]  ;;  %v6114_v60 = vld [vmem:[%s7659_s13 + $0x14] sm:$0xf] }
 0x1f0   :  { %v3172_v17 = vmul.f32 %v6231_v61, %v3068_v12  ;;  %v3112_v62 = vadd.f32 %v7097_v33, %v3111_v27  ;;  %v6135_v61 = vld [vmem:[%s7659_s13 + $0xb4] sm:$0xf0]  ;;  %v6134_v12 = vld [vmem:[%s7659_s13 + $0xb4] sm:$0xf]  ;;  %v3082_v27 = vor.u32 1.1754944e-38, %v3081_v63  ;;  %vm3930_vm0 = vcmask 41984  }
 0x1f1   :  { %v2952_v29 = vpop.f32.mrf.mxu0  ;;  %v2965_v31 = vpop.f32.mrf.mxu1  ;;  %3448 = vmatpush.bf16.msra.mxu2 %v5475_v55  ;;  %v5547_v19 = vor.u32 %v6135_v61, %v5546_v32  ;;  %v5551_v14 = vor.u32 %v6134_v12, %v5548_v35  ;;  %v3029_v55 = vperm.slane %v6955_v49, 6  ;;  %v5468_v57 = vld [vmem:[%s7659_s13 + $0x18] sm:$0xf0]  ;;  %v5530_v34 = vld [vmem:[%s7659_s13 + $0x90] sm:$0xf] }
 0x1f2   :  { %v7161_v40 = vadd.f32 %v3172_v17, %v3170_v16  ;;  %v2953_v11 = vadd.f32 %v2952_v29, %v6942_v56  ;;  %v5554_v56 = vld [vmem:[%s7659_s13 + $0xc0] sm:$0xf]  ;;  %v3116_v15 = vsel %vm7198_vm13, %v7097_v33, %v3112_v62  ;;  %3473 = vmatpush.bf16.msra.mxu0 %v5487_v5  ;;  %v3167_v29 = vld.sshfl [vmem:[#allocation1 + $0x8] sm:$0xff pattern:$0x73625140] }
 0x1f3   :  { %v5555_v23 = vor.u32 %v6137_v30, %v5554_v56  ;;  %v3121_v63 = vsel %vm3118_vm4, %v3120_v26, %v3116_v15  ;;  %3486 = vmatpush.bf16.msra.mxu1 %v5551_v14  ;;  %v5643_v30 = vor.u32 %v6163_v50, %v5642_v48  ;;  %v6131_v2 = vld [vmem:[%s7659_s13 + $0x94] sm:$0xf0]  ;;  %v6130_v22 = vld [vmem:[%s7659_s13 + $0x94] sm:$0xf]  ;;  %v5532_v18 = vld [vmem:[%s7659_s13 + $0x98] sm:$0xf0] }
 0x1f4   :  { %v2966_v25 = vadd.f32 %v2965_v31, %v2953_v11  ;;  %v5479_v31 = vor.u32 %v6116_v20, %v5476_v10  ;;  %v5540_v11 = vld [vmem:[%s7659_s13 + $0xa8] sm:$0xf0]  ;;  %v3171_v58 = vmul.f32 %v3167_v29, %v3121_v63  ;;  %v5634_v4 = vld [vmem:[%s7661_s15 + $0x60] sm:$0xf]  ;;  %v6161_v36 = vld [vmem:[%s7661_s15 + $0x64] sm:$0xf0]  ;;  %v5535_v8 = vor.u32 %v6130_v22, %v5532_v18 }
 0x1f5   :  { %3459 = vmatpush.bf16.msra.mxu3 %v5555_v23  ;;  %3449 = vmatpush.bf16.msra.mxu2 %v5467_v37  ;;  %v5543_v41 = vor.u32 %v6132_v21, %v5540_v11  ;;  %v5471_v23 = vor.u32 %v6114_v60, %v5468_v57  ;;  %v5635_v32 = vor.u32 %v6161_v36, %v5634_v4  ;;  %v6112_v37 = vld [vmem:[%s7659_s13 + $0x4] sm:$0xf]  ;;  %v5460_v61 = vld [vmem:[%s7659_s13 + $0x8] sm:$0xf0]  ;;  %v5522_v1 = vld [vmem:[%s7659_s13 + $0x80] sm:$0xf] }
 0x1f6   :  { %v3044_v52 = vadd.f32 %v3028_v47, %v2966_v25  ;;  %3474 = vmatpush.bf16.msra.mxu0 %v5479_v31  ;;  %v5539_v47 = vor.u32 %v6133_v9, %v5538_v24  ;;  %v3083_v25 = vsel %vm7227_vm1, %v3082_v27, %v3078_v13  ;;  %v5463_v12 = vor.u32 %v6112_v37, %v5460_v61  ;;  %v6128_v15 = vld [vmem:[%s7659_s13 + $0x84] sm:$0xf]  ;;  %v5626_v10 = vld [vmem:[%s7661_s15 + $0x50] sm:$0xf]  ;;  %v6159_v26 = vld [vmem:[%s7661_s15 + $0x54] sm:$0xf0] }
 0x1f7   :  { %3487 = vmatpush.bf16.msra.mxu1 %v5543_v41  ;;  %v5706_v33 = vld [vmem:[%s7661_s15 + $0xf0] sm:$0xf]  ;;  %v5627_v27 = vor.u32 %v6159_v26, %v5626_v10  ;;  %v6179_v29 = vld [vmem:[%s7661_s15 + $0xf4] sm:$0xf0]  ;;  %v6162_v31 = vld [vmem:[%s7661_s15 + $0x74] sm:$0xf] }
 0x1f8   :  { %6232 = vtanh.f32 %v3044_v52  ;;  %v5531_v52 = vor.u32 %v6131_v2, %v5530_v34  ;;  %v5644_v13 = vld [vmem:[%s7661_s15 + $0x78] sm:$0xf0]  ;;  %v5707_v24 = vor.u32 %v6179_v29, %v5706_v33  ;;  %v5618_v41 = vld [vmem:[%s7661_s15 + $0x40] sm:$0xf]  ;;  %v6157_v48 = vld [vmem:[%s7661_s15 + $0x44] sm:$0xf0] }
 0x1f9   :  { %v2954_v16 = vpop.f32.mrf.mxu0  ;;  %v2967_v17 = vpop.f32.mrf.mxu1  ;;  %3460 = vmatpush.bf16.msra.mxu3 %v5547_v19  ;;  %3450 = vmatpush.bf16.msra.mxu2 %v5459_v39  ;;  %v5647_v63 = vor.u32 %v6162_v31, %v5644_v13  ;;  %v6178_v39 = vld [vmem:[%s7661_s15 + $0xf4] sm:$0xf]  ;;  %v5708_v9 = vld [vmem:[%s7661_s15 + $0xf8] sm:$0xf0]  ;;  %v5698_v50 = vld [vmem:[%s7661_s15 + $0xe0] sm:$0xf]  ;;  %v5619_v60 = vor.u32 %v6157_v48, %v5618_v41 }
 0x1fa   :  { %3475 = vmatpush.bf16.msra.mxu0 %v5471_v23  ;;  %v5524_v17 = vld [vmem:[%s7659_s13 + $0x88] sm:$0xf0]  ;;  %v5610_v34 = vld [vmem:[%s7661_s15 + $0x30] sm:$0xf]  ;;  %v6155_v2 = vld [vmem:[%s7661_s15 + $0x34] sm:$0xf0] }
 0x1fb   :  { %3488 = vmatpush.bf16.msra.mxu1 %v5535_v8  ;;  %v5527_v20 = vor.u32 %v6128_v15, %v5524_v17  ;;  %v5690_v22 = vld [vmem:[%s7661_s15 + $0xd0] sm:$0xf]  ;;  %v5628_v18 = vld [vmem:[%s7661_s15 + $0x58] sm:$0xf0]  ;;  %v6173_v15 = vld [vmem:[%s7661_s15 + $0xc4] sm:$0xf0] }
 0x1fc   :  { %v5692_v8 = vld [vmem:[%s7661_s15 + $0xd8] sm:$0xf0]  ;;  %v5620_v10 = vld [vmem:[%s7661_s15 + $0x48] sm:$0xf0]  ;;  %v5594_v13 = vld [vmem:[%s7661_s15 + $0x10] sm:$0xf] }
 0x1fd   :  { %3461 = vmatpush.bf16.msra.mxu3 %v5539_v47  ;;  %3696 = vmatpush.bf16.msrb.mxu2 %v5643_v30  ;;  %v5711_v47 = vor.u32 %v6178_v39, %v5708_v9  ;;  %v5674_v39 = vld [vmem:[%s7661_s15 + $0xb0] sm:$0xf]  ;;  %v6171_v9 = vld [vmem:[%s7661_s15 + $0xb4] sm:$0xf0]  ;;  %v6154_v41 = vld [vmem:[%s7661_s15 + $0x34] sm:$0xf] }
 0x1fe   :  { %v6233_v56 = vpop.eup %6232  ;;  %3476 = vmatpush.bf16.msra.mxu0 %v5463_v12  ;;  %v5612_v48 = vld [vmem:[%s7661_s15 + $0x38] sm:$0xf0]  ;;  %vm3949_vm1 = vcmask 1024  }
 0x1ff   :  { %v3173_v62 = vmul.f32 %v6233_v56, %v3083_v25  ;;  %3489 = vmatpush.bf16.msra.mxu1 %v5527_v20  ;;  %v6177_v56 = vld [vmem:[%s7661_s15 + $0xe4] sm:$0xf0]  ;;  %v6160_v25 = vld [vmem:[%s7661_s15 + $0x64] sm:$0xf] }
 0x200   :  { %v5699_v30 = vor.u32 %v6177_v56, %v5698_v50  ;;  %v6156_v20 = vld [vmem:[%s7661_s15 + $0x44] sm:$0xf]  ;;  %v6170_v50 = vld [vmem:[%s7661_s15 + $0xb4] sm:$0xf]  ;;  %v5615_v56 = vor.u32 %v6154_v41, %v5612_v48 }
 0x201   :  { %v2978_v53 = vpop.f32.mrf.mxu2  ;;  %v2991_v3 = vpop.f32.mrf.mxu3  ;;  %v7305_v5 = vadd.f32 %v3173_v62, %v3171_v58  ;;  %3462 = vmatpush.bf16.msra.mxu3 %v5531_v52  ;;  %3697 = vmatpush.bf16.msrb.mxu2 %v5635_v32  ;;  %v6176_v58 = vld [vmem:[%s7661_s15 + $0xe4] sm:$0xf]  ;;  %v5700_v62 = vld [vmem:[%s7661_s15 + $0xe8] sm:$0xf0]  ;;  %v6158_v52 = vld [vmem:[%s7661_s15 + $0x54] sm:$0xf]  ;;  %v5623_v33 = vor.u32 %v6156_v20, %v5620_v10 }
 0x202   :  { %v2979_v7 = vadd.f32 %v2978_v53, %v6946_v28  ;;  %v6129_v28 = vld [vmem:[%s7659_s13 + $0x84] sm:$0xf0]  ;;  %3722 = vmatpush.bf16.msrb.mxu0 %v5647_v63  ;;  %v5703_v23 = vor.u32 %v6176_v58, %v5700_v62  ;;  %v5611_v53 = vor.u32 %v6155_v2, %v5610_v34  ;;  %v5631_v36 = vor.u32 %v6158_v52, %v5628_v18  ;;  %v5602_v32 = vld [vmem:[%s7661_s15 + $0x20] sm:$0xf]  ;;  %v6152_v2 = vld [vmem:[%s7661_s15 + $0x24] sm:$0xf] }
 0x203   :  { %v5523_v16 = vor.u32 %v6129_v28, %v5522_v1  ;;  %v3182_v19 = vrot.slane %v7305_v5, 6  ;;  %3735 = vmatpush.bf16.msrb.mxu1 %v5711_v47  ;;  %v6153_v1 = vld [vmem:[%s7661_s15 + $0x24] sm:$0xf0]  ;;  %v5682_v28 = vld [vmem:[%s7661_s15 + $0xc0] sm:$0xf]  ;;  %v5675_v47 = vor.u32 %v6171_v9, %v5674_v39  ;;  %s4002_s13 = sshll.u32 %s6464_s20, 4  ;;  %s4003_s13 = int_to_ptr.vmem [resolvable:$true] %s4002_s13 }
 0x204   :  { %v2992_v35 = vadd.f32 %v2991_v3, %v2979_v7  ;;  %v6175_v3 = vld [vmem:[%s7661_s15 + $0xd4] sm:$0xf0]  ;;  %v6174_v7 = vld [vmem:[%s7661_s15 + $0xd4] sm:$0xf]  ;;  %v5683_v26 = vor.u32 %v6173_v15, %v5682_v28  ;;  %v6169_v34 = vld [vmem:[%s7661_s15 + $0xa4] sm:$0xf0] }
 0x205   :  { %v3184_v0 = vsel %vm3183_vm5, %v7161_v40, %v3182_v19  ;;  %3463 = vmatpush.bf16.msra.mxu3 %v5523_v16  ;;  %3698 = vmatpush.bf16.msrb.mxu2 %v5627_v27  ;;  %v5691_v4 = vor.u32 %v6175_v3, %v5690_v22  ;;  %v3030_v19 = vperm.slane %v6955_v49, 7  ;;  %v5684_v49 = vld [vmem:[%s7661_s15 + $0xc8] sm:$0xf0]  ;;  %v6168_v3 = vld [vmem:[%s7661_s15 + $0xa4] sm:$0xf] }
 0x206   :  { %v3045_v14 = vadd.f32 %v3029_v55, %v2992_v35  ;;  %3186 = vst [vmem:[#allocation12] sm:$0xf] %v3184_v0  ;;  %v5636_v55 = vld [vmem:[%s7661_s15 + $0x68] sm:$0xf0]  ;;  %v5695_v35 = vor.u32 %v6174_v7, %v5692_v8  ;;  %v6151_v0 = vld [vmem:[%s7661_s15 + $0x14] sm:$0xf0] }
 0x207   :  { %v5639_v57 = vor.u32 %v6160_v25, %v5636_v55  ;;  %3736 = vmatpush.bf16.msrb.mxu1 %v5703_v23  ;;  %v5595_v63 = vor.u32 %v6151_v0, %v5594_v13  ;;  %v5676_v25 = vld [vmem:[%s7661_s15 + $0xb8] sm:$0xf0]  ;;  %v5586_v55 = vld [vmem:[%s7661_s15] sm:$0xf]  ;;  %v5658_v7 = vld [vmem:[%s7661_s15 + $0x90] sm:$0xf] }
 0x208   :  { %v5436_v6 = vmul.f32 -1.442695, %v3045_v14  ;;  %v5603_v14 = vor.u32 %v6153_v1, %v5602_v32  ;;  %v5679_v58 = vor.u32 %v6170_v50, %v5676_v25  ;;  %v5666_v23 = vld [vmem:[%s7661_s15 + $0xa0] sm:$0xf]  ;;  %v6167_v32 = vld [vmem:[%s7661_s15 + $0x94] sm:$0xf0] }
 0x209   :  { %v2980_v21 = vpop.f32.mrf.mxu2  ;;  %v2993_v11 = vpop.f32.mrf.mxu3  ;;  %3709 = vmatpush.bf16.msrb.mxu3 %v5707_v24  ;;  %3699 = vmatpush.bf16.msrb.mxu2 %v5619_v60  ;;  %v5667_v22 = vor.u32 %v6169_v34, %v5666_v23  ;;  %v6166_v1 = vld [vmem:[%s7661_s15 + $0x94] sm:$0xf]  ;;  %v5660_v28 = vld [vmem:[%s7661_s15 + $0x98] sm:$0xf0]  ;;  %3996 = dma.vmem_to_hbm [thread:$0]  %s3992_s8, 64, %s3994_s26, [#allocation13]  }
 0x20a   :  { %6234 = vpow2.f32 %v5436_v6  ;;  %3723 = vmatpush.bf16.msrb.mxu0 %v5639_v57  ;;  %v3495_v6 = vld [vmem:[%s7658_s12] sm:$0xf]  ;;  %s3969_s12 = sshll.u32 %s6461_s7, 4  ;;  %s3970_s12 = int_to_ptr.vmem [resolvable:$true] %s3969_s12 }
 0x20b   :  { %3737 = vmatpush.bf16.msrb.mxu1 %v5695_v35  ;;  %3497 = vst [vmem:[#allocation1] ss:$4 sm:$0xff] %v3495_v6 }
 0x20d   :  { %3710 = vmatpush.bf16.msrb.mxu3 %v5699_v30  ;;  %3700 = vmatpush.bf16.msrb.mxu2 %v5611_v53  ;;  %v6149_v30 = vld [vmem:[%s7661_s15 + $0x4] sm:$0xf0]  ;;  %v5604_v53 = vld [vmem:[%s7661_s15 + $0x28] sm:$0xf0] }
 0x20e   :  { %3724 = vmatpush.bf16.msrb.mxu0 %v5631_v36  ;;  %v5587_v62 = vor.u32 %v6149_v30, %v5586_v55  ;;  %v5668_v36 = vld [vmem:[%s7661_s15 + $0xa8] sm:$0xf0] }
 0x20f   :  { %v5671_v8 = vor.u32 %v6168_v3, %v5668_v36  ;;  %v6187_v36 = vld [vmem:[%s7663_s17 + $0x38] sm:$0xff] }
 0x210   :  { %v6235_v37 = vpop.eup %6234 }
 0x211   :  { %v3004_v61 = vpop.f32.mrf.mxu0  ;;  %v3017_v12 = vpop.f32.mrf.mxu1  ;;  %v7413_v16 = vadd.f32 1.0, %v6235_v37  ;;  %3711 = vmatpush.bf16.msrb.mxu3 %v5691_v4  ;;  %3701 = vmatpush.bf16.msrb.mxu2 %v5603_v14  ;;  %v5607_v4 = vor.u32 %v6152_v2, %v5604_v53  ;;  %v6150_v37 = vld [vmem:[%s7661_s15 + $0x14] sm:$0xf]  ;;  %v6165_v14 = vld [vmem:[%s7661_s15 + $0x84] sm:$0xf0] }
 0x212   :  { %v3005_v17 = vadd.f32 %v3004_v61, %v6950_v38  ;;  %v6172_v38 = vld [vmem:[%s7661_s15 + $0xc4] sm:$0xf]  ;;  %3725 = vmatpush.bf16.msrb.mxu0 %v5623_v33  ;;  %v5596_v61 = vld [vmem:[%s7661_s15 + $0x18] sm:$0xf0] }
 0x213   :  { %6236 = vrcp.f32 %v7413_v16  ;;  %v5687_v29 = vor.u32 %v6172_v38, %v5684_v49  ;;  %v3144_v18 = vand.u32 2147483648, %v7413_v16  ;;  %v3142_v35 = vand.u32 2147483647, %v7413_v16  ;;  %v6148_v33 = vld [vmem:[%s7661_s15 + $0x4] sm:$0xf] }
 0x214   :  { %v3018_v27 = vadd.f32 %v3017_v12, %v3005_v17  ;;  %v5599_v17 = vor.u32 %v6150_v37, %v5596_v61  ;;  %vm3138_vm7 = vweird.f32 %v7413_v16  ;;  %v5588_v38 = vld [vmem:[%s7661_s15 + $0x8] sm:$0xf0]  ;;  %v3498_v25 = vld.sshfl [vmem:[#allocation1] sm:$0xff pattern:$0x73625140]  ;;  %v6191_v61 = vld [vmem:[%s7663_s17 + $0x58] sm:$0xff] }
 0x215   :  { %3712 = vmatpush.bf16.msrb.mxu3 %v5683_v26  ;;  %3738 = vmatpush.bf16.msrb.mxu1 %v5687_v29  ;;  %v5663_v26 = vor.u32 %v6166_v1, %v5660_v28  ;;  %v3145_v49 = vor.u32 1.1754944e-38, %v3144_v18  ;;  %vm3143_vm9 = vcmp.eq.f32.partialorder %v3142_v35, 8.507059e+37  ;;  %v6164_v29 = vld [vmem:[%s7661_s15 + $0x84] sm:$0xf]  ;;  %v5591_v6 = vor.u32 %v6148_v33, %v5588_v38  ;;  %v6195_v18 = vld [vmem:[%s7663_s17 + $0x78] sm:$0xff]  ;;  %v6185_v37 = vld [vmem:[%s7663_s17 + $0x28] sm:$0xff] }
 0x216   :  { %v3046_v31 = vadd.f32 %v3030_v19, %v3018_v27  ;;  %3702 = vmatpush.bf16.msrb.mxu2 %v5595_v63  ;;  %3726 = vmatpush.bf16.msrb.mxu0 %v5615_v56  ;;  %v5650_v19 = vld [vmem:[%s7661_s15 + $0x80] sm:$0xf]  ;;  %v3499_v34 = vld.sshfl [vmem:[#allocation1 + $0x8] sm:$0xff pattern:$0x73625140]  ;;  %v6190_v35 = vld [vmem:[%s7663_s17 + $0x50] sm:$0xff] }
 0x217   :  { %v3503_v2 = vpack.c.bf16 %v3499_v34, %v3499_v34  ;;  %v6183_v1 = vld [vmem:[%s7663_s17 + $0x18] sm:$0xff]  ;;  %v6189_v28 = vld [vmem:[%s7663_s17 + $0x48] sm:$0xff] }
 0x218   :  { %v5437_v24 = vmul.f32 -1.442695, %v3046_v31  ;;  %v5652_v31 = vld [vmem:[%s7661_s15 + $0x88] sm:$0xf0] }
 0x219   :  { %v3006_v21 = vpop.f32.mrf.mxu0  ;;  %v3019_v11 = vpop.f32.mrf.mxu1  ;;  %3713 = vmatpush.bf16.msrb.mxu3 %v5675_v47  ;;  %3739 = vmatpush.bf16.msrb.mxu1 %v5679_v58  ;;  %v5655_v63 = vor.u32 %v6164_v29, %v5652_v31  ;;  %v3502_v58 = vpack.c.bf16 %v3498_v25, %v3498_v25 }
 0x21a   :  { %v6237_v60 = vpop.eup %6236  ;;  %6238 = vpow2.f32 %v5437_v24  ;;  %3703 = vmatpush.bf16.msrb.mxu2 %v5587_v62  ;;  %3727 = vmatpush.bf16.msrb.mxu0 %v5607_v4  ;;  %v6194_v4 = vld [vmem:[%s7663_s17 + $0x70] sm:$0xff] }
 0x21b   :  { %v3134_v57 = vmul.f32 %v6237_v60, %v7413_v16  ;;  %6240 = vtanh.f32 %v7161_v40  ;;  %vm3139_vm6 = vweird.f32 %v6237_v60  ;;  %v5659_v40 = vor.u32 %v6167_v32, %v5658_v7  ;;  %v6193_v7 = vld [vmem:[%s7663_s17 + $0x68] sm:$0xff]  ;;  %v6192_v32 = vld [vmem:[%s7663_s17 + $0x60] sm:$0xff] }
 0x21c   :  { %vm3140_vm8 = vmor %vm3138_vm7, %vm3139_vm6  ;;  %v5651_v16 = vor.u32 %v6165_v14, %v5650_v19  ;;  %v6188_v19 = vld [vmem:[%s7663_s17 + $0x40] sm:$0xff] }
 0x21d   :  { %v3135_v52 = vsub.f32 1.0, %v3134_v57  ;;  %3714 = vmatpush.bf16.msrb.mxu3 %v5667_v22  ;;  %3740 = vmatpush.bf16.msrb.mxu1 %v5671_v8  ;;  %v6186_v8 = vld [vmem:[%s7663_s17 + $0x30] sm:$0xff] }
 0x21e   :  { %3728 = vmatpush.bf16.msrb.mxu0 %v5599_v17 }
 0x21f   :  { %v3136_v12 = vmul.f32 %v6237_v60, %v3135_v52 }
 0x220   :  { %v6239_v15 = vpop.eup %6238 }
 0x221   :  { %v3132_v20 = vadd.f32 1.0, %v6239_v15  ;;  %v3137_v10 = vadd.f32 %v6237_v60, %v3136_v12  ;;  %3715 = vmatpush.bf16.msrb.mxu3 %v5659_v40  ;;  %v6241_v13 = vpop.eup %6240  ;;  %3741 = vmatpush.bf16.msrb.mxu1 %v5663_v26  ;;  %v6184_v12 = vld [vmem:[%s7663_s17 + $0x20] sm:$0xff]  ;;  %v6182_v15 = vld [vmem:[%s7663_s17 + $0x10] sm:$0xff] }
 0x222   :  { %3729 = vmatpush.bf16.msrb.mxu0 %v5591_v6 }
 0x223   :  { %6242 = vrcp.f32 %v3132_v20  ;;  %v3141_v27 = vsel %vm3140_vm8, %v6237_v60, %v3137_v10  ;;  %v3159_v47 = vand.u32 2147483648, %v3132_v20  ;;  %v3157_v48 = vand.u32 2147483647, %v3132_v20  ;;  %v6180_v10 = vld [vmem:[%s7663_s17] sm:$0xff] }
 0x224   :  { %v3146_v0 = vsel %vm3143_vm9, %v3145_v49, %v3141_v27  ;;  %6244 = vtanh.f32 %v7305_v5  ;;  %vm3153_vm11 = vweird.f32 %v3132_v20 }
 0x225   :  { %v3178_v24 = vmul.f32 %v6241_v13, %v3146_v0  ;;  %3716 = vmatpush.bf16.msrb.mxu3 %v5651_v16  ;;  %3742 = vmatpush.bf16.msrb.mxu1 %v5655_v63  ;;  %v3160_v60 = vor.u32 1.1754944e-38, %v3159_v47  ;;  %vm3158_vm13 = vcmp.eq.f32.partialorder %v3157_v48, 8.507059e+37  ;;  %v3750_v13 = vld [vmem:[%s7662_s16] sm:$0x3]  ;;  %s3980_s16 = sshll.u32 %s6463_s27, 4  ;;  %s3981_s16 = int_to_ptr.vmem [resolvable:$true] %s3980_s16 }
 0x226   :  { %v3752_v48 = vperm.slane %v3750_v13, 0 }
 0x227   :  { %v3193_v39 = vpack.c.bf16 %v3178_v24, %v3178_v24 }
 0x229   :  { %v6243_v9 = vpop.eup %6242  ;;  %3451 = vmatmul.bf16.vlgmr.msra.gmra.mxu2 %v3193_v39  ;;  %3477 = vmatmul.bf16.vlgmr.msra.gmra.mxu0 %v3193_v39 }
 0x22a   :  { %v3149_v21 = vmul.f32 %v6243_v9, %v3132_v20  ;;  %vm3154_vm10 = vweird.f32 %v6243_v9  ;;  %v6245_v55 = vpop.eup %6244  ;;  %3904 = vmatpush.bf16.msra.mxu2 %v6187_v36  ;;  %v6181_v20 = vld [vmem:[%s7663_s17 + $0x8] sm:$0xff] }
 0x22b   :  { %vm3155_vm12 = vmor %vm3153_vm11, %vm3154_vm10 }
 0x22c   :  { %v3150_v11 = vsub.f32 1.0, %v3149_v21 }
 0x22e   :  { %v3151_v41 = vmul.f32 %v6243_v9, %v3150_v11  ;;  %3905 = vmatpush.bf16.msra.mxu2 %v6186_v8 }
 0x230   :  { %v3152_v50 = vadd.f32 %v6243_v9, %v3151_v41 }
 0x232   :  { %v3156_v56 = vsel %vm3155_vm12, %v6243_v9, %v3152_v50  ;;  %3906 = vmatpush.bf16.msra.mxu2 %v6185_v37  ;;  %v3753_v9 = vperm.slane %v3750_v13, 1 }
 0x233   :  { %v3161_v30 = vsel %vm3158_vm13, %v3160_v60, %v3156_v56 }
 0x234   :  { %v3179_v57 = vmul.f32 %v6245_v55, %v3161_v30 }
 0x236   :  { %v3194_v62 = vpack.c.bf16 %v3179_v57, %v3179_v57  ;;  %v3189_v23 = vrot.slane %v3179_v57, 6  ;;  %3907 = vmatpush.bf16.msra.mxu2 %v6184_v12 }
 0x238   :  { %3464 = vmatmul.bf16.vlgmr.msra.gmra.mxu3 %v3194_v62  ;;  %3490 = vmatmul.bf16.vlgmr.msra.gmra.mxu1 %v3194_v62  ;;  %v3190_v5 = vsel %vm3183_vm5, %v3178_v24, %v3189_v23 }
 0x239   :  { %3704 = vmatmul.bf16.vlgmr.msrb.gmra.mxu2 %v3502_v58  ;;  %3730 = vmatmul.bf16.vlgmr.msrb.gmra.mxu0 %v3502_v58  ;;  %3192 = vst [vmem:[#allocation11] sm:$0xf] %v3190_v5 }
 0x23a   :  { %3917 = vmatpush.bf16.msra.mxu3 %v6195_v18  ;;  %3908 = vmatpush.bf16.msra.mxu2 %v6183_v1 }
 0x23e   :  { %3918 = vmatpush.bf16.msra.mxu3 %v6194_v4  ;;  %3909 = vmatpush.bf16.msra.mxu2 %v6182_v15 }
 0x242   :  { %3919 = vmatpush.bf16.msra.mxu3 %v6193_v7  ;;  %3910 = vmatpush.bf16.msra.mxu2 %v6181_v20 }
 0x246   :  { %3920 = vmatpush.bf16.msra.mxu3 %v6192_v32  ;;  %3911 = vmatpush.bf16.msra.mxu2 %v6180_v10  ;;  %v127_v32 = vld [vmem:[%s7690_s25] sm:$0xff] }
 0x248   :  { %3717 = vmatmul.bf16.vlgmr.msrb.gmra.mxu3 %v3503_v2  ;;  %3743 = vmatmul.bf16.vlgmr.msrb.gmra.mxu1 %v3503_v2 }
 0x24a   :  { %3921 = vmatpush.bf16.msra.mxu3 %v6191_v61 }
 0x24e   :  { %3922 = vmatpush.bf16.msra.mxu3 %v6190_v35 }
 0x252   :  { %3923 = vmatpush.bf16.msra.mxu3 %v6189_v28 }
 0x256   :  { %3924 = vmatpush.bf16.msra.mxu3 %v6188_v19 }
 0x270   :  { %v3279_v53 = vpop.f32.mrf.mxu3 }
 0x272   :  { %v3266_v22 = vpop.f32.mrf.mxu2 }
 0x278   :  { %v3281_v52 = vpop.f32.mrf.mxu3 }
 0x27a   :  { %v3268_v3 = vpop.f32.mrf.mxu2 }
 0x27b   :  { %v6213_v3 = vld [vmem:[%s7664_s18] ss:$0 sm:$0xff]  ;;  %s4004_s18 = sshll.u32 %s7709_s23, 4  ;;  %s4005_s18 = int_to_ptr.hbm [resolvable:$true] %s4004_s18 }
 0x2a6   :  { %v3478_v40 = vpop.f32.mrf.mxu0 }
 0x2a7   :  { %v3479_v0 = vadd.f32 %v3478_v40, %v3279_v53 }
 0x2ac   :  { %v3452_v17 = vpop.f32.mrf.mxu2 }
 0x2ad   :  { %v3453_v11 = vadd.f32 %v3452_v17, %v3266_v22 }
 0x2ae   :  { %v3480_v14 = vpop.f32.mrf.mxu0 }
 0x2b4   :  { %v3454_v26 = vpop.f32.mrf.mxu2 }
 0x2b5   :  { %v3491_v33 = vpop.f32.mrf.mxu1 }
 0x2b6   :  { %v3731_v38 = vpop.f32.mrf.mxu0  ;;  %v3492_v63 = vadd.f32 %v3491_v33, %v3479_v0 }
 0x2bb   :  { %v3465_v49 = vpop.f32.mrf.mxu3 }
 0x2bc   :  { %v3705_v27 = vpop.f32.mrf.mxu2  ;;  %v3466_v50 = vadd.f32 %v3465_v49, %v3453_v11 }
 0x2bd   :  { %v3493_v16 = vpop.f32.mrf.mxu1 }
 0x2be   :  { %v3733_v29 = vpop.f32.mrf.mxu0 }
 0x2c3   :  { %v3467_v31 = vpop.f32.mrf.mxu3 }
 0x2c4   :  { %v3707_v6 = vpop.f32.mrf.mxu2 }
 0x2c5   :  { %v3744_v24 = vpop.f32.mrf.mxu1 }
 0x2c6   :  { %v3745_v39 = vadd.f32 %v3744_v24, %v3731_v38 }
 0x2c8   :  { %v3749_v21 = vadd.f32 %v3745_v39, %v3492_v63 }
 0x2ca   :  { %v3757_v47 = vadd.f32 %v3753_v9, %v3749_v21 }
 0x2cb   :  { %v3718_v41 = vpop.f32.mrf.mxu3 }
 0x2cc   :  { %vm3759_vm14 = vcmp.gt.f32.partialorder %v3757_v47, 0.0  ;;  %v3761_v60 = vmul.f32 0.01, %v3757_v47  ;;  %v3719_v56 = vadd.f32 %v3718_v41, %v3705_v27 }
 0x2cd   :  { %v3746_v25 = vpop.f32.mrf.mxu1 }
 0x2ce   :  { %v3763_v55 = vsel %vm3759_vm14, %v3757_v47, %v3761_v60  ;;  %v3748_v30 = vadd.f32 %v3719_v56, %v3466_v50 }
 0x2cf   :  { %v3771_v57 = vpack.c.bf16 %v3763_v55, %v3763_v55  ;;  %v3766_v5 = vrot.slane %v3763_v55, 6 }
 0x2d0   :  { %v3756_v58 = vadd.f32 %v3752_v48, %v3748_v30 }
 0x2d1   :  { %3925 = vmatmul.bf16.vlgmr.msra.gmra.mxu3 %v3771_v57 }
 0x2d2   :  { %vm3758_vm15 = vcmp.gt.f32.partialorder %v3756_v58, 0.0  ;;  %v3760_v62 = vmul.f32 0.01, %v3756_v58 }
 0x2d3   :  { %v3720_v23 = vpop.f32.mrf.mxu3 }
 0x2d4   :  { %v3762_v34 = vsel %vm3758_vm15, %v3756_v58, %v3760_v62 }
 0x2d5   :  { %v3770_v2 = vpack.c.bf16 %v3762_v34, %v3762_v34  ;;  %v3767_v22 = vsel %vm3183_vm5, %v3762_v34, %v3766_v5 }
 0x2d6   :  { %3769 = vst [vmem:[#allocation9] sm:$0xf] %v3767_v22 }
 0x2d7   :  { %3912 = vmatmul.bf16.vlgmr.msra.gmra.mxu2 %v3770_v2  ;;  %3974 = dma.vmem_to_hbm [thread:$0]  %s3970_s12, 64, %s3972_s3, [#allocation10]  }
 0x354   :  { %v3926_v53 = vpop.f32.mrf.mxu3 }
 0x35a   :  { %v3913_v52 = vpop.f32.mrf.mxu2 }
 0x35b   :  { %v3914_v18 = vadd.f32 %v6213_v3, %v3913_v52 }
 0x35c   :  { %v3928_v4 = vpop.f32.mrf.mxu3 }
 0x35d   :  { %v7580_v36 = vadd.f32 %v3926_v53, %v3914_v18 }
 0x35f   :  { %3946 = vrot.lane.b32.xlu2 %v7580_v36, %s6460_s6  ;;  %v3931_v7 = vsel %vm3930_vm0, %v7580_v36, -inf  ;;  %s3982_s6 = sshll.u32 %s7668_s22, 4  ;;  %s3983_s6 = int_to_ptr.hbm [resolvable:$true] %s3982_s6 }
 0x360   :  { %3932 = vmax.xlane.f32.xlu0 %v3931_v7  ;;  %3985 = dma.vmem_to_hbm [thread:$0]  %s3981_s16, 64, %s3983_s6, [#allocation10]  }
 0x362   :  { %v3915_v8 = vpop.f32.mrf.mxu2 }
 0x374   :  { %138 = vperm.xlu0 %6210, %v127_v32  }
 0x3b9   :  { %v3947_v37 = vpop.permute.xlu2 %3946 }
 0x3ba   :  { %3950 = vst.msk [vmem:[#allocation14] sm:$0x3] %vm3949_vm1, %v3947_v37 }
 0x3bb   :  { %4007 = dma.vmem_to_hbm [thread:$0]  %s4003_s13, 32, %s4005_s18, [#allocation13]  }
 0x3d3   :  { %v3933_v61 = vpop.xlane.xlu0 %3932 }
 0x3d4   :  { %v3934_v12 = vsub.f32 %v7580_v36, %v3933_v61 }
 0x3d6   :  { %v3935_v35 = vmul.f32 1.442695, %v3934_v12 }
 0x3d8   :  { %6246 = vpow2.f32 %v3935_v35 }
 0x3de   :  { %v6247_v40 = vpop.eup %6246 }
 0x3df   :  { %v3937_v1 = vsel %vm3930_vm0, %v6247_v40, 0.0 }
 0x3e0   :  { %3938 = vadd.xlane.f32.xlu1 %v3937_v1 }
 0x3e6   :  { %v139_v28 = vpop.permute.xlu0 %138 }
 0x3e7   :  { %v228_v15 = vadd.f32 %v6753_v45, %v139_v28  ;;  %v269_v17 = vadd.f32 %v6755_v46, %v139_v28  ;;  %v337_v19 = vadd.f32 %v6776_v43, %v139_v28  ;;  %v378_v14 = vadd.f32 %v6778_v44, %v139_v28  ;;  %v134_v45 = vld [vmem:[%s7690_s25 + $0x38] sm:$0xff]  ;;  %s6465_s25 = smov [#allocation8]  }
 0x3e8   :  { %s3958_s9 = sshll.u32 %s6465_s25, 4  ;;  %s3959_s9 = int_to_ptr.vmem [resolvable:$true] %s3958_s9 }
 0x3e9   :  { %292 = vst [vmem:[%s7665_s19] sm:$0xff] %v228_v15 }
 0x3ea   :  { %294 = vst.msk [vmem:[%s7665_s19 + $0x8] sm:$0xff] %vm293_vm2, %v269_v17 }
 0x3eb   :  { %4072 = vst [vmem:[%s7665_s19 + $0x80] sm:$0xff] %v337_v19 }
 0x3ec   :  { %4073 = vst.msk [vmem:[%s7665_s19 + $0x88] sm:$0xff] %vm293_vm2, %v378_v14 }
 0x3f9   :  { %173 = vperm.xlu1 %6211, %v134_v45  }
 0x453   :  { %v3939_v46 = vpop.xlane.xlu1 %3938 }
 0x454   :  { %6248 = vlog2.f32 %v3939_v46 }
 0x45a   :  { %v6249_v43 = vpop.eup %6248 }
 0x45b   :  { %v3941_v44 = vmul.f32 0.6931472, %v6249_v43 }
 0x45d   :  { %v3942_v20 = vadd.f32 %v3941_v44, %v3933_v61 }
 0x45f   :  { %v3943_v10 = vsub.f32 %v7580_v36, %v3942_v20 }
 0x461   :  { %3944 = vst.msk [vmem:[#allocation8] sm:$0x3] %vm3930_vm0, %v3943_v10 }
 0x462   :  { %3963 = dma.vmem_to_hbm [thread:$0]  %s3959_s9, 32, %s3961_s0, [#allocation4]  }
 0x46b   :  { %v174_v26 = vpop.permute.xlu1 %173 }
 0x46c   :  { %v249_v33 = vadd.f32 %v6872_v51, %v174_v26  ;;  %v290_v38 = vadd.f32 %v6874_v54, %v174_v26  ;;  %v358_v49 = vadd.f32 %v6902_v42, %v174_v26  ;;  %v399_v27 = vadd.f32 %v6904_v59, %v174_v26 }
 0x46e   :  { %307 = vst [vmem:[%s7665_s19 + $0x70] sm:$0xff] %v249_v33 }
 0x46f   :  { %308 = vst.msk [vmem:[%s7665_s19 + $0x78] sm:$0xff] %vm293_vm2, %v290_v38 }
 0x470   :  { %4086 = vst [vmem:[%s7665_s19 + $0xf0] sm:$0xff] %v358_v49 }
 0x471   :  { %4087 = vst.msk [vmem:[%s7665_s19 + $0xf8] sm:$0xff] %vm293_vm2, %v399_v27 }
 0x472   :  { %6446 = dma.done.wait [#allocation4], 32  }
 0x473   :  { %6447 = vsyncadd [#allocation4], 4294967264 }
 0x474   :  { %6448 = dma.done.wait [#allocation10], 128  }
 0x475   :  { %6449 = vsyncadd [#allocation10], 4294967168 }
 0x476   :  { %6450 = dma.done.wait [#allocation13], 96  }
 0x477   :  { %6451 = vsyncadd [#allocation13], 4294967200 }
 0x478   :  { %4030 = vsyncpa [#allocation3], 1 }
 0x479   :  { %4031 = vsyncpa [#allocation6], 1 }
 0x47a   :  { %4032 = vsyncpa [#allocation4], 1 }
 0x47b   :  { %4033 = vsyncpa [#allocation10], 1 }
 0x47c   :  { %4034 = vsyncpa [#allocation13], 1 }

</bundles_post_ra>
